<compile_context>
chip_gen: v6e
topology: v6e:2x2x1
jax: 0.10.0
libtpu: 0.0.40
codegen_flags: <defaults>
</compile_context>

<pallas_src>
import functools

import numpy as np
import jax
import jax.numpy as jnp
from jax.experimental import pallas as pl
from jax.experimental.pallas import tpu as pltpu


def _round8(n):
    return ((n + 7) // 8) * 8


# --------------------------------------------------------------------------------------
# Fused kernel: encoder -> quant_conv -> multi-scale residual VQ -> post_quant_conv -> decoder
# --------------------------------------------------------------------------------------

def _msat_kernel(x_ref, w_ref, b_ref, cbn_ref, cbt_ref, ops_ref, out_ref, loss_ref,
                 *, Apg, nlev, SN, C, B, Hf, resi, conv_R, conv_op, dn_op, up_op, pns):
    f32 = jnp.float32
    loss_row = jnp.zeros((1, C), f32)

    def conv(a, li, s, swish):
        """3-tap 'same' conv along the flattened (batch-major) row axis, fused with the
        preceding resample:  out = G_li @ vstack([s@W_prev, s@W_cur, s@W_next]) + b,
        where G_li = [P@Pre | Pre | N@Pre] is a precomputed row operator (P/N = +-1-row
        shifts with per-sample boundary zeros, Pre = preceding pool/upsample or identity).
        Two MXU dots per conv; no masks, no scratch, no serial VPU MAC chain."""
        rsrc = s.shape[0]
        wcat = w_ref[0, a, li]                                         # [C, 3C]
        y = jnp.dot(s, wcat, preferred_element_type=f32)               # [rsrc, 3C]
        ys = jnp.concatenate([y[:, 0:C], y[:, C:2 * C], y[:, 2 * C:3 * C]], axis=0)
        g = ops_ref[conv_op[li], 0:conv_R[li], 0:3 * rsrc]             # [R, 3*rsrc]
        o = jnp.dot(g, ys, preferred_element_type=f32) + b_ref[0, a, li:li + 1, :]
        if swish:
            o = o * jax.nn.sigmoid(o)                                  # SiLU, f32
        return o

    for a in range(Apg):
        # ------------------ encoder + quant_conv --------------------------------------
        h = conv(a, 0, x_ref[0, a], True)                              # conv_in
        for i in range(nlev):
            h = conv(a, 1 + i, h, True)                                # level conv (pool folded)
        f = conv(a, nlev + 1, h, False)                                # conv_out (pool folded)
        f = conv(a, nlev + 2, f, False)                                # quant_conv

        # ------------------ VectorQuantizer2 (inference): multi-scale residual VQ -----
        cbn = cbn_ref[0, a]                                            # [C, V] normalized
        cbt = cbt_ref[0, a]                                            # [C, V] raw
        V = cbn.shape[1]
        f_hat = jnp.zeros_like(f)
        f_rest = f
        for si in range(SN):
            last = si == SN - 1
            if last:
                rest = f_rest
            else:
                dn = ops_ref[dn_op[si], 0:B * pns[si], 0:B * Hf]
                rest = jnp.dot(dn, f_rest, preferred_element_type=f32)
            # cosine-similarity argmax; z-normalization dropped (cannot change the argmax)
            sim = jnp.dot(rest, cbn, preferred_element_type=f32)       # [n, V] lane-dense
            lane = jax.lax.broadcasted_iota(jnp.int32, sim.shape, 1)
            mx = jnp.max(sim, axis=1, keepdims=True)
            idx = jnp.min(jnp.where(sim >= mx, lane, V), axis=1, keepdims=True)
            onehot = (lane == idx).astype(f32)
            q = jax.lax.dot_general(onehot, cbt, (((1,), (1,)), ((), ())),
                                    preferred_element_type=f32)        # embedding(idx) [n, C]
            if last:
                hq = q
            else:
                up = ops_ref[up_op[si], 0:B * Hf, 0:B * pns[si]]
                hq = jnp.dot(up, q, preferred_element_type=f32)        # [B*Hf, C]
            hphi = conv(a, nlev + 3 + si, hq, False)                   # quant_resi phi conv
            hq = hq * (1.0 - resi) + hphi * resi
            f_hat = f_hat + hq
            f_rest = f_rest - hq
            d = f_hat - f
            loss_row = loss_row + jnp.sum(d * d, axis=0, keepdims=True)  # per-scale sq-err

        # ------------------ post_quant_conv + decoder ---------------------------------
        g2 = conv(a, nlev + 3 + SN, f_hat, False)                      # post_quant_conv
        h = conv(a, nlev + 4 + SN, g2, True)                           # dec conv_in
        for j in range(nlev):
            h = conv(a, nlev + 5 + SN + j, h, True)                    # level conv (x2 folded)
        recon = conv(a, 2 * nlev + 5 + SN, h, False)                   # dec conv_out
        out_ref[0, a] = recon                                          # channel 0 is the output

    loss_ref[0] = loss_row


# --------------------------------------------------------------------------------------
# Row-space operators (numpy, trace-time) packed into ONE input array
# --------------------------------------------------------------------------------------

def _shift_prev(H):
    m = np.zeros((H, H), np.float32)
    for i in range(1, H):
        m[i, i - 1] = 1.0
    return m


def _shift_next(H):
    m = np.zeros((H, H), np.float32)
    for i in range(H - 1):
        m[i, i + 1] = 1.0
    return m


def _avgpool2(H):
    m = np.zeros((H // 2, H), np.float32)
    for i in range(H // 2):
        m[i, 2 * i] = 0.5
        m[i, 2 * i + 1] = 0.5
    return m


def _repeat2(H):
    m = np.zeros((2 * H, H), np.float32)
    for i in range(2 * H):
        m[i, i // 2] = 1.0
    return m


def _area_down(H, pn):
    m = np.zeros((pn, H), np.float32)
    for i in range(pn):
        s = (i * H) // pn
        e = -(-((i + 1) * H) // pn)
        m[i, s:e] = 1.0 / (e - s)
    return m


def _nearest_up(H, pn):
    m = np.zeros((H, pn), np.float32)
    for i in range(H):
        m[i, (i * pn) // H] = 1.0
    return m


def _build_ops(B, NA, Hf, nlev, SN, v_patch_nums):
    eye_b = np.eye(B, dtype=np.float32)

    def bd(m):  # block-diagonal over the batch
        return np.kron(eye_b, m).astype(np.float32)

    def gather_op(H, pre):              # G = [P@Pre | Pre | N@Pre], shape (B*H, 3*src)
        if pre is None:
            pre = np.eye(B * H, dtype=np.float32)
        p = bd(_shift_prev(H)) @ pre
        n = bd(_shift_next(H)) @ pre
        return np.concatenate([p, pre, n], axis=1)

    ops, cache = [], {}

    def add(mat, key):
        if key in cache:
            return cache[key]
        cache[key] = len(ops)
        ops.append(mat)
        return cache[key]

    conv_specs = [(NA, None)]                                          # enc conv_in
    for i in range(nlev):
        conv_specs.append((NA >> i, None if i == 0 else ('pool', NA >> (i - 1))))
    conv_specs.append((Hf, ('pool', NA >> (nlev - 1))))                # enc conv_out
    conv_specs.append((Hf, None))                                      # quant_conv
    for _ in range(SN):
        conv_specs.append((Hf, None))                                  # quant_resi phi convs
    conv_specs.append((Hf, None))                                      # post_quant_conv
    conv_specs.append((Hf, None))                                      # dec conv_in
    for j in range(nlev):
        conv_specs.append((Hf << (j + 1), ('rep', Hf << j)))           # dec level convs
    conv_specs.append((NA, None))                                      # dec conv_out

    conv_op, conv_R = [], []
    for (H, kind) in conv_specs:
        if kind is None:
            pre = None
        elif kind[0] == 'pool':
            pre = bd(_avgpool2(kind[1]))
        else:
            pre = bd(_repeat2(kind[1]))
        conv_op.append(add(gather_op(H, pre), ('conv', H, kind)))
        conv_R.append(B * H)

    dn_op = [add(bd(_area_down(Hf, pn)), ('dn', pn)) for pn in v_patch_nums[:-1]]
    up_op = [add(bd(_nearest_up(Hf, pn)), ('up', pn)) for pn in v_patch_nums[:-1]]

    opr = max(m.shape[0] for m in ops)
    opc = max(m.shape[1] for m in ops)
    packed = np.zeros((len(ops), opr, opc), np.float32)
    for k, m in enumerate(ops):
        packed[k, :m.shape[0], :m.shape[1]] = m
    return packed, tuple(conv_op), tuple(conv_R), tuple(dn_op), tuple(up_op)


# --------------------------------------------------------------------------------------
# Forward wrapper
# --------------------------------------------------------------------------------------

def msat_forward(params, inp, *, v_patch_nums, beta, ch_mult, quant_resi, z_channels):
    """MultiScaleActionTokenizer.forward; inp is NCHW [B, 1, num_actions, action_dim]."""
    B, _, NA, A = inp.shape
    nlev = len(ch_mult)
    SN = len(v_patch_nums)
    Hf = NA >> nlev
    assert NA & (NA - 1) == 0, "num_actions must be a power of two"
    assert v_patch_nums[-1] == Hf, "last patch num must equal the latent resolution"

    w_all = params['w']                                 # [A, L, C, 3C]
    b_all = params['b']                                 # [A, L, C]
    cbt_all = params['cb_t']                            # [A, C, V]  raw, lane-dense
    L, C = int(w_all.shape[1]), int(w_all.shape[2])
    V = int(cbt_all.shape[-1])

    NG = 2 if (A % 2 == 0 and A >= 2) else 1            # 2 parallel groups -> both TCs on v7x
    Apg = A // NG

    # constant prep once per call (outside the kernel): codebook normalization, input packing
    norm = jnp.sqrt(jnp.sum(cbt_all * cbt_all, axis=1, keepdims=True))
    cbn_all = cbt_all / jnp.maximum(norm, 1e-12)

    x = jnp.transpose(inp[:, 0, :, :], (2, 0, 1)).reshape(A, B * NA, 1)
    x = jnp.pad(x, ((0, 0), (0, 0), (0, C - 1)))        # channel-pad to the pipeline width

    ops_np, conv_op, conv_R, dn_op, up_op = _build_ops(B, NA, Hf, nlev, SN, v_patch_nums)
    n_ops, opr, opc = ops_np.shape

    kernel = functools.partial(
        _msat_kernel, Apg=Apg, nlev=nlev, SN=SN, C=C, B=B, Hf=Hf,
        resi=float(quant_resi), conv_R=conv_R, conv_op=conv_op,
        dn_op=dn_op, up_op=up_op, pns=tuple(int(p) for p in v_patch_nums))

    out_k, loss_k = pl.pallas_call(
        kernel,
        out_shape=(jax.ShapeDtypeStruct((NG, Apg, B * NA, C), jnp.float32),
                   jax.ShapeDtypeStruct((NG, 1, C), jnp.float32)),
        grid=(NG,),
        in_specs=[
            pl.BlockSpec((1, Apg, B * NA, C), lambda g: (g, 0, 0, 0)),       # input slab
            pl.BlockSpec((1, Apg, L, C, 3 * C), lambda g: (g, 0, 0, 0, 0)),  # packed conv W
            pl.BlockSpec((1, Apg, L, C), lambda g: (g, 0, 0, 0)),            # packed biases
            pl.BlockSpec((1, Apg, C, V), lambda g: (g, 0, 0, 0)),            # normalized cb
            pl.BlockSpec((1, Apg, C, V), lambda g: (g, 0, 0, 0)),            # raw cb
            pl.BlockSpec((n_ops, opr, opc), lambda g: (0, 0, 0)),            # row operators
        ],
        out_specs=(pl.BlockSpec((1, Apg, B * NA, C), lambda g: (g, 0, 0, 0)),
                   pl.BlockSpec((1, 1, C), lambda g: (g, 0, 0))),
        compiler_params=pltpu.CompilerParams(dimension_semantics=("parallel",)),
    )(x.reshape(NG, Apg, B * NA, C),
      w_all.reshape(NG, Apg, L, C, 3 * C),
      b_all.reshape(NG, Apg, L, C),
      cbn_all.reshape(NG, Apg, C, V),
      cbt_all.reshape(NG, Apg, C, V),
      jnp.asarray(ops_np))

    recon = out_k[..., 0].reshape(A, B, NA)                         # channel 0 is real
    output = jnp.transpose(recon, (1, 2, 0))[:, None, :, :]         # -> [B, 1, NA, A]
    # eval/test-mode VQ loss: (1+beta)/SN * sum_si mse(f_hat_si, f), summed over actions
    total_vq_loss = (1.0 + beta) / (SN * B * z_channels * Hf * 1) * jnp.sum(loss_k)
    usages = [None] * A
    return output, usages, total_vq_loss


# --------------------------------------------------------------------------------------
# Parameter init: PyTorch-layout 3x3 Conv2d weights, packed to the kernel layout
# (W == 1 with 'same' padding => only the centre kw column acts, so folding is exact)
# --------------------------------------------------------------------------------------

def _init_conv_packed(key, cin, cout, cmax, scale=0.1):
    kw, kb = jax.random.split(key)
    w = scale * jax.random.normal(kw, (cout, cin, 3, 3), jnp.float32)
    b = scale * jax.random.normal(kb, (cout,), jnp.float32)
    wt = np.asarray(jnp.transpose(w[:, :, :, 1], (2, 1, 0)))            # [3(kh), cin, cout]
    wcat = np.zeros((cmax, 3 * cmax), np.float32)                       # [W_prev|W_cur|W_next]
    for t in range(3):
        wcat[:cin, t * cmax:t * cmax + cout] = wt[t]
    bias = np.zeros((cmax,), np.float32)
    bias[:cout] = np.asarray(b)
    return wcat, bias


def _layer_dims(ch, ch_mult, z_channels, SN):
    dims = [(1, ch)]                                     # enc conv_in
    prev = ch
    for m in ch_mult:
        dims.append((prev, ch * m))                      # enc level convs
        prev = ch * m
    dims.append((prev, z_channels))                      # enc conv_out
    dims.append((z_channels, z_channels))                # quant_conv
    dims += [(z_channels, z_channels)] * SN              # quant_resi phi convs
    dims.append((z_channels, z_channels))                # post_quant_conv
    dims.append((z_channels, ch * ch_mult[-1]))          # dec conv_in
    prev = ch * ch_mult[-1]
    for m in reversed(ch_mult):
        dims.append((prev, ch * m))                      # dec level convs
        prev = ch * m
    dims.append((prev, 1))                               # dec conv_out
    return dims


def init_params(key, *, action_dim, ch, ch_mult, z_channels, vocab_size, v_patch_nums):
    SN = len(v_patch_nums)
    dims = _layer_dims(ch, ch_mult, z_channels, SN)
    cmax = _round8(max([z_channels] + [max(ci, co) for ci, co in dims]))
    L = len(dims)

    w_all = np.zeros((action_dim, L, cmax, 3 * cmax), np.float32)
    b_all = np.zeros((action_dim, L, cmax), np.float32)
    cb_all = np.zeros((action_dim, cmax, vocab_size), np.float32)

    for a in range(action_dim):
        ks = iter(jax.random.split(jax.random.fold_in(key, a), L + 1))
        for li, (ci, co) in enumerate(dims):
            wcat, bias = _init_conv_packed(next(ks), ci, co, cmax)
            w_all[a, li] = wcat
            b_all[a, li] = bias
        cb = 0.1 * jax.random.normal(next(ks), (vocab_size, z_channels), jnp.float32)
        cb_all[a, :z_channels, :] = np.asarray(cb).T     # lane-dense [C, V], channel-padded

    return {'w': jnp.asarray(w_all), 'b': jnp.asarray(b_all), 'cb_t': jnp.asarray(cb_all)}


# --------------------------------------------------------------------------------------
# main
# --------------------------------------------------------------------------------------

if __name__ == "__main__":
    # config (small, consistent with module defaults; action_dim reduced 10 -> 4)
    VOCAB_SIZE = 512
    Z_CHANNELS = 8
    CH = 2
    CH_MULT = (2, 4)
    ACTION_DIM = 4
    NUM_ACTIONS = 16
    BETA = 0.25
    QUANT_RESI = 0.5
    V_PATCH_NUMS = (1, 2, 3, 4)
    B = 2

    key = jax.random.PRNGKey(0)
    k_param, k_inp = jax.random.split(key)
    params = init_params(k_param, action_dim=ACTION_DIM, ch=CH, ch_mult=CH_MULT,
                         z_channels=Z_CHANNELS, vocab_size=VOCAB_SIZE,
                         v_patch_nums=V_PATCH_NUMS)

    # inp: NCHW [batch, 1, num_actions, action_dim]  (PyTorch conv layout)
    inp = jax.random.normal(k_inp, (B, 1, NUM_ACTIONS, ACTION_DIM), jnp.float32)

    fwd = jax.jit(functools.partial(msat_forward, v_patch_nums=V_PATCH_NUMS, beta=BETA,
                                    ch_mult=CH_MULT, quant_resi=QUANT_RESI,
                                    z_channels=Z_CHANNELS))
    output, usages, total_vq_loss = fwd(params, inp)
    jax.block_until_ready((output, total_vq_loss))

    assert output.shape == inp.shape, (output.shape, inp.shape)
    assert total_vq_loss.shape == ()
    assert len(usages) == ACTION_DIM
    assert bool(jnp.all(jnp.isfinite(output)))
    assert bool(jnp.isfinite(total_vq_loss))
    print("KERNEL_OK")
</pallas_src>

<mosaic_0001>
module attributes {stable_mosaic.version = 11 : i64} {
  func.func @_msat_kernel(%arg0: i32, %arg1: memref<1x2x32x8xf32, #tpu.memory_space<vmem>>, %arg2: memref<1x2x14x8x24xf32, #tpu.memory_space<vmem>>, %arg3: memref<1x2x14x8xf32, #tpu.memory_space<vmem>>, %arg4: memref<1x2x8x512xf32, #tpu.memory_space<vmem>>, %arg5: memref<1x2x8x512xf32, #tpu.memory_space<vmem>>, %arg6: memref<12x32x96xf32, #tpu.memory_space<vmem>>, %arg7: memref<1x2x32x8xf32, #tpu.memory_space<vmem>>, %arg8: memref<1x1x8xf32, #tpu.memory_space<vmem>>) attributes {dimension_semantics = [#tpu.dimension_semantics<parallel>], iteration_bounds = array<i64: 2>, scalar_prefetch = 0 : i64, scratch_operands = 0 : i64, tpu.core_type = #tpu.core_type<tc>, window_params = [{transform_indices = @transform_0, window_bounds = array<i64: 1, 2, 32, 8>}, {transform_indices = @transform_1, window_bounds = array<i64: 1, 2, 14, 8, 24>}, {transform_indices = @transform_2, window_bounds = array<i64: 1, 2, 14, 8>}, {transform_indices = @transform_3, window_bounds = array<i64: 1, 2, 8, 512>}, {transform_indices = @transform_4, window_bounds = array<i64: 1, 2, 8, 512>}, {pipeline_mode = #tpu.pipeline_mode<synchronous>, transform_indices = @transform_5, window_bounds = array<i64: 12, 32, 96>}, {transform_indices = @transform_6, window_bounds = array<i64: 1, 2, 32, 8>}, {transform_indices = @transform_7, window_bounds = array<i64: 1, 1, 8>}]} {
    %cst = arith.constant 0.000000e+00 : f32
    %0 = vector.broadcast %cst : f32 to vector<1x8xf32>
    %c0 = arith.constant 0 : index
    %c0_0 = arith.constant 0 : index
    %c0_1 = arith.constant 0 : index
    %c0_2 = arith.constant 0 : index
    %1 = vector.load %arg1[%c0, %c0_0, %c0_1, %c0_2] : memref<1x2x32x8xf32, #tpu.memory_space<vmem>>, vector<1x1x32x8xf32>
    %2 = vector.shape_cast %1 : vector<1x1x32x8xf32> to vector<32x8xf32>
    %c0_3 = arith.constant 0 : index
    %c0_4 = arith.constant 0 : index
    %c0_5 = arith.constant 0 : index
    %c0_6 = arith.constant 0 : index
    %c0_7 = arith.constant 0 : index
    %3 = vector.load %arg2[%c0_3, %c0_4, %c0_5, %c0_6, %c0_7] : memref<1x2x14x8x24xf32, #tpu.memory_space<vmem>>, vector<1x1x1x8x24xf32>
    %4 = vector.shape_cast %3 : vector<1x1x1x8x24xf32> to vector<8x24xf32>
    %cst_8 = arith.constant dense<0.000000e+00> : vector<32x24xf32>
    %5 = tpu.matmul %2, %4, %cst_8 {dimension_numbers = #tpu.dot_dimension_numbers<[1], [0], [0], [1], [0, 0, 1, 1], [], []>} : vector<32x8xf32>, vector<8x24xf32>, vector<32x24xf32> -> vector<32x24xf32>
    %6 = vector.extract_strided_slice %5 {offsets = [0, 0], sizes = [32, 8], strides = [1, 1]} : vector<32x24xf32> to vector<32x8xf32>
    %7 = vector.extract_strided_slice %5 {offsets = [0, 8], sizes = [32, 8], strides = [1, 1]} : vector<32x24xf32> to vector<32x8xf32>
    %8 = vector.extract_strided_slice %5 {offsets = [0, 16], sizes = [32, 8], strides = [1, 1]} : vector<32x24xf32> to vector<32x8xf32>
    %9 = tpu.concatenate %6, %7, %8 in 0 : vector<32x8xf32>, vector<32x8xf32>, vector<32x8xf32> -> vector<96x8xf32>
    %c0_9 = arith.constant 0 : index
    %c0_10 = arith.constant 0 : index
    %c0_11 = arith.constant 0 : index
    %10 = vector.load %arg6[%c0_9, %c0_10, %c0_11] : memref<12x32x96xf32, #tpu.memory_space<vmem>>, vector<1x32x96xf32>
    %11 = vector.shape_cast %10 : vector<1x32x96xf32> to vector<32x96xf32>
    %cst_12 = arith.constant dense<0.000000e+00> : vector<32x8xf32>
    %12 = tpu.matmul %11, %9, %cst_12 {dimension_numbers = #tpu.dot_dimension_numbers<[1], [0], [0], [1], [0, 0, 1, 1], [], []>} : vector<32x96xf32>, vector<96x8xf32>, vector<32x8xf32> -> vector<32x8xf32>
    %c0_13 = arith.constant 0 : index
    %c0_14 = arith.constant 0 : index
    %c0_15 = arith.constant 0 : index
    %c0_16 = arith.constant 0 : index
    %13 = vector.load %arg3[%c0_13, %c0_14, %c0_15, %c0_16] : memref<1x2x14x8xf32, #tpu.memory_space<vmem>>, vector<1x1x1x8xf32>
    %14 = vector.shape_cast %13 : vector<1x1x1x8xf32> to vector<1x8xf32>
    %15 = vector.broadcast %14 : vector<1x8xf32> to vector<32x8xf32>
    %16 = arith.addf %12, %15 : vector<32x8xf32>
    %17 = arith.negf %16 : vector<32x8xf32>
    %18 = math.exp %17 : vector<32x8xf32>
    %cst_17 = arith.constant 1.000000e+00 : f32
    %19 = vector.broadcast %cst_17 : f32 to vector<32x8xf32>
    %20 = arith.addf %19, %18 : vector<32x8xf32>
    %21 = arith.divf %19, %20 : vector<32x8xf32>
    %22 = arith.mulf %16, %21 : vector<32x8xf32>
    %c0_18 = arith.constant 0 : index
    %c0_19 = arith.constant 0 : index
    %c1 = arith.constant 1 : index
    %c0_20 = arith.constant 0 : index
    %c0_21 = arith.constant 0 : index
    %23 = vector.load %arg2[%c0_18, %c0_19, %c1, %c0_20, %c0_21] : memref<1x2x14x8x24xf32, #tpu.memory_space<vmem>>, vector<1x1x1x8x24xf32>
    %24 = vector.shape_cast %23 : vector<1x1x1x8x24xf32> to vector<8x24xf32>
    %cst_22 = arith.constant dense<0.000000e+00> : vector<32x24xf32>
    %25 = tpu.matmul %22, %24, %cst_22 {dimension_numbers = #tpu.dot_dimension_numbers<[1], [0], [0], [1], [0, 0, 1, 1], [], []>} : vector<32x8xf32>, vector<8x24xf32>, vector<32x24xf32> -> vector<32x24xf32>
    %26 = vector.extract_strided_slice %25 {offsets = [0, 0], sizes = [32, 8], strides = [1, 1]} : vector<32x24xf32> to vector<32x8xf32>
    %27 = vector.extract_strided_slice %25 {offsets = [0, 8], sizes = [32, 8], strides = [1, 1]} : vector<32x24xf32> to vector<32x8xf32>
    %28 = vector.extract_strided_slice %25 {offsets = [0, 16], sizes = [32, 8], strides = [1, 1]} : vector<32x24xf32> to vector<32x8xf32>
    %29 = tpu.concatenate %26, %27, %28 in 0 : vector<32x8xf32>, vector<32x8xf32>, vector<32x8xf32> -> vector<96x8xf32>
    %c0_23 = arith.constant 0 : index
    %c0_24 = arith.constant 0 : index
    %c0_25 = arith.constant 0 : index
    %30 = vector.load %arg6[%c0_23, %c0_24, %c0_25] : memref<12x32x96xf32, #tpu.memory_space<vmem>>, vector<1x32x96xf32>
    %31 = vector.shape_cast %30 : vector<1x32x96xf32> to vector<32x96xf32>
    %cst_26 = arith.constant dense<0.000000e+00> : vector<32x8xf32>
    %32 = tpu.matmul %31, %29, %cst_26 {dimension_numbers = #tpu.dot_dimension_numbers<[1], [0], [0], [1], [0, 0, 1, 1], [], []>} : vector<32x96xf32>, vector<96x8xf32>, vector<32x8xf32> -> vector<32x8xf32>
    %c0_27 = arith.constant 0 : index
    %c0_28 = arith.constant 0 : index
    %c1_29 = arith.constant 1 : index
    %c0_30 = arith.constant 0 : index
    %33 = vector.load %arg3[%c0_27, %c0_28, %c1_29, %c0_30] : memref<1x2x14x8xf32, #tpu.memory_space<vmem>>, vector<1x1x1x8xf32>
    %34 = vector.shape_cast %33 : vector<1x1x1x8xf32> to vector<1x8xf32>
    %35 = vector.broadcast %34 : vector<1x8xf32> to vector<32x8xf32>
    %36 = arith.addf %32, %35 : vector<32x8xf32>
    %37 = arith.negf %36 : vector<32x8xf32>
    %38 = math.exp %37 : vector<32x8xf32>
    %cst_31 = arith.constant 1.000000e+00 : f32
    %39 = vector.broadcast %cst_31 : f32 to vector<32x8xf32>
    %40 = arith.addf %39, %38 : vector<32x8xf32>
    %41 = arith.divf %39, %40 : vector<32x8xf32>
    %42 = arith.mulf %36, %41 : vector<32x8xf32>
    %c0_32 = arith.constant 0 : index
    %c0_33 = arith.constant 0 : index
    %c2 = arith.constant 2 : index
    %c0_34 = arith.constant 0 : index
    %c0_35 = arith.constant 0 : index
    %43 = vector.load %arg2[%c0_32, %c0_33, %c2, %c0_34, %c0_35] : memref<1x2x14x8x24xf32, #tpu.memory_space<vmem>>, vector<1x1x1x8x24xf32>
    %44 = vector.shape_cast %43 : vector<1x1x1x8x24xf32> to vector<8x24xf32>
    %cst_36 = arith.constant dense<0.000000e+00> : vector<32x24xf32>
    %45 = tpu.matmul %42, %44, %cst_36 {dimension_numbers = #tpu.dot_dimension_numbers<[1], [0], [0], [1], [0, 0, 1, 1], [], []>} : vector<32x8xf32>, vector<8x24xf32>, vector<32x24xf32> -> vector<32x24xf32>
    %46 = vector.extract_strided_slice %45 {offsets = [0, 0], sizes = [32, 8], strides = [1, 1]} : vector<32x24xf32> to vector<32x8xf32>
    %47 = vector.extract_strided_slice %45 {offsets = [0, 8], sizes = [32, 8], strides = [1, 1]} : vector<32x24xf32> to vector<32x8xf32>
    %48 = vector.extract_strided_slice %45 {offsets = [0, 16], sizes = [32, 8], strides = [1, 1]} : vector<32x24xf32> to vector<32x8xf32>
    %49 = tpu.concatenate %46, %47, %48 in 0 : vector<32x8xf32>, vector<32x8xf32>, vector<32x8xf32> -> vector<96x8xf32>
    %c1_37 = arith.constant 1 : index
    %c0_38 = arith.constant 0 : index
    %c0_39 = arith.constant 0 : index
    %50 = vector.load %arg6[%c1_37, %c0_38, %c0_39] : memref<12x32x96xf32, #tpu.memory_space<vmem>>, vector<1x16x96xf32>
    %51 = vector.shape_cast %50 : vector<1x16x96xf32> to vector<16x96xf32>
    %cst_40 = arith.constant dense<0.000000e+00> : vector<16x8xf32>
    %52 = tpu.matmul %51, %49, %cst_40 {dimension_numbers = #tpu.dot_dimension_numbers<[1], [0], [0], [1], [0, 0, 1, 1], [], []>} : vector<16x96xf32>, vector<96x8xf32>, vector<16x8xf32> -> vector<16x8xf32>
    %c0_41 = arith.constant 0 : index
    %c0_42 = arith.constant 0 : index
    %c2_43 = arith.constant 2 : index
    %c0_44 = arith.constant 0 : index
    %53 = vector.load %arg3[%c0_41, %c0_42, %c2_43, %c0_44] : memref<1x2x14x8xf32, #tpu.memory_space<vmem>>, vector<1x1x1x8xf32>
    %54 = vector.shape_cast %53 : vector<1x1x1x8xf32> to vector<1x8xf32>
    %55 = vector.broadcast %54 : vector<1x8xf32> to vector<16x8xf32>
    %56 = arith.addf %52, %55 : vector<16x8xf32>
    %57 = arith.negf %56 : vector<16x8xf32>
    %58 = math.exp %57 : vector<16x8xf32>
    %cst_45 = arith.constant 1.000000e+00 : f32
    %59 = vector.broadcast %cst_45 : f32 to vector<16x8xf32>
    %60 = arith.addf %59, %58 : vector<16x8xf32>
    %61 = arith.divf %59, %60 : vector<16x8xf32>
    %62 = arith.mulf %56, %61 : vector<16x8xf32>
    %c0_46 = arith.constant 0 : index
    %c0_47 = arith.constant 0 : index
    %c3 = arith.constant 3 : index
    %c0_48 = arith.constant 0 : index
    %c0_49 = arith.constant 0 : index
    %63 = vector.load %arg2[%c0_46, %c0_47, %c3, %c0_48, %c0_49] : memref<1x2x14x8x24xf32, #tpu.memory_space<vmem>>, vector<1x1x1x8x24xf32>
    %64 = vector.shape_cast %63 : vector<1x1x1x8x24xf32> to vector<8x24xf32>
    %cst_50 = arith.constant dense<0.000000e+00> : vector<16x24xf32>
    %65 = tpu.matmul %62, %64, %cst_50 {dimension_numbers = #tpu.dot_dimension_numbers<[1], [0], [0], [1], [0, 0, 1, 1], [], []>} : vector<16x8xf32>, vector<8x24xf32>, vector<16x24xf32> -> vector<16x24xf32>
    %66 = vector.extract_strided_slice %65 {offsets = [0, 0], sizes = [16, 8], strides = [1, 1]} : vector<16x24xf32> to vector<16x8xf32>
    %67 = vector.extract_strided_slice %65 {offsets = [0, 8], sizes = [16, 8], strides = [1, 1]} : vector<16x24xf32> to vector<16x8xf32>
    %68 = vector.extract_strided_slice %65 {offsets = [0, 16], sizes = [16, 8], strides = [1, 1]} : vector<16x24xf32> to vector<16x8xf32>
    %69 = tpu.concatenate %66, %67, %68 in 0 : vector<16x8xf32>, vector<16x8xf32>, vector<16x8xf32> -> vector<48x8xf32>
    %c2_51 = arith.constant 2 : index
    %c0_52 = arith.constant 0 : index
    %c0_53 = arith.constant 0 : index
    %70 = vector.load %arg6[%c2_51, %c0_52, %c0_53] : memref<12x32x96xf32, #tpu.memory_space<vmem>>, vector<1x8x48xf32>
    %71 = vector.shape_cast %70 : vector<1x8x48xf32> to vector<8x48xf32>
    %cst_54 = arith.constant dense<0.000000e+00> : vector<8x8xf32>
    %72 = tpu.matmul %71, %69, %cst_54 {dimension_numbers = #tpu.dot_dimension_numbers<[1], [0], [0], [1], [0, 0, 1, 1], [], []>} : vector<8x48xf32>, vector<48x8xf32>, vector<8x8xf32> -> vector<8x8xf32>
    %c0_55 = arith.constant 0 : index
    %c0_56 = arith.constant 0 : index
    %c3_57 = arith.constant 3 : index
    %c0_58 = arith.constant 0 : index
    %73 = vector.load %arg3[%c0_55, %c0_56, %c3_57, %c0_58] : memref<1x2x14x8xf32, #tpu.memory_space<vmem>>, vector<1x1x1x8xf32>
    %74 = vector.shape_cast %73 : vector<1x1x1x8xf32> to vector<1x8xf32>
    %75 = vector.broadcast %74 : vector<1x8xf32> to vector<8x8xf32>
    %76 = arith.addf %72, %75 : vector<8x8xf32>
    %c0_59 = arith.constant 0 : index
    %c0_60 = arith.constant 0 : index
    %c4 = arith.constant 4 : index
    %c0_61 = arith.constant 0 : index
    %c0_62 = arith.constant 0 : index
    %77 = vector.load %arg2[%c0_59, %c0_60, %c4, %c0_61, %c0_62] : memref<1x2x14x8x24xf32, #tpu.memory_space<vmem>>, vector<1x1x1x8x24xf32>
    %78 = vector.shape_cast %77 : vector<1x1x1x8x24xf32> to vector<8x24xf32>
    %cst_63 = arith.constant dense<0.000000e+00> : vector<8x24xf32>
    %79 = tpu.matmul %76, %78, %cst_63 {dimension_numbers = #tpu.dot_dimension_numbers<[1], [0], [0], [1], [0, 0, 1, 1], [], []>} : vector<8x8xf32>, vector<8x24xf32>, vector<8x24xf32> -> vector<8x24xf32>
    %80 = vector.extract_strided_slice %79 {offsets = [0, 0], sizes = [8, 8], strides = [1, 1]} : vector<8x24xf32> to vector<8x8xf32>
    %81 = vector.extract_strided_slice %79 {offsets = [0, 8], sizes = [8, 8], strides = [1, 1]} : vector<8x24xf32> to vector<8x8xf32>
    %82 = vector.extract_strided_slice %79 {offsets = [0, 16], sizes = [8, 8], strides = [1, 1]} : vector<8x24xf32> to vector<8x8xf32>
    %83 = tpu.concatenate %80, %81, %82 in 0 : vector<8x8xf32>, vector<8x8xf32>, vector<8x8xf32> -> vector<24x8xf32>
    %c3_64 = arith.constant 3 : index
    %c0_65 = arith.constant 0 : index
    %c0_66 = arith.constant 0 : index
    %84 = vector.load %arg6[%c3_64, %c0_65, %c0_66] : memref<12x32x96xf32, #tpu.memory_space<vmem>>, vector<1x8x24xf32>
    %85 = vector.shape_cast %84 : vector<1x8x24xf32> to vector<8x24xf32>
    %cst_67 = arith.constant dense<0.000000e+00> : vector<8x8xf32>
    %86 = tpu.matmul %85, %83, %cst_67 {dimension_numbers = #tpu.dot_dimension_numbers<[1], [0], [0], [1], [0, 0, 1, 1], [], []>} : vector<8x24xf32>, vector<24x8xf32>, vector<8x8xf32> -> vector<8x8xf32>
    %c0_68 = arith.constant 0 : index
    %c0_69 = arith.constant 0 : index
    %c4_70 = arith.constant 4 : index
    %c0_71 = arith.constant 0 : index
    %87 = vector.load %arg3[%c0_68, %c0_69, %c4_70, %c0_71] : memref<1x2x14x8xf32, #tpu.memory_space<vmem>>, vector<1x1x1x8xf32>
    %88 = vector.shape_cast %87 : vector<1x1x1x8xf32> to vector<1x8xf32>
    %89 = vector.broadcast %88 : vector<1x8xf32> to vector<8x8xf32>
    %90 = arith.addf %86, %89 : vector<8x8xf32>
    %c0_72 = arith.constant 0 : index
    %c0_73 = arith.constant 0 : index
    %c0_74 = arith.constant 0 : index
    %c0_75 = arith.constant 0 : index
    %91 = vector.load %arg4[%c0_72, %c0_73, %c0_74, %c0_75] : memref<1x2x8x512xf32, #tpu.memory_space<vmem>>, vector<1x1x8x512xf32>
    %92 = vector.shape_cast %91 : vector<1x1x8x512xf32> to vector<8x512xf32>
    %c0_76 = arith.constant 0 : index
    %c0_77 = arith.constant 0 : index
    %c0_78 = arith.constant 0 : index
    %c0_79 = arith.constant 0 : index
    %93 = vector.load %arg5[%c0_76, %c0_77, %c0_78, %c0_79] : memref<1x2x8x512xf32, #tpu.memory_space<vmem>>, vector<1x1x8x512xf32>
    %94 = vector.shape_cast %93 : vector<1x1x8x512xf32> to vector<8x512xf32>
    %cst_80 = arith.constant 0.000000e+00 : f32
    %95 = vector.broadcast %cst_80 : f32 to vector<8x8xf32>
    %c6 = arith.constant 6 : index
    %c0_81 = arith.constant 0 : index
    %c0_82 = arith.constant 0 : index
    %96 = vector.load %arg6[%c6, %c0_81, %c0_82] : memref<12x32x96xf32, #tpu.memory_space<vmem>>, vector<1x2x8xf32>
    %97 = vector.shape_cast %96 : vector<1x2x8xf32> to vector<2x8xf32>
    %cst_83 = arith.constant dense<0.000000e+00> : vector<2x8xf32>
    %98 = tpu.matmul %97, %90, %cst_83 {dimension_numbers = #tpu.dot_dimension_numbers<[1], [0], [0], [1], [0, 0, 1, 1], [], []>} : vector<2x8xf32>, vector<8x8xf32>, vector<2x8xf32> -> vector<2x8xf32>
    %cst_84 = arith.constant dense<0.000000e+00> : vector<2x512xf32>
    %99 = tpu.matmul %98, %92, %cst_84 {dimension_numbers = #tpu.dot_dimension_numbers<[1], [0], [0], [1], [0, 0, 1, 1], [], []>} : vector<2x8xf32>, vector<8x512xf32>, vector<2x512xf32> -> vector<2x512xf32>
    %100 = tpu.iota {dimensions = array<i32: 1>} : vector<2x512xi32>
    %cst_85 = arith.constant dense<0xFF800000> : vector<2xf32>
    %101 = vector.multi_reduction <maximumf>, %99, %cst_85 [1] : vector<2x512xf32> to vector<2xf32>
    %102 = vector.shape_cast %101 : vector<2xf32> to vector<2x1xf32>
    %103 = vector.broadcast %102 : vector<2x1xf32> to vector<2x512xf32>
    %104 = arith.cmpf oge, %99, %103 : vector<2x512xf32>
    %c512_i32 = arith.constant 512 : i32
    %105 = vector.broadcast %c512_i32 : i32 to vector<2x512xi32>
    %106 = arith.select %104, %100, %105 : vector<2x512xi1>, vector<2x512xi32>
    %cst_86 = arith.constant dense<2147483647> : vector<2xi32>
    %107 = vector.multi_reduction <minsi>, %106, %cst_86 [1] : vector<2x512xi32> to vector<2xi32>
    %108 = vector.shape_cast %107 : vector<2xi32> to vector<2x1xi32>
    %109 = vector.broadcast %108 : vector<2x1xi32> to vector<2x512xi32>
    %110 = arith.cmpi eq, %100, %109 : vector<2x512xi32>
    %111 = arith.extui %110 : vector<2x512xi1> to vector<2x512xi32>
    %112 = arith.sitofp %111 : vector<2x512xi32> to vector<2x512xf32>
    %cst_87 = arith.constant dense<0.000000e+00> : vector<2x8xf32>
    %113 = tpu.matmul %112, %94, %cst_87 {dimension_numbers = #tpu.dot_dimension_numbers<[1], [1], [0], [0], [0, 0, 1, 0], [], []>} : vector<2x512xf32>, vector<8x512xf32>, vector<2x8xf32> -> vector<2x8xf32>
    %c9 = arith.constant 9 : index
    %c0_88 = arith.constant 0 : index
    %c0_89 = arith.constant 0 : index
    %114 = vector.load %arg6[%c9, %c0_88, %c0_89] : memref<12x32x96xf32, #tpu.memory_space<vmem>>, vector<1x8x2xf32>
    %115 = vector.shape_cast %114 : vector<1x8x2xf32> to vector<8x2xf32>
    %cst_90 = arith.constant dense<0.000000e+00> : vector<8x8xf32>
    %116 = tpu.matmul %115, %113, %cst_90 {dimension_numbers = #tpu.dot_dimension_numbers<[1], [0], [0], [1], [0, 0, 1, 1], [], []>} : vector<8x2xf32>, vector<2x8xf32>, vector<8x8xf32> -> vector<8x8xf32>
    %c0_91 = arith.constant 0 : index
    %c0_92 = arith.constant 0 : index
    %c5 = arith.constant 5 : index
    %c0_93 = arith.constant 0 : index
    %c0_94 = arith.constant 0 : index
    %117 = vector.load %arg2[%c0_91, %c0_92, %c5, %c0_93, %c0_94] : memref<1x2x14x8x24xf32, #tpu.memory_space<vmem>>, vector<1x1x1x8x24xf32>
    %118 = vector.shape_cast %117 : vector<1x1x1x8x24xf32> to vector<8x24xf32>
    %cst_95 = arith.constant dense<0.000000e+00> : vector<8x24xf32>
    %119 = tpu.matmul %116, %118, %cst_95 {dimension_numbers = #tpu.dot_dimension_numbers<[1], [0], [0], [1], [0, 0, 1, 1], [], []>} : vector<8x8xf32>, vector<8x24xf32>, vector<8x24xf32> -> vector<8x24xf32>
    %120 = vector.extract_strided_slice %119 {offsets = [0, 0], sizes = [8, 8], strides = [1, 1]} : vector<8x24xf32> to vector<8x8xf32>
    %121 = vector.extract_strided_slice %119 {offsets = [0, 8], sizes = [8, 8], strides = [1, 1]} : vector<8x24xf32> to vector<8x8xf32>
    %122 = vector.extract_strided_slice %119 {offsets = [0, 16], sizes = [8, 8], strides = [1, 1]} : vector<8x24xf32> to vector<8x8xf32>
    %123 = tpu.concatenate %120, %121, %122 in 0 : vector<8x8xf32>, vector<8x8xf32>, vector<8x8xf32> -> vector<24x8xf32>
    %c3_96 = arith.constant 3 : index
    %c0_97 = arith.constant 0 : index
    %c0_98 = arith.constant 0 : index
    %124 = vector.load %arg6[%c3_96, %c0_97, %c0_98] : memref<12x32x96xf32, #tpu.memory_space<vmem>>, vector<1x8x24xf32>
    %125 = vector.shape_cast %124 : vector<1x8x24xf32> to vector<8x24xf32>
    %cst_99 = arith.constant dense<0.000000e+00> : vector<8x8xf32>
    %126 = tpu.matmul %125, %123, %cst_99 {dimension_numbers = #tpu.dot_dimension_numbers<[1], [0], [0], [1], [0, 0, 1, 1], [], []>} : vector<8x24xf32>, vector<24x8xf32>, vector<8x8xf32> -> vector<8x8xf32>
    %c0_100 = arith.constant 0 : index
    %c0_101 = arith.constant 0 : index
    %c5_102 = arith.constant 5 : index
    %c0_103 = arith.constant 0 : index
    %127 = vector.load %arg3[%c0_100, %c0_101, %c5_102, %c0_103] : memref<1x2x14x8xf32, #tpu.memory_space<vmem>>, vector<1x1x1x8xf32>
    %128 = vector.shape_cast %127 : vector<1x1x1x8xf32> to vector<1x8xf32>
    %129 = vector.broadcast %128 : vector<1x8xf32> to vector<8x8xf32>
    %130 = arith.addf %126, %129 : vector<8x8xf32>
    %cst_104 = arith.constant 5.000000e-01 : f32
    %131 = vector.broadcast %cst_104 : f32 to vector<8x8xf32>
    %132 = arith.mulf %116, %131 : vector<8x8xf32>
    %cst_105 = arith.constant 5.000000e-01 : f32
    %133 = vector.broadcast %cst_105 : f32 to vector<8x8xf32>
    %134 = arith.mulf %130, %133 : vector<8x8xf32>
    %135 = arith.addf %132, %134 : vector<8x8xf32>
    %136 = arith.addf %95, %135 : vector<8x8xf32>
    %137 = arith.subf %90, %135 : vector<8x8xf32>
    %138 = arith.subf %136, %90 : vector<8x8xf32>
    %139 = arith.mulf %138, %138 : vector<8x8xf32>
    %cst_106 = arith.constant dense<0.000000e+00> : vector<8xf32>
    %140 = vector.multi_reduction <add>, %139, %cst_106 [0] : vector<8x8xf32> to vector<8xf32>
    %141 = vector.shape_cast %140 : vector<8xf32> to vector<1x8xf32>
    %142 = arith.addf %0, %141 : vector<1x8xf32>
    %c7 = arith.constant 7 : index
    %c0_107 = arith.constant 0 : index
    %c0_108 = arith.constant 0 : index
    %143 = vector.load %arg6[%c7, %c0_107, %c0_108] : memref<12x32x96xf32, #tpu.memory_space<vmem>>, vector<1x4x8xf32>
    %144 = vector.shape_cast %143 : vector<1x4x8xf32> to vector<4x8xf32>
    %cst_109 = arith.constant dense<0.000000e+00> : vector<4x8xf32>
    %145 = tpu.matmul %144, %137, %cst_109 {dimension_numbers = #tpu.dot_dimension_numbers<[1], [0], [0], [1], [0, 0, 1, 1], [], []>} : vector<4x8xf32>, vector<8x8xf32>, vector<4x8xf32> -> vector<4x8xf32>
    %cst_110 = arith.constant dense<0.000000e+00> : vector<4x512xf32>
    %146 = tpu.matmul %145, %92, %cst_110 {dimension_numbers = #tpu.dot_dimension_numbers<[1], [0], [0], [1], [0, 0, 1, 1], [], []>} : vector<4x8xf32>, vector<8x512xf32>, vector<4x512xf32> -> vector<4x512xf32>
    %147 = tpu.iota {dimensions = array<i32: 1>} : vector<4x512xi32>
    %cst_111 = arith.constant dense<0xFF800000> : vector<4xf32>
    %148 = vector.multi_reduction <maximumf>, %146, %cst_111 [1] : vector<4x512xf32> to vector<4xf32>
    %149 = vector.shape_cast %148 : vector<4xf32> to vector<4x1xf32>
    %150 = vector.broadcast %149 : vector<4x1xf32> to vector<4x512xf32>
    %151 = arith.cmpf oge, %146, %150 : vector<4x512xf32>
    %c512_i32_112 = arith.constant 512 : i32
    %152 = vector.broadcast %c512_i32_112 : i32 to vector<4x512xi32>
    %153 = arith.select %151, %147, %152 : vector<4x512xi1>, vector<4x512xi32>
    %cst_113 = arith.constant dense<2147483647> : vector<4xi32>
    %154 = vector.multi_reduction <minsi>, %153, %cst_113 [1] : vector<4x512xi32> to vector<4xi32>
    %155 = vector.shape_cast %154 : vector<4xi32> to vector<4x1xi32>
    %156 = vector.broadcast %155 : vector<4x1xi32> to vector<4x512xi32>
    %157 = arith.cmpi eq, %147, %156 : vector<4x512xi32>
    %158 = arith.extui %157 : vector<4x512xi1> to vector<4x512xi32>
    %159 = arith.sitofp %158 : vector<4x512xi32> to vector<4x512xf32>
    %cst_114 = arith.constant dense<0.000000e+00> : vector<4x8xf32>
    %160 = tpu.matmul %159, %94, %cst_114 {dimension_numbers = #tpu.dot_dimension_numbers<[1], [1], [0], [0], [0, 0, 1, 0], [], []>} : vector<4x512xf32>, vector<8x512xf32>, vector<4x8xf32> -> vector<4x8xf32>
    %c10 = arith.constant 10 : index
    %c0_115 = arith.constant 0 : index
    %c0_116 = arith.constant 0 : index
    %161 = vector.load %arg6[%c10, %c0_115, %c0_116] : memref<12x32x96xf32, #tpu.memory_space<vmem>>, vector<1x8x4xf32>
    %162 = vector.shape_cast %161 : vector<1x8x4xf32> to vector<8x4xf32>
    %cst_117 = arith.constant dense<0.000000e+00> : vector<8x8xf32>
    %163 = tpu.matmul %162, %160, %cst_117 {dimension_numbers = #tpu.dot_dimension_numbers<[1], [0], [0], [1], [0, 0, 1, 1], [], []>} : vector<8x4xf32>, vector<4x8xf32>, vector<8x8xf32> -> vector<8x8xf32>
    %c0_118 = arith.constant 0 : index
    %c0_119 = arith.constant 0 : index
    %c6_120 = arith.constant 6 : index
    %c0_121 = arith.constant 0 : index
    %c0_122 = arith.constant 0 : index
    %164 = vector.load %arg2[%c0_118, %c0_119, %c6_120, %c0_121, %c0_122] : memref<1x2x14x8x24xf32, #tpu.memory_space<vmem>>, vector<1x1x1x8x24xf32>
    %165 = vector.shape_cast %164 : vector<1x1x1x8x24xf32> to vector<8x24xf32>
    %cst_123 = arith.constant dense<0.000000e+00> : vector<8x24xf32>
    %166 = tpu.matmul %163, %165, %cst_123 {dimension_numbers = #tpu.dot_dimension_numbers<[1], [0], [0], [1], [0, 0, 1, 1], [], []>} : vector<8x8xf32>, vector<8x24xf32>, vector<8x24xf32> -> vector<8x24xf32>
    %167 = vector.extract_strided_slice %166 {offsets = [0, 0], sizes = [8, 8], strides = [1, 1]} : vector<8x24xf32> to vector<8x8xf32>
    %168 = vector.extract_strided_slice %166 {offsets = [0, 8], sizes = [8, 8], strides = [1, 1]} : vector<8x24xf32> to vector<8x8xf32>
    %169 = vector.extract_strided_slice %166 {offsets = [0, 16], sizes = [8, 8], strides = [1, 1]} : vector<8x24xf32> to vector<8x8xf32>
    %170 = tpu.concatenate %167, %168, %169 in 0 : vector<8x8xf32>, vector<8x8xf32>, vector<8x8xf32> -> vector<24x8xf32>
    %c3_124 = arith.constant 3 : index
    %c0_125 = arith.constant 0 : index
    %c0_126 = arith.constant 0 : index
    %171 = vector.load %arg6[%c3_124, %c0_125, %c0_126] : memref<12x32x96xf32, #tpu.memory_space<vmem>>, vector<1x8x24xf32>
    %172 = vector.shape_cast %171 : vector<1x8x24xf32> to vector<8x24xf32>
    %cst_127 = arith.constant dense<0.000000e+00> : vector<8x8xf32>
    %173 = tpu.matmul %172, %170, %cst_127 {dimension_numbers = #tpu.dot_dimension_numbers<[1], [0], [0], [1], [0, 0, 1, 1], [], []>} : vector<8x24xf32>, vector<24x8xf32>, vector<8x8xf32> -> vector<8x8xf32>
    %c0_128 = arith.constant 0 : index
    %c0_129 = arith.constant 0 : index
    %c6_130 = arith.constant 6 : index
    %c0_131 = arith.constant 0 : index
    %174 = vector.load %arg3[%c0_128, %c0_129, %c6_130, %c0_131] : memref<1x2x14x8xf32, #tpu.memory_space<vmem>>, vector<1x1x1x8xf32>
    %175 = vector.shape_cast %174 : vector<1x1x1x8xf32> to vector<1x8xf32>
    %176 = vector.broadcast %175 : vector<1x8xf32> to vector<8x8xf32>
    %177 = arith.addf %173, %176 : vector<8x8xf32>
    %cst_132 = arith.constant 5.000000e-01 : f32
    %178 = vector.broadcast %cst_132 : f32 to vector<8x8xf32>
    %179 = arith.mulf %163, %178 : vector<8x8xf32>
    %cst_133 = arith.constant 5.000000e-01 : f32
    %180 = vector.broadcast %cst_133 : f32 to vector<8x8xf32>
    %181 = arith.mulf %177, %180 : vector<8x8xf32>
    %182 = arith.addf %179, %181 : vector<8x8xf32>
    %183 = arith.addf %136, %182 : vector<8x8xf32>
    %184 = arith.subf %137, %182 : vector<8x8xf32>
    %185 = arith.subf %183, %90 : vector<8x8xf32>
    %186 = arith.mulf %185, %185 : vector<8x8xf32>
    %cst_134 = arith.constant dense<0.000000e+00> : vector<8xf32>
    %187 = vector.multi_reduction <add>, %186, %cst_134 [0] : vector<8x8xf32> to vector<8xf32>
    %188 = vector.shape_cast %187 : vector<8xf32> to vector<1x8xf32>
    %189 = arith.addf %142, %188 : vector<1x8xf32>
    %c8 = arith.constant 8 : index
    %c0_135 = arith.constant 0 : index
    %c0_136 = arith.constant 0 : index
    %190 = vector.load %arg6[%c8, %c0_135, %c0_136] : memref<12x32x96xf32, #tpu.memory_space<vmem>>, vector<1x6x8xf32>
    %191 = vector.shape_cast %190 : vector<1x6x8xf32> to vector<6x8xf32>
    %cst_137 = arith.constant dense<0.000000e+00> : vector<6x8xf32>
    %192 = tpu.matmul %191, %184, %cst_137 {dimension_numbers = #tpu.dot_dimension_numbers<[1], [0], [0], [1], [0, 0, 1, 1], [], []>} : vector<6x8xf32>, vector<8x8xf32>, vector<6x8xf32> -> vector<6x8xf32>
    %cst_138 = arith.constant dense<0.000000e+00> : vector<6x512xf32>
    %193 = tpu.matmul %192, %92, %cst_138 {dimension_numbers = #tpu.dot_dimension_numbers<[1], [0], [0], [1], [0, 0, 1, 1], [], []>} : vector<6x8xf32>, vector<8x512xf32>, vector<6x512xf32> -> vector<6x512xf32>
    %194 = tpu.iota {dimensions = array<i32: 1>} : vector<6x512xi32>
    %cst_139 = arith.constant dense<0xFF800000> : vector<6xf32>
    %195 = vector.multi_reduction <maximumf>, %193, %cst_139 [1] : vector<6x512xf32> to vector<6xf32>
    %196 = vector.shape_cast %195 : vector<6xf32> to vector<6x1xf32>
    %197 = vector.broadcast %196 : vector<6x1xf32> to vector<6x512xf32>
    %198 = arith.cmpf oge, %193, %197 : vector<6x512xf32>
    %c512_i32_140 = arith.constant 512 : i32
    %199 = vector.broadcast %c512_i32_140 : i32 to vector<6x512xi32>
    %200 = arith.select %198, %194, %199 : vector<6x512xi1>, vector<6x512xi32>
    %cst_141 = arith.constant dense<2147483647> : vector<6xi32>
    %201 = vector.multi_reduction <minsi>, %200, %cst_141 [1] : vector<6x512xi32> to vector<6xi32>
    %202 = vector.shape_cast %201 : vector<6xi32> to vector<6x1xi32>
    %203 = vector.broadcast %202 : vector<6x1xi32> to vector<6x512xi32>
    %204 = arith.cmpi eq, %194, %203 : vector<6x512xi32>
    %205 = arith.extui %204 : vector<6x512xi1> to vector<6x512xi32>
    %206 = arith.sitofp %205 : vector<6x512xi32> to vector<6x512xf32>
    %cst_142 = arith.constant dense<0.000000e+00> : vector<6x8xf32>
    %207 = tpu.matmul %206, %94, %cst_142 {dimension_numbers = #tpu.dot_dimension_numbers<[1], [1], [0], [0], [0, 0, 1, 0], [], []>} : vector<6x512xf32>, vector<8x512xf32>, vector<6x8xf32> -> vector<6x8xf32>
    %c11 = arith.constant 11 : index
    %c0_143 = arith.constant 0 : index
    %c0_144 = arith.constant 0 : index
    %208 = vector.load %arg6[%c11, %c0_143, %c0_144] : memref<12x32x96xf32, #tpu.memory_space<vmem>>, vector<1x8x6xf32>
    %209 = vector.shape_cast %208 : vector<1x8x6xf32> to vector<8x6xf32>
    %cst_145 = arith.constant dense<0.000000e+00> : vector<8x8xf32>
    %210 = tpu.matmul %209, %207, %cst_145 {dimension_numbers = #tpu.dot_dimension_numbers<[1], [0], [0], [1], [0, 0, 1, 1], [], []>} : vector<8x6xf32>, vector<6x8xf32>, vector<8x8xf32> -> vector<8x8xf32>
    %c0_146 = arith.constant 0 : index
    %c0_147 = arith.constant 0 : index
    %c7_148 = arith.constant 7 : index
    %c0_149 = arith.constant 0 : index
    %c0_150 = arith.constant 0 : index
    %211 = vector.load %arg2[%c0_146, %c0_147, %c7_148, %c0_149, %c0_150] : memref<1x2x14x8x24xf32, #tpu.memory_space<vmem>>, vector<1x1x1x8x24xf32>
    %212 = vector.shape_cast %211 : vector<1x1x1x8x24xf32> to vector<8x24xf32>
    %cst_151 = arith.constant dense<0.000000e+00> : vector<8x24xf32>
    %213 = tpu.matmul %210, %212, %cst_151 {dimension_numbers = #tpu.dot_dimension_numbers<[1], [0], [0], [1], [0, 0, 1, 1], [], []>} : vector<8x8xf32>, vector<8x24xf32>, vector<8x24xf32> -> vector<8x24xf32>
    %214 = vector.extract_strided_slice %213 {offsets = [0, 0], sizes = [8, 8], strides = [1, 1]} : vector<8x24xf32> to vector<8x8xf32>
    %215 = vector.extract_strided_slice %213 {offsets = [0, 8], sizes = [8, 8], strides = [1, 1]} : vector<8x24xf32> to vector<8x8xf32>
    %216 = vector.extract_strided_slice %213 {offsets = [0, 16], sizes = [8, 8], strides = [1, 1]} : vector<8x24xf32> to vector<8x8xf32>
    %217 = tpu.concatenate %214, %215, %216 in 0 : vector<8x8xf32>, vector<8x8xf32>, vector<8x8xf32> -> vector<24x8xf32>
    %c3_152 = arith.constant 3 : index
    %c0_153 = arith.constant 0 : index
    %c0_154 = arith.constant 0 : index
    %218 = vector.load %arg6[%c3_152, %c0_153, %c0_154] : memref<12x32x96xf32, #tpu.memory_space<vmem>>, vector<1x8x24xf32>
    %219 = vector.shape_cast %218 : vector<1x8x24xf32> to vector<8x24xf32>
    %cst_155 = arith.constant dense<0.000000e+00> : vector<8x8xf32>
    %220 = tpu.matmul %219, %217, %cst_155 {dimension_numbers = #tpu.dot_dimension_numbers<[1], [0], [0], [1], [0, 0, 1, 1], [], []>} : vector<8x24xf32>, vector<24x8xf32>, vector<8x8xf32> -> vector<8x8xf32>
    %c0_156 = arith.constant 0 : index
    %c0_157 = arith.constant 0 : index
    %c7_158 = arith.constant 7 : index
    %c0_159 = arith.constant 0 : index
    %221 = vector.load %arg3[%c0_156, %c0_157, %c7_158, %c0_159] : memref<1x2x14x8xf32, #tpu.memory_space<vmem>>, vector<1x1x1x8xf32>
    %222 = vector.shape_cast %221 : vector<1x1x1x8xf32> to vector<1x8xf32>
    %223 = vector.broadcast %222 : vector<1x8xf32> to vector<8x8xf32>
    %224 = arith.addf %220, %223 : vector<8x8xf32>
    %cst_160 = arith.constant 5.000000e-01 : f32
    %225 = vector.broadcast %cst_160 : f32 to vector<8x8xf32>
    %226 = arith.mulf %210, %225 : vector<8x8xf32>
    %cst_161 = arith.constant 5.000000e-01 : f32
    %227 = vector.broadcast %cst_161 : f32 to vector<8x8xf32>
    %228 = arith.mulf %224, %227 : vector<8x8xf32>
    %229 = arith.addf %226, %228 : vector<8x8xf32>
    %230 = arith.addf %183, %229 : vector<8x8xf32>
    %231 = arith.subf %184, %229 : vector<8x8xf32>
    %232 = arith.subf %230, %90 : vector<8x8xf32>
    %233 = arith.mulf %232, %232 : vector<8x8xf32>
    %cst_162 = arith.constant dense<0.000000e+00> : vector<8xf32>
    %234 = vector.multi_reduction <add>, %233, %cst_162 [0] : vector<8x8xf32> to vector<8xf32>
    %235 = vector.shape_cast %234 : vector<8xf32> to vector<1x8xf32>
    %236 = arith.addf %189, %235 : vector<1x8xf32>
    %cst_163 = arith.constant dense<0.000000e+00> : vector<8x512xf32>
    %237 = tpu.matmul %231, %92, %cst_163 {dimension_numbers = #tpu.dot_dimension_numbers<[1], [0], [0], [1], [0, 0, 1, 1], [], []>} : vector<8x8xf32>, vector<8x512xf32>, vector<8x512xf32> -> vector<8x512xf32>
    %238 = tpu.iota {dimensions = array<i32: 1>} : vector<8x512xi32>
    %cst_164 = arith.constant dense<0xFF800000> : vector<8xf32>
    %239 = vector.multi_reduction <maximumf>, %237, %cst_164 [1] : vector<8x512xf32> to vector<8xf32>
    %240 = vector.shape_cast %239 : vector<8xf32> to vector<8x1xf32>
    %241 = vector.broadcast %240 : vector<8x1xf32> to vector<8x512xf32>
    %242 = arith.cmpf oge, %237, %241 : vector<8x512xf32>
    %c512_i32_165 = arith.constant 512 : i32
    %243 = vector.broadcast %c512_i32_165 : i32 to vector<8x512xi32>
    %244 = arith.select %242, %238, %243 : vector<8x512xi1>, vector<8x512xi32>
    %cst_166 = arith.constant dense<2147483647> : vector<8xi32>
    %245 = vector.multi_reduction <minsi>, %244, %cst_166 [1] : vector<8x512xi32> to vector<8xi32>
    %246 = vector.shape_cast %245 : vector<8xi32> to vector<8x1xi32>
    %247 = vector.broadcast %246 : vector<8x1xi32> to vector<8x512xi32>
    %248 = arith.cmpi eq, %238, %247 : vector<8x512xi32>
    %249 = arith.extui %248 : vector<8x512xi1> to vector<8x512xi32>
    %250 = arith.sitofp %249 : vector<8x512xi32> to vector<8x512xf32>
    %cst_167 = arith.constant dense<0.000000e+00> : vector<8x8xf32>
    %251 = tpu.matmul %250, %94, %cst_167 {dimension_numbers = #tpu.dot_dimension_numbers<[1], [1], [0], [0], [0, 0, 1, 0], [], []>} : vector<8x512xf32>, vector<8x512xf32>, vector<8x8xf32> -> vector<8x8xf32>
    %c0_168 = arith.constant 0 : index
    %c0_169 = arith.constant 0 : index
    %c8_170 = arith.constant 8 : index
    %c0_171 = arith.constant 0 : index
    %c0_172 = arith.constant 0 : index
    %252 = vector.load %arg2[%c0_168, %c0_169, %c8_170, %c0_171, %c0_172] : memref<1x2x14x8x24xf32, #tpu.memory_space<vmem>>, vector<1x1x1x8x24xf32>
    %253 = vector.shape_cast %252 : vector<1x1x1x8x24xf32> to vector<8x24xf32>
    %cst_173 = arith.constant dense<0.000000e+00> : vector<8x24xf32>
    %254 = tpu.matmul %251, %253, %cst_173 {dimension_numbers = #tpu.dot_dimension_numbers<[1], [0], [0], [1], [0, 0, 1, 1], [], []>} : vector<8x8xf32>, vector<8x24xf32>, vector<8x24xf32> -> vector<8x24xf32>
    %255 = vector.extract_strided_slice %254 {offsets = [0, 0], sizes = [8, 8], strides = [1, 1]} : vector<8x24xf32> to vector<8x8xf32>
    %256 = vector.extract_strided_slice %254 {offsets = [0, 8], sizes = [8, 8], strides = [1, 1]} : vector<8x24xf32> to vector<8x8xf32>
    %257 = vector.extract_strided_slice %254 {offsets = [0, 16], sizes = [8, 8], strides = [1, 1]} : vector<8x24xf32> to vector<8x8xf32>
    %258 = tpu.concatenate %255, %256, %257 in 0 : vector<8x8xf32>, vector<8x8xf32>, vector<8x8xf32> -> vector<24x8xf32>
    %c3_174 = arith.constant 3 : index
    %c0_175 = arith.constant 0 : index
    %c0_176 = arith.constant 0 : index
    %259 = vector.load %arg6[%c3_174, %c0_175, %c0_176] : memref<12x32x96xf32, #tpu.memory_space<vmem>>, vector<1x8x24xf32>
    %260 = vector.shape_cast %259 : vector<1x8x24xf32> to vector<8x24xf32>
    %cst_177 = arith.constant dense<0.000000e+00> : vector<8x8xf32>
    %261 = tpu.matmul %260, %258, %cst_177 {dimension_numbers = #tpu.dot_dimension_numbers<[1], [0], [0], [1], [0, 0, 1, 1], [], []>} : vector<8x24xf32>, vector<24x8xf32>, vector<8x8xf32> -> vector<8x8xf32>
    %c0_178 = arith.constant 0 : index
    %c0_179 = arith.constant 0 : index
    %c8_180 = arith.constant 8 : index
    %c0_181 = arith.constant 0 : index
    %262 = vector.load %arg3[%c0_178, %c0_179, %c8_180, %c0_181] : memref<1x2x14x8xf32, #tpu.memory_space<vmem>>, vector<1x1x1x8xf32>
    %263 = vector.shape_cast %262 : vector<1x1x1x8xf32> to vector<1x8xf32>
    %264 = vector.broadcast %263 : vector<1x8xf32> to vector<8x8xf32>
    %265 = arith.addf %261, %264 : vector<8x8xf32>
    %cst_182 = arith.constant 5.000000e-01 : f32
    %266 = vector.broadcast %cst_182 : f32 to vector<8x8xf32>
    %267 = arith.mulf %251, %266 : vector<8x8xf32>
    %cst_183 = arith.constant 5.000000e-01 : f32
    %268 = vector.broadcast %cst_183 : f32 to vector<8x8xf32>
    %269 = arith.mulf %265, %268 : vector<8x8xf32>
    %270 = arith.addf %267, %269 : vector<8x8xf32>
    %271 = arith.addf %230, %270 : vector<8x8xf32>
    %272 = arith.subf %271, %90 : vector<8x8xf32>
    %273 = arith.mulf %272, %272 : vector<8x8xf32>
    %cst_184 = arith.constant dense<0.000000e+00> : vector<8xf32>
    %274 = vector.multi_reduction <add>, %273, %cst_184 [0] : vector<8x8xf32> to vector<8xf32>
    %275 = vector.shape_cast %274 : vector<8xf32> to vector<1x8xf32>
    %276 = arith.addf %236, %275 : vector<1x8xf32>
    %c0_185 = arith.constant 0 : index
    %c0_186 = arith.constant 0 : index
    %c9_187 = arith.constant 9 : index
    %c0_188 = arith.constant 0 : index
    %c0_189 = arith.constant 0 : index
    %277 = vector.load %arg2[%c0_185, %c0_186, %c9_187, %c0_188, %c0_189] : memref<1x2x14x8x24xf32, #tpu.memory_space<vmem>>, vector<1x1x1x8x24xf32>
    %278 = vector.shape_cast %277 : vector<1x1x1x8x24xf32> to vector<8x24xf32>
    %cst_190 = arith.constant dense<0.000000e+00> : vector<8x24xf32>
    %279 = tpu.matmul %271, %278, %cst_190 {dimension_numbers = #tpu.dot_dimension_numbers<[1], [0], [0], [1], [0, 0, 1, 1], [], []>} : vector<8x8xf32>, vector<8x24xf32>, vector<8x24xf32> -> vector<8x24xf32>
    %280 = vector.extract_strided_slice %279 {offsets = [0, 0], sizes = [8, 8], strides = [1, 1]} : vector<8x24xf32> to vector<8x8xf32>
    %281 = vector.extract_strided_slice %279 {offsets = [0, 8], sizes = [8, 8], strides = [1, 1]} : vector<8x24xf32> to vector<8x8xf32>
    %282 = vector.extract_strided_slice %279 {offsets = [0, 16], sizes = [8, 8], strides = [1, 1]} : vector<8x24xf32> to vector<8x8xf32>
    %283 = tpu.concatenate %280, %281, %282 in 0 : vector<8x8xf32>, vector<8x8xf32>, vector<8x8xf32> -> vector<24x8xf32>
    %c3_191 = arith.constant 3 : index
    %c0_192 = arith.constant 0 : index
    %c0_193 = arith.constant 0 : index
    %284 = vector.load %arg6[%c3_191, %c0_192, %c0_193] : memref<12x32x96xf32, #tpu.memory_space<vmem>>, vector<1x8x24xf32>
    %285 = vector.shape_cast %284 : vector<1x8x24xf32> to vector<8x24xf32>
    %cst_194 = arith.constant dense<0.000000e+00> : vector<8x8xf32>
    %286 = tpu.matmul %285, %283, %cst_194 {dimension_numbers = #tpu.dot_dimension_numbers<[1], [0], [0], [1], [0, 0, 1, 1], [], []>} : vector<8x24xf32>, vector<24x8xf32>, vector<8x8xf32> -> vector<8x8xf32>
    %c0_195 = arith.constant 0 : index
    %c0_196 = arith.constant 0 : index
    %c9_197 = arith.constant 9 : index
    %c0_198 = arith.constant 0 : index
    %287 = vector.load %arg3[%c0_195, %c0_196, %c9_197, %c0_198] : memref<1x2x14x8xf32, #tpu.memory_space<vmem>>, vector<1x1x1x8xf32>
    %288 = vector.shape_cast %287 : vector<1x1x1x8xf32> to vector<1x8xf32>
    %289 = vector.broadcast %288 : vector<1x8xf32> to vector<8x8xf32>
    %290 = arith.addf %286, %289 : vector<8x8xf32>
    %c0_199 = arith.constant 0 : index
    %c0_200 = arith.constant 0 : index
    %c10_201 = arith.constant 10 : index
    %c0_202 = arith.constant 0 : index
    %c0_203 = arith.constant 0 : index
    %291 = vector.load %arg2[%c0_199, %c0_200, %c10_201, %c0_202, %c0_203] : memref<1x2x14x8x24xf32, #tpu.memory_space<vmem>>, vector<1x1x1x8x24xf32>
    %292 = vector.shape_cast %291 : vector<1x1x1x8x24xf32> to vector<8x24xf32>
    %cst_204 = arith.constant dense<0.000000e+00> : vector<8x24xf32>
    %293 = tpu.matmul %290, %292, %cst_204 {dimension_numbers = #tpu.dot_dimension_numbers<[1], [0], [0], [1], [0, 0, 1, 1], [], []>} : vector<8x8xf32>, vector<8x24xf32>, vector<8x24xf32> -> vector<8x24xf32>
    %294 = vector.extract_strided_slice %293 {offsets = [0, 0], sizes = [8, 8], strides = [1, 1]} : vector<8x24xf32> to vector<8x8xf32>
    %295 = vector.extract_strided_slice %293 {offsets = [0, 8], sizes = [8, 8], strides = [1, 1]} : vector<8x24xf32> to vector<8x8xf32>
    %296 = vector.extract_strided_slice %293 {offsets = [0, 16], sizes = [8, 8], strides = [1, 1]} : vector<8x24xf32> to vector<8x8xf32>
    %297 = tpu.concatenate %294, %295, %296 in 0 : vector<8x8xf32>, vector<8x8xf32>, vector<8x8xf32> -> vector<24x8xf32>
    %c3_205 = arith.constant 3 : index
    %c0_206 = arith.constant 0 : index
    %c0_207 = arith.constant 0 : index
    %298 = vector.load %arg6[%c3_205, %c0_206, %c0_207] : memref<12x32x96xf32, #tpu.memory_space<vmem>>, vector<1x8x24xf32>
    %299 = vector.shape_cast %298 : vector<1x8x24xf32> to vector<8x24xf32>
    %cst_208 = arith.constant dense<0.000000e+00> : vector<8x8xf32>
    %300 = tpu.matmul %299, %297, %cst_208 {dimension_numbers = #tpu.dot_dimension_numbers<[1], [0], [0], [1], [0, 0, 1, 1], [], []>} : vector<8x24xf32>, vector<24x8xf32>, vector<8x8xf32> -> vector<8x8xf32>
    %c0_209 = arith.constant 0 : index
    %c0_210 = arith.constant 0 : index
    %c10_211 = arith.constant 10 : index
    %c0_212 = arith.constant 0 : index
    %301 = vector.load %arg3[%c0_209, %c0_210, %c10_211, %c0_212] : memref<1x2x14x8xf32, #tpu.memory_space<vmem>>, vector<1x1x1x8xf32>
    %302 = vector.shape_cast %301 : vector<1x1x1x8xf32> to vector<1x8xf32>
    %303 = vector.broadcast %302 : vector<1x8xf32> to vector<8x8xf32>
    %304 = arith.addf %300, %303 : vector<8x8xf32>
    %305 = arith.negf %304 : vector<8x8xf32>
    %306 = math.exp %305 : vector<8x8xf32>
    %cst_213 = arith.constant 1.000000e+00 : f32
    %307 = vector.broadcast %cst_213 : f32 to vector<8x8xf32>
    %308 = arith.addf %307, %306 : vector<8x8xf32>
    %309 = arith.divf %307, %308 : vector<8x8xf32>
    %310 = arith.mulf %304, %309 : vector<8x8xf32>
    %c0_214 = arith.constant 0 : index
    %c0_215 = arith.constant 0 : index
    %c11_216 = arith.constant 11 : index
    %c0_217 = arith.constant 0 : index
    %c0_218 = arith.constant 0 : index
    %311 = vector.load %arg2[%c0_214, %c0_215, %c11_216, %c0_217, %c0_218] : memref<1x2x14x8x24xf32, #tpu.memory_space<vmem>>, vector<1x1x1x8x24xf32>
    %312 = vector.shape_cast %311 : vector<1x1x1x8x24xf32> to vector<8x24xf32>
    %cst_219 = arith.constant dense<0.000000e+00> : vector<8x24xf32>
    %313 = tpu.matmul %310, %312, %cst_219 {dimension_numbers = #tpu.dot_dimension_numbers<[1], [0], [0], [1], [0, 0, 1, 1], [], []>} : vector<8x8xf32>, vector<8x24xf32>, vector<8x24xf32> -> vector<8x24xf32>
    %314 = vector.extract_strided_slice %313 {offsets = [0, 0], sizes = [8, 8], strides = [1, 1]} : vector<8x24xf32> to vector<8x8xf32>
    %315 = vector.extract_strided_slice %313 {offsets = [0, 8], sizes = [8, 8], strides = [1, 1]} : vector<8x24xf32> to vector<8x8xf32>
    %316 = vector.extract_strided_slice %313 {offsets = [0, 16], sizes = [8, 8], strides = [1, 1]} : vector<8x24xf32> to vector<8x8xf32>
    %317 = tpu.concatenate %314, %315, %316 in 0 : vector<8x8xf32>, vector<8x8xf32>, vector<8x8xf32> -> vector<24x8xf32>
    %c4_220 = arith.constant 4 : index
    %c0_221 = arith.constant 0 : index
    %c0_222 = arith.constant 0 : index
    %318 = vector.load %arg6[%c4_220, %c0_221, %c0_222] : memref<12x32x96xf32, #tpu.memory_space<vmem>>, vector<1x16x24xf32>
    %319 = vector.shape_cast %318 : vector<1x16x24xf32> to vector<16x24xf32>
    %cst_223 = arith.constant dense<0.000000e+00> : vector<16x8xf32>
    %320 = tpu.matmul %319, %317, %cst_223 {dimension_numbers = #tpu.dot_dimension_numbers<[1], [0], [0], [1], [0, 0, 1, 1], [], []>} : vector<16x24xf32>, vector<24x8xf32>, vector<16x8xf32> -> vector<16x8xf32>
    %c0_224 = arith.constant 0 : index
    %c0_225 = arith.constant 0 : index
    %c11_226 = arith.constant 11 : index
    %c0_227 = arith.constant 0 : index
    %321 = vector.load %arg3[%c0_224, %c0_225, %c11_226, %c0_227] : memref<1x2x14x8xf32, #tpu.memory_space<vmem>>, vector<1x1x1x8xf32>
    %322 = vector.shape_cast %321 : vector<1x1x1x8xf32> to vector<1x8xf32>
    %323 = vector.broadcast %322 : vector<1x8xf32> to vector<16x8xf32>
    %324 = arith.addf %320, %323 : vector<16x8xf32>
    %325 = arith.negf %324 : vector<16x8xf32>
    %326 = math.exp %325 : vector<16x8xf32>
    %cst_228 = arith.constant 1.000000e+00 : f32
    %327 = vector.broadcast %cst_228 : f32 to vector<16x8xf32>
    %328 = arith.addf %327, %326 : vector<16x8xf32>
    %329 = arith.divf %327, %328 : vector<16x8xf32>
    %330 = arith.mulf %324, %329 : vector<16x8xf32>
    %c0_229 = arith.constant 0 : index
    %c0_230 = arith.constant 0 : index
    %c12 = arith.constant 12 : index
    %c0_231 = arith.constant 0 : index
    %c0_232 = arith.constant 0 : index
    %331 = vector.load %arg2[%c0_229, %c0_230, %c12, %c0_231, %c0_232] : memref<1x2x14x8x24xf32, #tpu.memory_space<vmem>>, vector<1x1x1x8x24xf32>
    %332 = vector.shape_cast %331 : vector<1x1x1x8x24xf32> to vector<8x24xf32>
    %cst_233 = arith.constant dense<0.000000e+00> : vector<16x24xf32>
    %333 = tpu.matmul %330, %332, %cst_233 {dimension_numbers = #tpu.dot_dimension_numbers<[1], [0], [0], [1], [0, 0, 1, 1], [], []>} : vector<16x8xf32>, vector<8x24xf32>, vector<16x24xf32> -> vector<16x24xf32>
    %334 = vector.extract_strided_slice %333 {offsets = [0, 0], sizes = [16, 8], strides = [1, 1]} : vector<16x24xf32> to vector<16x8xf32>
    %335 = vector.extract_strided_slice %333 {offsets = [0, 8], sizes = [16, 8], strides = [1, 1]} : vector<16x24xf32> to vector<16x8xf32>
    %336 = vector.extract_strided_slice %333 {offsets = [0, 16], sizes = [16, 8], strides = [1, 1]} : vector<16x24xf32> to vector<16x8xf32>
    %337 = tpu.concatenate %334, %335, %336 in 0 : vector<16x8xf32>, vector<16x8xf32>, vector<16x8xf32> -> vector<48x8xf32>
    %c5_234 = arith.constant 5 : index
    %c0_235 = arith.constant 0 : index
    %c0_236 = arith.constant 0 : index
    %338 = vector.load %arg6[%c5_234, %c0_235, %c0_236] : memref<12x32x96xf32, #tpu.memory_space<vmem>>, vector<1x32x48xf32>
    %339 = vector.shape_cast %338 : vector<1x32x48xf32> to vector<32x48xf32>
    %cst_237 = arith.constant dense<0.000000e+00> : vector<32x8xf32>
    %340 = tpu.matmul %339, %337, %cst_237 {dimension_numbers = #tpu.dot_dimension_numbers<[1], [0], [0], [1], [0, 0, 1, 1], [], []>} : vector<32x48xf32>, vector<48x8xf32>, vector<32x8xf32> -> vector<32x8xf32>
    %c0_238 = arith.constant 0 : index
    %c0_239 = arith.constant 0 : index
    %c12_240 = arith.constant 12 : index
    %c0_241 = arith.constant 0 : index
    %341 = vector.load %arg3[%c0_238, %c0_239, %c12_240, %c0_241] : memref<1x2x14x8xf32, #tpu.memory_space<vmem>>, vector<1x1x1x8xf32>
    %342 = vector.shape_cast %341 : vector<1x1x1x8xf32> to vector<1x8xf32>
    %343 = vector.broadcast %342 : vector<1x8xf32> to vector<32x8xf32>
    %344 = arith.addf %340, %343 : vector<32x8xf32>
    %345 = arith.negf %344 : vector<32x8xf32>
    %346 = math.exp %345 : vector<32x8xf32>
    %cst_242 = arith.constant 1.000000e+00 : f32
    %347 = vector.broadcast %cst_242 : f32 to vector<32x8xf32>
    %348 = arith.addf %347, %346 : vector<32x8xf32>
    %349 = arith.divf %347, %348 : vector<32x8xf32>
    %350 = arith.mulf %344, %349 : vector<32x8xf32>
    %c0_243 = arith.constant 0 : index
    %c0_244 = arith.constant 0 : index
    %c13 = arith.constant 13 : index
    %c0_245 = arith.constant 0 : index
    %c0_246 = arith.constant 0 : index
    %351 = vector.load %arg2[%c0_243, %c0_244, %c13, %c0_245, %c0_246] : memref<1x2x14x8x24xf32, #tpu.memory_space<vmem>>, vector<1x1x1x8x24xf32>
    %352 = vector.shape_cast %351 : vector<1x1x1x8x24xf32> to vector<8x24xf32>
    %cst_247 = arith.constant dense<0.000000e+00> : vector<32x24xf32>
    %353 = tpu.matmul %350, %352, %cst_247 {dimension_numbers = #tpu.dot_dimension_numbers<[1], [0], [0], [1], [0, 0, 1, 1], [], []>} : vector<32x8xf32>, vector<8x24xf32>, vector<32x24xf32> -> vector<32x24xf32>
    %354 = vector.extract_strided_slice %353 {offsets = [0, 0], sizes = [32, 8], strides = [1, 1]} : vector<32x24xf32> to vector<32x8xf32>
    %355 = vector.extract_strided_slice %353 {offsets = [0, 8], sizes = [32, 8], strides = [1, 1]} : vector<32x24xf32> to vector<32x8xf32>
    %356 = vector.extract_strided_slice %353 {offsets = [0, 16], sizes = [32, 8], strides = [1, 1]} : vector<32x24xf32> to vector<32x8xf32>
    %357 = tpu.concatenate %354, %355, %356 in 0 : vector<32x8xf32>, vector<32x8xf32>, vector<32x8xf32> -> vector<96x8xf32>
    %c0_248 = arith.constant 0 : index
    %c0_249 = arith.constant 0 : index
    %c0_250 = arith.constant 0 : index
    %358 = vector.load %arg6[%c0_248, %c0_249, %c0_250] : memref<12x32x96xf32, #tpu.memory_space<vmem>>, vector<1x32x96xf32>
    %359 = vector.shape_cast %358 : vector<1x32x96xf32> to vector<32x96xf32>
    %cst_251 = arith.constant dense<0.000000e+00> : vector<32x8xf32>
    %360 = tpu.matmul %359, %357, %cst_251 {dimension_numbers = #tpu.dot_dimension_numbers<[1], [0], [0], [1], [0, 0, 1, 1], [], []>} : vector<32x96xf32>, vector<96x8xf32>, vector<32x8xf32> -> vector<32x8xf32>
    %c0_252 = arith.constant 0 : index
    %c0_253 = arith.constant 0 : index
    %c13_254 = arith.constant 13 : index
    %c0_255 = arith.constant 0 : index
    %361 = vector.load %arg3[%c0_252, %c0_253, %c13_254, %c0_255] : memref<1x2x14x8xf32, #tpu.memory_space<vmem>>, vector<1x1x1x8xf32>
    %362 = vector.shape_cast %361 : vector<1x1x1x8xf32> to vector<1x8xf32>
    %363 = vector.broadcast %362 : vector<1x8xf32> to vector<32x8xf32>
    %364 = arith.addf %360, %363 : vector<32x8xf32>
    %c0_256 = arith.constant 0 : index
    %c0_257 = arith.constant 0 : index
    %c0_258 = arith.constant 0 : index
    %c0_259 = arith.constant 0 : index
    %365 = vector.load %arg7[%c0_256, %c0_257, %c0_258, %c0_259] : memref<1x2x32x8xf32, #tpu.memory_space<vmem>>, vector<1x1x32x8xf32>
    %366 = vector.shape_cast %365 : vector<1x1x32x8xf32> to vector<32x8xf32>
    %367 = vector.shape_cast %364 : vector<32x8xf32> to vector<1x1x32x8xf32>
    tpu.vector_store %arg7[%c0_256, %c0_257, %c0_258, %c0_259], %367 {strides = array<i32>} : memref<1x2x32x8xf32, #tpu.memory_space<vmem>>, vector<1x1x32x8xf32>,
    %c0_260 = arith.constant 0 : index
    %c1_261 = arith.constant 1 : index
    %c0_262 = arith.constant 0 : index
    %c0_263 = arith.constant 0 : index
    %368 = vector.load %arg1[%c0_260, %c1_261, %c0_262, %c0_263] : memref<1x2x32x8xf32, #tpu.memory_space<vmem>>, vector<1x1x32x8xf32>
    %369 = vector.shape_cast %368 : vector<1x1x32x8xf32> to vector<32x8xf32>
    %c0_264 = arith.constant 0 : index
    %c1_265 = arith.constant 1 : index
    %c0_266 = arith.constant 0 : index
    %c0_267 = arith.constant 0 : index
    %c0_268 = arith.constant 0 : index
    %370 = vector.load %arg2[%c0_264, %c1_265, %c0_266, %c0_267, %c0_268] : memref<1x2x14x8x24xf32, #tpu.memory_space<vmem>>, vector<1x1x1x8x24xf32>
    %371 = vector.shape_cast %370 : vector<1x1x1x8x24xf32> to vector<8x24xf32>
    %cst_269 = arith.constant dense<0.000000e+00> : vector<32x24xf32>
    %372 = tpu.matmul %369, %371, %cst_269 {dimension_numbers = #tpu.dot_dimension_numbers<[1], [0], [0], [1], [0, 0, 1, 1], [], []>} : vector<32x8xf32>, vector<8x24xf32>, vector<32x24xf32> -> vector<32x24xf32>
    %373 = vector.extract_strided_slice %372 {offsets = [0, 0], sizes = [32, 8], strides = [1, 1]} : vector<32x24xf32> to vector<32x8xf32>
    %374 = vector.extract_strided_slice %372 {offsets = [0, 8], sizes = [32, 8], strides = [1, 1]} : vector<32x24xf32> to vector<32x8xf32>
    %375 = vector.extract_strided_slice %372 {offsets = [0, 16], sizes = [32, 8], strides = [1, 1]} : vector<32x24xf32> to vector<32x8xf32>
    %376 = tpu.concatenate %373, %374, %375 in 0 : vector<32x8xf32>, vector<32x8xf32>, vector<32x8xf32> -> vector<96x8xf32>
    %c0_270 = arith.constant 0 : index
    %c0_271 = arith.constant 0 : index
    %c0_272 = arith.constant 0 : index
    %377 = vector.load %arg6[%c0_270, %c0_271, %c0_272] : memref<12x32x96xf32, #tpu.memory_space<vmem>>, vector<1x32x96xf32>
    %378 = vector.shape_cast %377 : vector<1x32x96xf32> to vector<32x96xf32>
    %cst_273 = arith.constant dense<0.000000e+00> : vector<32x8xf32>
    %379 = tpu.matmul %378, %376, %cst_273 {dimension_numbers = #tpu.dot_dimension_numbers<[1], [0], [0], [1], [0, 0, 1, 1], [], []>} : vector<32x96xf32>, vector<96x8xf32>, vector<32x8xf32> -> vector<32x8xf32>
    %c0_274 = arith.constant 0 : index
    %c1_275 = arith.constant 1 : index
    %c0_276 = arith.constant 0 : index
    %c0_277 = arith.constant 0 : index
    %380 = vector.load %arg3[%c0_274, %c1_275, %c0_276, %c0_277] : memref<1x2x14x8xf32, #tpu.memory_space<vmem>>, vector<1x1x1x8xf32>
    %381 = vector.shape_cast %380 : vector<1x1x1x8xf32> to vector<1x8xf32>
    %382 = vector.broadcast %381 : vector<1x8xf32> to vector<32x8xf32>
    %383 = arith.addf %379, %382 : vector<32x8xf32>
    %384 = arith.negf %383 : vector<32x8xf32>
    %385 = math.exp %384 : vector<32x8xf32>
    %cst_278 = arith.constant 1.000000e+00 : f32
    %386 = vector.broadcast %cst_278 : f32 to vector<32x8xf32>
    %387 = arith.addf %386, %385 : vector<32x8xf32>
    %388 = arith.divf %386, %387 : vector<32x8xf32>
    %389 = arith.mulf %383, %388 : vector<32x8xf32>
    %c0_279 = arith.constant 0 : index
    %c1_280 = arith.constant 1 : index
    %c1_281 = arith.constant 1 : index
    %c0_282 = arith.constant 0 : index
    %c0_283 = arith.constant 0 : index
    %390 = vector.load %arg2[%c0_279, %c1_280, %c1_281, %c0_282, %c0_283] : memref<1x2x14x8x24xf32, #tpu.memory_space<vmem>>, vector<1x1x1x8x24xf32>
    %391 = vector.shape_cast %390 : vector<1x1x1x8x24xf32> to vector<8x24xf32>
    %cst_284 = arith.constant dense<0.000000e+00> : vector<32x24xf32>
    %392 = tpu.matmul %389, %391, %cst_284 {dimension_numbers = #tpu.dot_dimension_numbers<[1], [0], [0], [1], [0, 0, 1, 1], [], []>} : vector<32x8xf32>, vector<8x24xf32>, vector<32x24xf32> -> vector<32x24xf32>
    %393 = vector.extract_strided_slice %392 {offsets = [0, 0], sizes = [32, 8], strides = [1, 1]} : vector<32x24xf32> to vector<32x8xf32>
    %394 = vector.extract_strided_slice %392 {offsets = [0, 8], sizes = [32, 8], strides = [1, 1]} : vector<32x24xf32> to vector<32x8xf32>
    %395 = vector.extract_strided_slice %392 {offsets = [0, 16], sizes = [32, 8], strides = [1, 1]} : vector<32x24xf32> to vector<32x8xf32>
    %396 = tpu.concatenate %393, %394, %395 in 0 : vector<32x8xf32>, vector<32x8xf32>, vector<32x8xf32> -> vector<96x8xf32>
    %c0_285 = arith.constant 0 : index
    %c0_286 = arith.constant 0 : index
    %c0_287 = arith.constant 0 : index
    %397 = vector.load %arg6[%c0_285, %c0_286, %c0_287] : memref<12x32x96xf32, #tpu.memory_space<vmem>>, vector<1x32x96xf32>
    %398 = vector.shape_cast %397 : vector<1x32x96xf32> to vector<32x96xf32>
    %cst_288 = arith.constant dense<0.000000e+00> : vector<32x8xf32>
    %399 = tpu.matmul %398, %396, %cst_288 {dimension_numbers = #tpu.dot_dimension_numbers<[1], [0], [0], [1], [0, 0, 1, 1], [], []>} : vector<32x96xf32>, vector<96x8xf32>, vector<32x8xf32> -> vector<32x8xf32>
    %c0_289 = arith.constant 0 : index
    %c1_290 = arith.constant 1 : index
    %c1_291 = arith.constant 1 : index
    %c0_292 = arith.constant 0 : index
    %400 = vector.load %arg3[%c0_289, %c1_290, %c1_291, %c0_292] : memref<1x2x14x8xf32, #tpu.memory_space<vmem>>, vector<1x1x1x8xf32>
    %401 = vector.shape_cast %400 : vector<1x1x1x8xf32> to vector<1x8xf32>
    %402 = vector.broadcast %401 : vector<1x8xf32> to vector<32x8xf32>
    %403 = arith.addf %399, %402 : vector<32x8xf32>
    %404 = arith.negf %403 : vector<32x8xf32>
    %405 = math.exp %404 : vector<32x8xf32>
    %cst_293 = arith.constant 1.000000e+00 : f32
    %406 = vector.broadcast %cst_293 : f32 to vector<32x8xf32>
    %407 = arith.addf %406, %405 : vector<32x8xf32>
    %408 = arith.divf %406, %407 : vector<32x8xf32>
    %409 = arith.mulf %403, %408 : vector<32x8xf32>
    %c0_294 = arith.constant 0 : index
    %c1_295 = arith.constant 1 : index
    %c2_296 = arith.constant 2 : index
    %c0_297 = arith.constant 0 : index
    %c0_298 = arith.constant 0 : index
    %410 = vector.load %arg2[%c0_294, %c1_295, %c2_296, %c0_297, %c0_298] : memref<1x2x14x8x24xf32, #tpu.memory_space<vmem>>, vector<1x1x1x8x24xf32>
    %411 = vector.shape_cast %410 : vector<1x1x1x8x24xf32> to vector<8x24xf32>
    %cst_299 = arith.constant dense<0.000000e+00> : vector<32x24xf32>
    %412 = tpu.matmul %409, %411, %cst_299 {dimension_numbers = #tpu.dot_dimension_numbers<[1], [0], [0], [1], [0, 0, 1, 1], [], []>} : vector<32x8xf32>, vector<8x24xf32>, vector<32x24xf32> -> vector<32x24xf32>
    %413 = vector.extract_strided_slice %412 {offsets = [0, 0], sizes = [32, 8], strides = [1, 1]} : vector<32x24xf32> to vector<32x8xf32>
    %414 = vector.extract_strided_slice %412 {offsets = [0, 8], sizes = [32, 8], strides = [1, 1]} : vector<32x24xf32> to vector<32x8xf32>
    %415 = vector.extract_strided_slice %412 {offsets = [0, 16], sizes = [32, 8], strides = [1, 1]} : vector<32x24xf32> to vector<32x8xf32>
    %416 = tpu.concatenate %413, %414, %415 in 0 : vector<32x8xf32>, vector<32x8xf32>, vector<32x8xf32> -> vector<96x8xf32>
    %c1_300 = arith.constant 1 : index
    %c0_301 = arith.constant 0 : index
    %c0_302 = arith.constant 0 : index
    %417 = vector.load %arg6[%c1_300, %c0_301, %c0_302] : memref<12x32x96xf32, #tpu.memory_space<vmem>>, vector<1x16x96xf32>
    %418 = vector.shape_cast %417 : vector<1x16x96xf32> to vector<16x96xf32>
    %cst_303 = arith.constant dense<0.000000e+00> : vector<16x8xf32>
    %419 = tpu.matmul %418, %416, %cst_303 {dimension_numbers = #tpu.dot_dimension_numbers<[1], [0], [0], [1], [0, 0, 1, 1], [], []>} : vector<16x96xf32>, vector<96x8xf32>, vector<16x8xf32> -> vector<16x8xf32>
    %c0_304 = arith.constant 0 : index
    %c1_305 = arith.constant 1 : index
    %c2_306 = arith.constant 2 : index
    %c0_307 = arith.constant 0 : index
    %420 = vector.load %arg3[%c0_304, %c1_305, %c2_306, %c0_307] : memref<1x2x14x8xf32, #tpu.memory_space<vmem>>, vector<1x1x1x8xf32>
    %421 = vector.shape_cast %420 : vector<1x1x1x8xf32> to vector<1x8xf32>
    %422 = vector.broadcast %421 : vector<1x8xf32> to vector<16x8xf32>
    %423 = arith.addf %419, %422 : vector<16x8xf32>
    %424 = arith.negf %423 : vector<16x8xf32>
    %425 = math.exp %424 : vector<16x8xf32>
    %cst_308 = arith.constant 1.000000e+00 : f32
    %426 = vector.broadcast %cst_308 : f32 to vector<16x8xf32>
    %427 = arith.addf %426, %425 : vector<16x8xf32>
    %428 = arith.divf %426, %427 : vector<16x8xf32>
    %429 = arith.mulf %423, %428 : vector<16x8xf32>
    %c0_309 = arith.constant 0 : index
    %c1_310 = arith.constant 1 : index
    %c3_311 = arith.constant 3 : index
    %c0_312 = arith.constant 0 : index
    %c0_313 = arith.constant 0 : index
    %430 = vector.load %arg2[%c0_309, %c1_310, %c3_311, %c0_312, %c0_313] : memref<1x2x14x8x24xf32, #tpu.memory_space<vmem>>, vector<1x1x1x8x24xf32>
    %431 = vector.shape_cast %430 : vector<1x1x1x8x24xf32> to vector<8x24xf32>
    %cst_314 = arith.constant dense<0.000000e+00> : vector<16x24xf32>
    %432 = tpu.matmul %429, %431, %cst_314 {dimension_numbers = #tpu.dot_dimension_numbers<[1], [0], [0], [1], [0, 0, 1, 1], [], []>} : vector<16x8xf32>, vector<8x24xf32>, vector<16x24xf32> -> vector<16x24xf32>
    %433 = vector.extract_strided_slice %432 {offsets = [0, 0], sizes = [16, 8], strides = [1, 1]} : vector<16x24xf32> to vector<16x8xf32>
    %434 = vector.extract_strided_slice %432 {offsets = [0, 8], sizes = [16, 8], strides = [1, 1]} : vector<16x24xf32> to vector<16x8xf32>
    %435 = vector.extract_strided_slice %432 {offsets = [0, 16], sizes = [16, 8], strides = [1, 1]} : vector<16x24xf32> to vector<16x8xf32>
    %436 = tpu.concatenate %433, %434, %435 in 0 : vector<16x8xf32>, vector<16x8xf32>, vector<16x8xf32> -> vector<48x8xf32>
    %c2_315 = arith.constant 2 : index
    %c0_316 = arith.constant 0 : index
    %c0_317 = arith.constant 0 : index
    %437 = vector.load %arg6[%c2_315, %c0_316, %c0_317] : memref<12x32x96xf32, #tpu.memory_space<vmem>>, vector<1x8x48xf32>
    %438 = vector.shape_cast %437 : vector<1x8x48xf32> to vector<8x48xf32>
    %cst_318 = arith.constant dense<0.000000e+00> : vector<8x8xf32>
    %439 = tpu.matmul %438, %436, %cst_318 {dimension_numbers = #tpu.dot_dimension_numbers<[1], [0], [0], [1], [0, 0, 1, 1], [], []>} : vector<8x48xf32>, vector<48x8xf32>, vector<8x8xf32> -> vector<8x8xf32>
    %c0_319 = arith.constant 0 : index
    %c1_320 = arith.constant 1 : index
    %c3_321 = arith.constant 3 : index
    %c0_322 = arith.constant 0 : index
    %440 = vector.load %arg3[%c0_319, %c1_320, %c3_321, %c0_322] : memref<1x2x14x8xf32, #tpu.memory_space<vmem>>, vector<1x1x1x8xf32>
    %441 = vector.shape_cast %440 : vector<1x1x1x8xf32> to vector<1x8xf32>
    %442 = vector.broadcast %441 : vector<1x8xf32> to vector<8x8xf32>
    %443 = arith.addf %439, %442 : vector<8x8xf32>
    %c0_323 = arith.constant 0 : index
    %c1_324 = arith.constant 1 : index
    %c4_325 = arith.constant 4 : index
    %c0_326 = arith.constant 0 : index
    %c0_327 = arith.constant 0 : index
    %444 = vector.load %arg2[%c0_323, %c1_324, %c4_325, %c0_326, %c0_327] : memref<1x2x14x8x24xf32, #tpu.memory_space<vmem>>, vector<1x1x1x8x24xf32>
    %445 = vector.shape_cast %444 : vector<1x1x1x8x24xf32> to vector<8x24xf32>
    %cst_328 = arith.constant dense<0.000000e+00> : vector<8x24xf32>
    %446 = tpu.matmul %443, %445, %cst_328 {dimension_numbers = #tpu.dot_dimension_numbers<[1], [0], [0], [1], [0, 0, 1, 1], [], []>} : vector<8x8xf32>, vector<8x24xf32>, vector<8x24xf32> -> vector<8x24xf32>
    %447 = vector.extract_strided_slice %446 {offsets = [0, 0], sizes = [8, 8], strides = [1, 1]} : vector<8x24xf32> to vector<8x8xf32>
    %448 = vector.extract_strided_slice %446 {offsets = [0, 8], sizes = [8, 8], strides = [1, 1]} : vector<8x24xf32> to vector<8x8xf32>
    %449 = vector.extract_strided_slice %446 {offsets = [0, 16], sizes = [8, 8], strides = [1, 1]} : vector<8x24xf32> to vector<8x8xf32>
    %450 = tpu.concatenate %447, %448, %449 in 0 : vector<8x8xf32>, vector<8x8xf32>, vector<8x8xf32> -> vector<24x8xf32>
    %c3_329 = arith.constant 3 : index
    %c0_330 = arith.constant 0 : index
    %c0_331 = arith.constant 0 : index
    %451 = vector.load %arg6[%c3_329, %c0_330, %c0_331] : memref<12x32x96xf32, #tpu.memory_space<vmem>>, vector<1x8x24xf32>
    %452 = vector.shape_cast %451 : vector<1x8x24xf32> to vector<8x24xf32>
    %cst_332 = arith.constant dense<0.000000e+00> : vector<8x8xf32>
    %453 = tpu.matmul %452, %450, %cst_332 {dimension_numbers = #tpu.dot_dimension_numbers<[1], [0], [0], [1], [0, 0, 1, 1], [], []>} : vector<8x24xf32>, vector<24x8xf32>, vector<8x8xf32> -> vector<8x8xf32>
    %c0_333 = arith.constant 0 : index
    %c1_334 = arith.constant 1 : index
    %c4_335 = arith.constant 4 : index
    %c0_336 = arith.constant 0 : index
    %454 = vector.load %arg3[%c0_333, %c1_334, %c4_335, %c0_336] : memref<1x2x14x8xf32, #tpu.memory_space<vmem>>, vector<1x1x1x8xf32>
    %455 = vector.shape_cast %454 : vector<1x1x1x8xf32> to vector<1x8xf32>
    %456 = vector.broadcast %455 : vector<1x8xf32> to vector<8x8xf32>
    %457 = arith.addf %453, %456 : vector<8x8xf32>
    %c0_337 = arith.constant 0 : index
    %c1_338 = arith.constant 1 : index
    %c0_339 = arith.constant 0 : index
    %c0_340 = arith.constant 0 : index
    %458 = vector.load %arg4[%c0_337, %c1_338, %c0_339, %c0_340] : memref<1x2x8x512xf32, #tpu.memory_space<vmem>>, vector<1x1x8x512xf32>
    %459 = vector.shape_cast %458 : vector<1x1x8x512xf32> to vector<8x512xf32>
    %c0_341 = arith.constant 0 : index
    %c1_342 = arith.constant 1 : index
    %c0_343 = arith.constant 0 : index
    %c0_344 = arith.constant 0 : index
    %460 = vector.load %arg5[%c0_341, %c1_342, %c0_343, %c0_344] : memref<1x2x8x512xf32, #tpu.memory_space<vmem>>, vector<1x1x8x512xf32>
    %461 = vector.shape_cast %460 : vector<1x1x8x512xf32> to vector<8x512xf32>
    %cst_345 = arith.constant 0.000000e+00 : f32
    %462 = vector.broadcast %cst_345 : f32 to vector<8x8xf32>
    %c6_346 = arith.constant 6 : index
    %c0_347 = arith.constant 0 : index
    %c0_348 = arith.constant 0 : index
    %463 = vector.load %arg6[%c6_346, %c0_347, %c0_348] : memref<12x32x96xf32, #tpu.memory_space<vmem>>, vector<1x2x8xf32>
    %464 = vector.shape_cast %463 : vector<1x2x8xf32> to vector<2x8xf32>
    %cst_349 = arith.constant dense<0.000000e+00> : vector<2x8xf32>
    %465 = tpu.matmul %464, %457, %cst_349 {dimension_numbers = #tpu.dot_dimension_numbers<[1], [0], [0], [1], [0, 0, 1, 1], [], []>} : vector<2x8xf32>, vector<8x8xf32>, vector<2x8xf32> -> vector<2x8xf32>
    %cst_350 = arith.constant dense<0.000000e+00> : vector<2x512xf32>
    %466 = tpu.matmul %465, %459, %cst_350 {dimension_numbers = #tpu.dot_dimension_numbers<[1], [0], [0], [1], [0, 0, 1, 1], [], []>} : vector<2x8xf32>, vector<8x512xf32>, vector<2x512xf32> -> vector<2x512xf32>
    %467 = tpu.iota {dimensions = array<i32: 1>} : vector<2x512xi32>
    %cst_351 = arith.constant dense<0xFF800000> : vector<2xf32>
    %468 = vector.multi_reduction <maximumf>, %466, %cst_351 [1] : vector<2x512xf32> to vector<2xf32>
    %469 = vector.shape_cast %468 : vector<2xf32> to vector<2x1xf32>
    %470 = vector.broadcast %469 : vector<2x1xf32> to vector<2x512xf32>
    %471 = arith.cmpf oge, %466, %470 : vector<2x512xf32>
    %c512_i32_352 = arith.constant 512 : i32
    %472 = vector.broadcast %c512_i32_352 : i32 to vector<2x512xi32>
    %473 = arith.select %471, %467, %472 : vector<2x512xi1>, vector<2x512xi32>
    %cst_353 = arith.constant dense<2147483647> : vector<2xi32>
    %474 = vector.multi_reduction <minsi>, %473, %cst_353 [1] : vector<2x512xi32> to vector<2xi32>
    %475 = vector.shape_cast %474 : vector<2xi32> to vector<2x1xi32>
    %476 = vector.broadcast %475 : vector<2x1xi32> to vector<2x512xi32>
    %477 = arith.cmpi eq, %467, %476 : vector<2x512xi32>
    %478 = arith.extui %477 : vector<2x512xi1> to vector<2x512xi32>
    %479 = arith.sitofp %478 : vector<2x512xi32> to vector<2x512xf32>
    %cst_354 = arith.constant dense<0.000000e+00> : vector<2x8xf32>
    %480 = tpu.matmul %479, %461, %cst_354 {dimension_numbers = #tpu.dot_dimension_numbers<[1], [1], [0], [0], [0, 0, 1, 0], [], []>} : vector<2x512xf32>, vector<8x512xf32>, vector<2x8xf32> -> vector<2x8xf32>
    %c9_355 = arith.constant 9 : index
    %c0_356 = arith.constant 0 : index
    %c0_357 = arith.constant 0 : index
    %481 = vector.load %arg6[%c9_355, %c0_356, %c0_357] : memref<12x32x96xf32, #tpu.memory_space<vmem>>, vector<1x8x2xf32>
    %482 = vector.shape_cast %481 : vector<1x8x2xf32> to vector<8x2xf32>
    %cst_358 = arith.constant dense<0.000000e+00> : vector<8x8xf32>
    %483 = tpu.matmul %482, %480, %cst_358 {dimension_numbers = #tpu.dot_dimension_numbers<[1], [0], [0], [1], [0, 0, 1, 1], [], []>} : vector<8x2xf32>, vector<2x8xf32>, vector<8x8xf32> -> vector<8x8xf32>
    %c0_359 = arith.constant 0 : index
    %c1_360 = arith.constant 1 : index
    %c5_361 = arith.constant 5 : index
    %c0_362 = arith.constant 0 : index
    %c0_363 = arith.constant 0 : index
    %484 = vector.load %arg2[%c0_359, %c1_360, %c5_361, %c0_362, %c0_363] : memref<1x2x14x8x24xf32, #tpu.memory_space<vmem>>, vector<1x1x1x8x24xf32>
    %485 = vector.shape_cast %484 : vector<1x1x1x8x24xf32> to vector<8x24xf32>
    %cst_364 = arith.constant dense<0.000000e+00> : vector<8x24xf32>
    %486 = tpu.matmul %483, %485, %cst_364 {dimension_numbers = #tpu.dot_dimension_numbers<[1], [0], [0], [1], [0, 0, 1, 1], [], []>} : vector<8x8xf32>, vector<8x24xf32>, vector<8x24xf32> -> vector<8x24xf32>
    %487 = vector.extract_strided_slice %486 {offsets = [0, 0], sizes = [8, 8], strides = [1, 1]} : vector<8x24xf32> to vector<8x8xf32>
    %488 = vector.extract_strided_slice %486 {offsets = [0, 8], sizes = [8, 8], strides = [1, 1]} : vector<8x24xf32> to vector<8x8xf32>
    %489 = vector.extract_strided_slice %486 {offsets = [0, 16], sizes = [8, 8], strides = [1, 1]} : vector<8x24xf32> to vector<8x8xf32>
    %490 = tpu.concatenate %487, %488, %489 in 0 : vector<8x8xf32>, vector<8x8xf32>, vector<8x8xf32> -> vector<24x8xf32>
    %c3_365 = arith.constant 3 : index
    %c0_366 = arith.constant 0 : index
    %c0_367 = arith.constant 0 : index
    %491 = vector.load %arg6[%c3_365, %c0_366, %c0_367] : memref<12x32x96xf32, #tpu.memory_space<vmem>>, vector<1x8x24xf32>
    %492 = vector.shape_cast %491 : vector<1x8x24xf32> to vector<8x24xf32>
    %cst_368 = arith.constant dense<0.000000e+00> : vector<8x8xf32>
    %493 = tpu.matmul %492, %490, %cst_368 {dimension_numbers = #tpu.dot_dimension_numbers<[1], [0], [0], [1], [0, 0, 1, 1], [], []>} : vector<8x24xf32>, vector<24x8xf32>, vector<8x8xf32> -> vector<8x8xf32>
    %c0_369 = arith.constant 0 : index
    %c1_370 = arith.constant 1 : index
    %c5_371 = arith.constant 5 : index
    %c0_372 = arith.constant 0 : index
    %494 = vector.load %arg3[%c0_369, %c1_370, %c5_371, %c0_372] : memref<1x2x14x8xf32, #tpu.memory_space<vmem>>, vector<1x1x1x8xf32>
    %495 = vector.shape_cast %494 : vector<1x1x1x8xf32> to vector<1x8xf32>
    %496 = vector.broadcast %495 : vector<1x8xf32> to vector<8x8xf32>
    %497 = arith.addf %493, %496 : vector<8x8xf32>
    %cst_373 = arith.constant 5.000000e-01 : f32
    %498 = vector.broadcast %cst_373 : f32 to vector<8x8xf32>
    %499 = arith.mulf %483, %498 : vector<8x8xf32>
    %cst_374 = arith.constant 5.000000e-01 : f32
    %500 = vector.broadcast %cst_374 : f32 to vector<8x8xf32>
    %501 = arith.mulf %497, %500 : vector<8x8xf32>
    %502 = arith.addf %499, %501 : vector<8x8xf32>
    %503 = arith.addf %462, %502 : vector<8x8xf32>
    %504 = arith.subf %457, %502 : vector<8x8xf32>
    %505 = arith.subf %503, %457 : vector<8x8xf32>
    %506 = arith.mulf %505, %505 : vector<8x8xf32>
    %cst_375 = arith.constant dense<0.000000e+00> : vector<8xf32>
    %507 = vector.multi_reduction <add>, %506, %cst_375 [0] : vector<8x8xf32> to vector<8xf32>
    %508 = vector.shape_cast %507 : vector<8xf32> to vector<1x8xf32>
    %509 = arith.addf %276, %508 : vector<1x8xf32>
    %c7_376 = arith.constant 7 : index
    %c0_377 = arith.constant 0 : index
    %c0_378 = arith.constant 0 : index
    %510 = vector.load %arg6[%c7_376, %c0_377, %c0_378] : memref<12x32x96xf32, #tpu.memory_space<vmem>>, vector<1x4x8xf32>
    %511 = vector.shape_cast %510 : vector<1x4x8xf32> to vector<4x8xf32>
    %cst_379 = arith.constant dense<0.000000e+00> : vector<4x8xf32>
    %512 = tpu.matmul %511, %504, %cst_379 {dimension_numbers = #tpu.dot_dimension_numbers<[1], [0], [0], [1], [0, 0, 1, 1], [], []>} : vector<4x8xf32>, vector<8x8xf32>, vector<4x8xf32> -> vector<4x8xf32>
    %cst_380 = arith.constant dense<0.000000e+00> : vector<4x512xf32>
    %513 = tpu.matmul %512, %459, %cst_380 {dimension_numbers = #tpu.dot_dimension_numbers<[1], [0], [0], [1], [0, 0, 1, 1], [], []>} : vector<4x8xf32>, vector<8x512xf32>, vector<4x512xf32> -> vector<4x512xf32>
    %514 = tpu.iota {dimensions = array<i32: 1>} : vector<4x512xi32>
    %cst_381 = arith.constant dense<0xFF800000> : vector<4xf32>
    %515 = vector.multi_reduction <maximumf>, %513, %cst_381 [1] : vector<4x512xf32> to vector<4xf32>
    %516 = vector.shape_cast %515 : vector<4xf32> to vector<4x1xf32>
    %517 = vector.broadcast %516 : vector<4x1xf32> to vector<4x512xf32>
    %518 = arith.cmpf oge, %513, %517 : vector<4x512xf32>
    %c512_i32_382 = arith.constant 512 : i32
    %519 = vector.broadcast %c512_i32_382 : i32 to vector<4x512xi32>
    %520 = arith.select %518, %514, %519 : vector<4x512xi1>, vector<4x512xi32>
    %cst_383 = arith.constant dense<2147483647> : vector<4xi32>
    %521 = vector.multi_reduction <minsi>, %520, %cst_383 [1] : vector<4x512xi32> to vector<4xi32>
    %522 = vector.shape_cast %521 : vector<4xi32> to vector<4x1xi32>
    %523 = vector.broadcast %522 : vector<4x1xi32> to vector<4x512xi32>
    %524 = arith.cmpi eq, %514, %523 : vector<4x512xi32>
    %525 = arith.extui %524 : vector<4x512xi1> to vector<4x512xi32>
    %526 = arith.sitofp %525 : vector<4x512xi32> to vector<4x512xf32>
    %cst_384 = arith.constant dense<0.000000e+00> : vector<4x8xf32>
    %527 = tpu.matmul %526, %461, %cst_384 {dimension_numbers = #tpu.dot_dimension_numbers<[1], [1], [0], [0], [0, 0, 1, 0], [], []>} : vector<4x512xf32>, vector<8x512xf32>, vector<4x8xf32> -> vector<4x8xf32>
    %c10_385 = arith.constant 10 : index
    %c0_386 = arith.constant 0 : index
    %c0_387 = arith.constant 0 : index
    %528 = vector.load %arg6[%c10_385, %c0_386, %c0_387] : memref<12x32x96xf32, #tpu.memory_space<vmem>>, vector<1x8x4xf32>
    %529 = vector.shape_cast %528 : vector<1x8x4xf32> to vector<8x4xf32>
    %cst_388 = arith.constant dense<0.000000e+00> : vector<8x8xf32>
    %530 = tpu.matmul %529, %527, %cst_388 {dimension_numbers = #tpu.dot_dimension_numbers<[1], [0], [0], [1], [0, 0, 1, 1], [], []>} : vector<8x4xf32>, vector<4x8xf32>, vector<8x8xf32> -> vector<8x8xf32>
    %c0_389 = arith.constant 0 : index
    %c1_390 = arith.constant 1 : index
    %c6_391 = arith.constant 6 : index
    %c0_392 = arith.constant 0 : index
    %c0_393 = arith.constant 0 : index
    %531 = vector.load %arg2[%c0_389, %c1_390, %c6_391, %c0_392, %c0_393] : memref<1x2x14x8x24xf32, #tpu.memory_space<vmem>>, vector<1x1x1x8x24xf32>
    %532 = vector.shape_cast %531 : vector<1x1x1x8x24xf32> to vector<8x24xf32>
    %cst_394 = arith.constant dense<0.000000e+00> : vector<8x24xf32>
    %533 = tpu.matmul %530, %532, %cst_394 {dimension_numbers = #tpu.dot_dimension_numbers<[1], [0], [0], [1], [0, 0, 1, 1], [], []>} : vector<8x8xf32>, vector<8x24xf32>, vector<8x24xf32> -> vector<8x24xf32>
    %534 = vector.extract_strided_slice %533 {offsets = [0, 0], sizes = [8, 8], strides = [1, 1]} : vector<8x24xf32> to vector<8x8xf32>
    %535 = vector.extract_strided_slice %533 {offsets = [0, 8], sizes = [8, 8], strides = [1, 1]} : vector<8x24xf32> to vector<8x8xf32>
    %536 = vector.extract_strided_slice %533 {offsets = [0, 16], sizes = [8, 8], strides = [1, 1]} : vector<8x24xf32> to vector<8x8xf32>
    %537 = tpu.concatenate %534, %535, %536 in 0 : vector<8x8xf32>, vector<8x8xf32>, vector<8x8xf32> -> vector<24x8xf32>
    %c3_395 = arith.constant 3 : index
    %c0_396 = arith.constant 0 : index
    %c0_397 = arith.constant 0 : index
    %538 = vector.load %arg6[%c3_395, %c0_396, %c0_397] : memref<12x32x96xf32, #tpu.memory_space<vmem>>, vector<1x8x24xf32>
    %539 = vector.shape_cast %538 : vector<1x8x24xf32> to vector<8x24xf32>
    %cst_398 = arith.constant dense<0.000000e+00> : vector<8x8xf32>
    %540 = tpu.matmul %539, %537, %cst_398 {dimension_numbers = #tpu.dot_dimension_numbers<[1], [0], [0], [1], [0, 0, 1, 1], [], []>} : vector<8x24xf32>, vector<24x8xf32>, vector<8x8xf32> -> vector<8x8xf32>
    %c0_399 = arith.constant 0 : index
    %c1_400 = arith.constant 1 : index
    %c6_401 = arith.constant 6 : index
    %c0_402 = arith.constant 0 : index
    %541 = vector.load %arg3[%c0_399, %c1_400, %c6_401, %c0_402] : memref<1x2x14x8xf32, #tpu.memory_space<vmem>>, vector<1x1x1x8xf32>
    %542 = vector.shape_cast %541 : vector<1x1x1x8xf32> to vector<1x8xf32>
    %543 = vector.broadcast %542 : vector<1x8xf32> to vector<8x8xf32>
    %544 = arith.addf %540, %543 : vector<8x8xf32>
    %cst_403 = arith.constant 5.000000e-01 : f32
    %545 = vector.broadcast %cst_403 : f32 to vector<8x8xf32>
    %546 = arith.mulf %530, %545 : vector<8x8xf32>
    %cst_404 = arith.constant 5.000000e-01 : f32
    %547 = vector.broadcast %cst_404 : f32 to vector<8x8xf32>
    %548 = arith.mulf %544, %547 : vector<8x8xf32>
    %549 = arith.addf %546, %548 : vector<8x8xf32>
    %550 = arith.addf %503, %549 : vector<8x8xf32>
    %551 = arith.subf %504, %549 : vector<8x8xf32>
    %552 = arith.subf %550, %457 : vector<8x8xf32>
    %553 = arith.mulf %552, %552 : vector<8x8xf32>
    %cst_405 = arith.constant dense<0.000000e+00> : vector<8xf32>
    %554 = vector.multi_reduction <add>, %553, %cst_405 [0] : vector<8x8xf32> to vector<8xf32>
    %555 = vector.shape_cast %554 : vector<8xf32> to vector<1x8xf32>
    %556 = arith.addf %509, %555 : vector<1x8xf32>
    %c8_406 = arith.constant 8 : index
    %c0_407 = arith.constant 0 : index
    %c0_408 = arith.constant 0 : index
    %557 = vector.load %arg6[%c8_406, %c0_407, %c0_408] : memref<12x32x96xf32, #tpu.memory_space<vmem>>, vector<1x6x8xf32>
    %558 = vector.shape_cast %557 : vector<1x6x8xf32> to vector<6x8xf32>
    %cst_409 = arith.constant dense<0.000000e+00> : vector<6x8xf32>
    %559 = tpu.matmul %558, %551, %cst_409 {dimension_numbers = #tpu.dot_dimension_numbers<[1], [0], [0], [1], [0, 0, 1, 1], [], []>} : vector<6x8xf32>, vector<8x8xf32>, vector<6x8xf32> -> vector<6x8xf32>
    %cst_410 = arith.constant dense<0.000000e+00> : vector<6x512xf32>
    %560 = tpu.matmul %559, %459, %cst_410 {dimension_numbers = #tpu.dot_dimension_numbers<[1], [0], [0], [1], [0, 0, 1, 1], [], []>} : vector<6x8xf32>, vector<8x512xf32>, vector<6x512xf32> -> vector<6x512xf32>
    %561 = tpu.iota {dimensions = array<i32: 1>} : vector<6x512xi32>
    %cst_411 = arith.constant dense<0xFF800000> : vector<6xf32>
    %562 = vector.multi_reduction <maximumf>, %560, %cst_411 [1] : vector<6x512xf32> to vector<6xf32>
    %563 = vector.shape_cast %562 : vector<6xf32> to vector<6x1xf32>
    %564 = vector.broadcast %563 : vector<6x1xf32> to vector<6x512xf32>
    %565 = arith.cmpf oge, %560, %564 : vector<6x512xf32>
    %c512_i32_412 = arith.constant 512 : i32
    %566 = vector.broadcast %c512_i32_412 : i32 to vector<6x512xi32>
    %567 = arith.select %565, %561, %566 : vector<6x512xi1>, vector<6x512xi32>
    %cst_413 = arith.constant dense<2147483647> : vector<6xi32>
    %568 = vector.multi_reduction <minsi>, %567, %cst_413 [1] : vector<6x512xi32> to vector<6xi32>
    %569 = vector.shape_cast %568 : vector<6xi32> to vector<6x1xi32>
    %570 = vector.broadcast %569 : vector<6x1xi32> to vector<6x512xi32>
    %571 = arith.cmpi eq, %561, %570 : vector<6x512xi32>
    %572 = arith.extui %571 : vector<6x512xi1> to vector<6x512xi32>
    %573 = arith.sitofp %572 : vector<6x512xi32> to vector<6x512xf32>
    %cst_414 = arith.constant dense<0.000000e+00> : vector<6x8xf32>
    %574 = tpu.matmul %573, %461, %cst_414 {dimension_numbers = #tpu.dot_dimension_numbers<[1], [1], [0], [0], [0, 0, 1, 0], [], []>} : vector<6x512xf32>, vector<8x512xf32>, vector<6x8xf32> -> vector<6x8xf32>
    %c11_415 = arith.constant 11 : index
    %c0_416 = arith.constant 0 : index
    %c0_417 = arith.constant 0 : index
    %575 = vector.load %arg6[%c11_415, %c0_416, %c0_417] : memref<12x32x96xf32, #tpu.memory_space<vmem>>, vector<1x8x6xf32>
    %576 = vector.shape_cast %575 : vector<1x8x6xf32> to vector<8x6xf32>
    %cst_418 = arith.constant dense<0.000000e+00> : vector<8x8xf32>
    %577 = tpu.matmul %576, %574, %cst_418 {dimension_numbers = #tpu.dot_dimension_numbers<[1], [0], [0], [1], [0, 0, 1, 1], [], []>} : vector<8x6xf32>, vector<6x8xf32>, vector<8x8xf32> -> vector<8x8xf32>
    %c0_419 = arith.constant 0 : index
    %c1_420 = arith.constant 1 : index
    %c7_421 = arith.constant 7 : index
    %c0_422 = arith.constant 0 : index
    %c0_423 = arith.constant 0 : index
    %578 = vector.load %arg2[%c0_419, %c1_420, %c7_421, %c0_422, %c0_423] : memref<1x2x14x8x24xf32, #tpu.memory_space<vmem>>, vector<1x1x1x8x24xf32>
    %579 = vector.shape_cast %578 : vector<1x1x1x8x24xf32> to vector<8x24xf32>
    %cst_424 = arith.constant dense<0.000000e+00> : vector<8x24xf32>
    %580 = tpu.matmul %577, %579, %cst_424 {dimension_numbers = #tpu.dot_dimension_numbers<[1], [0], [0], [1], [0, 0, 1, 1], [], []>} : vector<8x8xf32>, vector<8x24xf32>, vector<8x24xf32> -> vector<8x24xf32>
    %581 = vector.extract_strided_slice %580 {offsets = [0, 0], sizes = [8, 8], strides = [1, 1]} : vector<8x24xf32> to vector<8x8xf32>
    %582 = vector.extract_strided_slice %580 {offsets = [0, 8], sizes = [8, 8], strides = [1, 1]} : vector<8x24xf32> to vector<8x8xf32>
    %583 = vector.extract_strided_slice %580 {offsets = [0, 16], sizes = [8, 8], strides = [1, 1]} : vector<8x24xf32> to vector<8x8xf32>
    %584 = tpu.concatenate %581, %582, %583 in 0 : vector<8x8xf32>, vector<8x8xf32>, vector<8x8xf32> -> vector<24x8xf32>
    %c3_425 = arith.constant 3 : index
    %c0_426 = arith.constant 0 : index
    %c0_427 = arith.constant 0 : index
    %585 = vector.load %arg6[%c3_425, %c0_426, %c0_427] : memref<12x32x96xf32, #tpu.memory_space<vmem>>, vector<1x8x24xf32>
    %586 = vector.shape_cast %585 : vector<1x8x24xf32> to vector<8x24xf32>
    %cst_428 = arith.constant dense<0.000000e+00> : vector<8x8xf32>
    %587 = tpu.matmul %586, %584, %cst_428 {dimension_numbers = #tpu.dot_dimension_numbers<[1], [0], [0], [1], [0, 0, 1, 1], [], []>} : vector<8x24xf32>, vector<24x8xf32>, vector<8x8xf32> -> vector<8x8xf32>
    %c0_429 = arith.constant 0 : index
    %c1_430 = arith.constant 1 : index
    %c7_431 = arith.constant 7 : index
    %c0_432 = arith.constant 0 : index
    %588 = vector.load %arg3[%c0_429, %c1_430, %c7_431, %c0_432] : memref<1x2x14x8xf32, #tpu.memory_space<vmem>>, vector<1x1x1x8xf32>
    %589 = vector.shape_cast %588 : vector<1x1x1x8xf32> to vector<1x8xf32>
    %590 = vector.broadcast %589 : vector<1x8xf32> to vector<8x8xf32>
    %591 = arith.addf %587, %590 : vector<8x8xf32>
    %cst_433 = arith.constant 5.000000e-01 : f32
    %592 = vector.broadcast %cst_433 : f32 to vector<8x8xf32>
    %593 = arith.mulf %577, %592 : vector<8x8xf32>
    %cst_434 = arith.constant 5.000000e-01 : f32
    %594 = vector.broadcast %cst_434 : f32 to vector<8x8xf32>
    %595 = arith.mulf %591, %594 : vector<8x8xf32>
    %596 = arith.addf %593, %595 : vector<8x8xf32>
    %597 = arith.addf %550, %596 : vector<8x8xf32>
    %598 = arith.subf %551, %596 : vector<8x8xf32>
    %599 = arith.subf %597, %457 : vector<8x8xf32>
    %600 = arith.mulf %599, %599 : vector<8x8xf32>
    %cst_435 = arith.constant dense<0.000000e+00> : vector<8xf32>
    %601 = vector.multi_reduction <add>, %600, %cst_435 [0] : vector<8x8xf32> to vector<8xf32>
    %602 = vector.shape_cast %601 : vector<8xf32> to vector<1x8xf32>
    %603 = arith.addf %556, %602 : vector<1x8xf32>
    %cst_436 = arith.constant dense<0.000000e+00> : vector<8x512xf32>
    %604 = tpu.matmul %598, %459, %cst_436 {dimension_numbers = #tpu.dot_dimension_numbers<[1], [0], [0], [1], [0, 0, 1, 1], [], []>} : vector<8x8xf32>, vector<8x512xf32>, vector<8x512xf32> -> vector<8x512xf32>
    %605 = tpu.iota {dimensions = array<i32: 1>} : vector<8x512xi32>
    %cst_437 = arith.constant dense<0xFF800000> : vector<8xf32>
    %606 = vector.multi_reduction <maximumf>, %604, %cst_437 [1] : vector<8x512xf32> to vector<8xf32>
    %607 = vector.shape_cast %606 : vector<8xf32> to vector<8x1xf32>
    %608 = vector.broadcast %607 : vector<8x1xf32> to vector<8x512xf32>
    %609 = arith.cmpf oge, %604, %608 : vector<8x512xf32>
    %c512_i32_438 = arith.constant 512 : i32
    %610 = vector.broadcast %c512_i32_438 : i32 to vector<8x512xi32>
    %611 = arith.select %609, %605, %610 : vector<8x512xi1>, vector<8x512xi32>
    %cst_439 = arith.constant dense<2147483647> : vector<8xi32>
    %612 = vector.multi_reduction <minsi>, %611, %cst_439 [1] : vector<8x512xi32> to vector<8xi32>
    %613 = vector.shape_cast %612 : vector<8xi32> to vector<8x1xi32>
    %614 = vector.broadcast %613 : vector<8x1xi32> to vector<8x512xi32>
    %615 = arith.cmpi eq, %605, %614 : vector<8x512xi32>
    %616 = arith.extui %615 : vector<8x512xi1> to vector<8x512xi32>
    %617 = arith.sitofp %616 : vector<8x512xi32> to vector<8x512xf32>
    %cst_440 = arith.constant dense<0.000000e+00> : vector<8x8xf32>
    %618 = tpu.matmul %617, %461, %cst_440 {dimension_numbers = #tpu.dot_dimension_numbers<[1], [1], [0], [0], [0, 0, 1, 0], [], []>} : vector<8x512xf32>, vector<8x512xf32>, vector<8x8xf32> -> vector<8x8xf32>
    %c0_441 = arith.constant 0 : index
    %c1_442 = arith.constant 1 : index
    %c8_443 = arith.constant 8 : index
    %c0_444 = arith.constant 0 : index
    %c0_445 = arith.constant 0 : index
    %619 = vector.load %arg2[%c0_441, %c1_442, %c8_443, %c0_444, %c0_445] : memref<1x2x14x8x24xf32, #tpu.memory_space<vmem>>, vector<1x1x1x8x24xf32>
    %620 = vector.shape_cast %619 : vector<1x1x1x8x24xf32> to vector<8x24xf32>
    %cst_446 = arith.constant dense<0.000000e+00> : vector<8x24xf32>
    %621 = tpu.matmul %618, %620, %cst_446 {dimension_numbers = #tpu.dot_dimension_numbers<[1], [0], [0], [1], [0, 0, 1, 1], [], []>} : vector<8x8xf32>, vector<8x24xf32>, vector<8x24xf32> -> vector<8x24xf32>
    %622 = vector.extract_strided_slice %621 {offsets = [0, 0], sizes = [8, 8], strides = [1, 1]} : vector<8x24xf32> to vector<8x8xf32>
    %623 = vector.extract_strided_slice %621 {offsets = [0, 8], sizes = [8, 8], strides = [1, 1]} : vector<8x24xf32> to vector<8x8xf32>
    %624 = vector.extract_strided_slice %621 {offsets = [0, 16], sizes = [8, 8], strides = [1, 1]} : vector<8x24xf32> to vector<8x8xf32>
    %625 = tpu.concatenate %622, %623, %624 in 0 : vector<8x8xf32>, vector<8x8xf32>, vector<8x8xf32> -> vector<24x8xf32>
    %c3_447 = arith.constant 3 : index
    %c0_448 = arith.constant 0 : index
    %c0_449 = arith.constant 0 : index
    %626 = vector.load %arg6[%c3_447, %c0_448, %c0_449] : memref<12x32x96xf32, #tpu.memory_space<vmem>>, vector<1x8x24xf32>
    %627 = vector.shape_cast %626 : vector<1x8x24xf32> to vector<8x24xf32>
    %cst_450 = arith.constant dense<0.000000e+00> : vector<8x8xf32>
    %628 = tpu.matmul %627, %625, %cst_450 {dimension_numbers = #tpu.dot_dimension_numbers<[1], [0], [0], [1], [0, 0, 1, 1], [], []>} : vector<8x24xf32>, vector<24x8xf32>, vector<8x8xf32> -> vector<8x8xf32>
    %c0_451 = arith.constant 0 : index
    %c1_452 = arith.constant 1 : index
    %c8_453 = arith.constant 8 : index
    %c0_454 = arith.constant 0 : index
    %629 = vector.load %arg3[%c0_451, %c1_452, %c8_453, %c0_454] : memref<1x2x14x8xf32, #tpu.memory_space<vmem>>, vector<1x1x1x8xf32>
    %630 = vector.shape_cast %629 : vector<1x1x1x8xf32> to vector<1x8xf32>
    %631 = vector.broadcast %630 : vector<1x8xf32> to vector<8x8xf32>
    %632 = arith.addf %628, %631 : vector<8x8xf32>
    %cst_455 = arith.constant 5.000000e-01 : f32
    %633 = vector.broadcast %cst_455 : f32 to vector<8x8xf32>
    %634 = arith.mulf %618, %633 : vector<8x8xf32>
    %cst_456 = arith.constant 5.000000e-01 : f32
    %635 = vector.broadcast %cst_456 : f32 to vector<8x8xf32>
    %636 = arith.mulf %632, %635 : vector<8x8xf32>
    %637 = arith.addf %634, %636 : vector<8x8xf32>
    %638 = arith.addf %597, %637 : vector<8x8xf32>
    %639 = arith.subf %638, %457 : vector<8x8xf32>
    %640 = arith.mulf %639, %639 : vector<8x8xf32>
    %cst_457 = arith.constant dense<0.000000e+00> : vector<8xf32>
    %641 = vector.multi_reduction <add>, %640, %cst_457 [0] : vector<8x8xf32> to vector<8xf32>
    %642 = vector.shape_cast %641 : vector<8xf32> to vector<1x8xf32>
    %643 = arith.addf %603, %642 : vector<1x8xf32>
    %c0_458 = arith.constant 0 : index
    %c1_459 = arith.constant 1 : index
    %c9_460 = arith.constant 9 : index
    %c0_461 = arith.constant 0 : index
    %c0_462 = arith.constant 0 : index
    %644 = vector.load %arg2[%c0_458, %c1_459, %c9_460, %c0_461, %c0_462] : memref<1x2x14x8x24xf32, #tpu.memory_space<vmem>>, vector<1x1x1x8x24xf32>
    %645 = vector.shape_cast %644 : vector<1x1x1x8x24xf32> to vector<8x24xf32>
    %cst_463 = arith.constant dense<0.000000e+00> : vector<8x24xf32>
    %646 = tpu.matmul %638, %645, %cst_463 {dimension_numbers = #tpu.dot_dimension_numbers<[1], [0], [0], [1], [0, 0, 1, 1], [], []>} : vector<8x8xf32>, vector<8x24xf32>, vector<8x24xf32> -> vector<8x24xf32>
    %647 = vector.extract_strided_slice %646 {offsets = [0, 0], sizes = [8, 8], strides = [1, 1]} : vector<8x24xf32> to vector<8x8xf32>
    %648 = vector.extract_strided_slice %646 {offsets = [0, 8], sizes = [8, 8], strides = [1, 1]} : vector<8x24xf32> to vector<8x8xf32>
    %649 = vector.extract_strided_slice %646 {offsets = [0, 16], sizes = [8, 8], strides = [1, 1]} : vector<8x24xf32> to vector<8x8xf32>
    %650 = tpu.concatenate %647, %648, %649 in 0 : vector<8x8xf32>, vector<8x8xf32>, vector<8x8xf32> -> vector<24x8xf32>
    %c3_464 = arith.constant 3 : index
    %c0_465 = arith.constant 0 : index
    %c0_466 = arith.constant 0 : index
    %651 = vector.load %arg6[%c3_464, %c0_465, %c0_466] : memref<12x32x96xf32, #tpu.memory_space<vmem>>, vector<1x8x24xf32>
    %652 = vector.shape_cast %651 : vector<1x8x24xf32> to vector<8x24xf32>
    %cst_467 = arith.constant dense<0.000000e+00> : vector<8x8xf32>
    %653 = tpu.matmul %652, %650, %cst_467 {dimension_numbers = #tpu.dot_dimension_numbers<[1], [0], [0], [1], [0, 0, 1, 1], [], []>} : vector<8x24xf32>, vector<24x8xf32>, vector<8x8xf32> -> vector<8x8xf32>
    %c0_468 = arith.constant 0 : index
    %c1_469 = arith.constant 1 : index
    %c9_470 = arith.constant 9 : index
    %c0_471 = arith.constant 0 : index
    %654 = vector.load %arg3[%c0_468, %c1_469, %c9_470, %c0_471] : memref<1x2x14x8xf32, #tpu.memory_space<vmem>>, vector<1x1x1x8xf32>
    %655 = vector.shape_cast %654 : vector<1x1x1x8xf32> to vector<1x8xf32>
    %656 = vector.broadcast %655 : vector<1x8xf32> to vector<8x8xf32>
    %657 = arith.addf %653, %656 : vector<8x8xf32>
    %c0_472 = arith.constant 0 : index
    %c1_473 = arith.constant 1 : index
    %c10_474 = arith.constant 10 : index
    %c0_475 = arith.constant 0 : index
    %c0_476 = arith.constant 0 : index
    %658 = vector.load %arg2[%c0_472, %c1_473, %c10_474, %c0_475, %c0_476] : memref<1x2x14x8x24xf32, #tpu.memory_space<vmem>>, vector<1x1x1x8x24xf32>
    %659 = vector.shape_cast %658 : vector<1x1x1x8x24xf32> to vector<8x24xf32>
    %cst_477 = arith.constant dense<0.000000e+00> : vector<8x24xf32>
    %660 = tpu.matmul %657, %659, %cst_477 {dimension_numbers = #tpu.dot_dimension_numbers<[1], [0], [0], [1], [0, 0, 1, 1], [], []>} : vector<8x8xf32>, vector<8x24xf32>, vector<8x24xf32> -> vector<8x24xf32>
    %661 = vector.extract_strided_slice %660 {offsets = [0, 0], sizes = [8, 8], strides = [1, 1]} : vector<8x24xf32> to vector<8x8xf32>
    %662 = vector.extract_strided_slice %660 {offsets = [0, 8], sizes = [8, 8], strides = [1, 1]} : vector<8x24xf32> to vector<8x8xf32>
    %663 = vector.extract_strided_slice %660 {offsets = [0, 16], sizes = [8, 8], strides = [1, 1]} : vector<8x24xf32> to vector<8x8xf32>
    %664 = tpu.concatenate %661, %662, %663 in 0 : vector<8x8xf32>, vector<8x8xf32>, vector<8x8xf32> -> vector<24x8xf32>
    %c3_478 = arith.constant 3 : index
    %c0_479 = arith.constant 0 : index
    %c0_480 = arith.constant 0 : index
    %665 = vector.load %arg6[%c3_478, %c0_479, %c0_480] : memref<12x32x96xf32, #tpu.memory_space<vmem>>, vector<1x8x24xf32>
    %666 = vector.shape_cast %665 : vector<1x8x24xf32> to vector<8x24xf32>
    %cst_481 = arith.constant dense<0.000000e+00> : vector<8x8xf32>
    %667 = tpu.matmul %666, %664, %cst_481 {dimension_numbers = #tpu.dot_dimension_numbers<[1], [0], [0], [1], [0, 0, 1, 1], [], []>} : vector<8x24xf32>, vector<24x8xf32>, vector<8x8xf32> -> vector<8x8xf32>
    %c0_482 = arith.constant 0 : index
    %c1_483 = arith.constant 1 : index
    %c10_484 = arith.constant 10 : index
    %c0_485 = arith.constant 0 : index
    %668 = vector.load %arg3[%c0_482, %c1_483, %c10_484, %c0_485] : memref<1x2x14x8xf32, #tpu.memory_space<vmem>>, vector<1x1x1x8xf32>
    %669 = vector.shape_cast %668 : vector<1x1x1x8xf32> to vector<1x8xf32>
    %670 = vector.broadcast %669 : vector<1x8xf32> to vector<8x8xf32>
    %671 = arith.addf %667, %670 : vector<8x8xf32>
    %672 = arith.negf %671 : vector<8x8xf32>
    %673 = math.exp %672 : vector<8x8xf32>
    %cst_486 = arith.constant 1.000000e+00 : f32
    %674 = vector.broadcast %cst_486 : f32 to vector<8x8xf32>
    %675 = arith.addf %674, %673 : vector<8x8xf32>
    %676 = arith.divf %674, %675 : vector<8x8xf32>
    %677 = arith.mulf %671, %676 : vector<8x8xf32>
    %c0_487 = arith.constant 0 : index
    %c1_488 = arith.constant 1 : index
    %c11_489 = arith.constant 11 : index
    %c0_490 = arith.constant 0 : index
    %c0_491 = arith.constant 0 : index
    %678 = vector.load %arg2[%c0_487, %c1_488, %c11_489, %c0_490, %c0_491] : memref<1x2x14x8x24xf32, #tpu.memory_space<vmem>>, vector<1x1x1x8x24xf32>
    %679 = vector.shape_cast %678 : vector<1x1x1x8x24xf32> to vector<8x24xf32>
    %cst_492 = arith.constant dense<0.000000e+00> : vector<8x24xf32>
    %680 = tpu.matmul %677, %679, %cst_492 {dimension_numbers = #tpu.dot_dimension_numbers<[1], [0], [0], [1], [0, 0, 1, 1], [], []>} : vector<8x8xf32>, vector<8x24xf32>, vector<8x24xf32> -> vector<8x24xf32>
    %681 = vector.extract_strided_slice %680 {offsets = [0, 0], sizes = [8, 8], strides = [1, 1]} : vector<8x24xf32> to vector<8x8xf32>
    %682 = vector.extract_strided_slice %680 {offsets = [0, 8], sizes = [8, 8], strides = [1, 1]} : vector<8x24xf32> to vector<8x8xf32>
    %683 = vector.extract_strided_slice %680 {offsets = [0, 16], sizes = [8, 8], strides = [1, 1]} : vector<8x24xf32> to vector<8x8xf32>
    %684 = tpu.concatenate %681, %682, %683 in 0 : vector<8x8xf32>, vector<8x8xf32>, vector<8x8xf32> -> vector<24x8xf32>
    %c4_493 = arith.constant 4 : index
    %c0_494 = arith.constant 0 : index
    %c0_495 = arith.constant 0 : index
    %685 = vector.load %arg6[%c4_493, %c0_494, %c0_495] : memref<12x32x96xf32, #tpu.memory_space<vmem>>, vector<1x16x24xf32>
    %686 = vector.shape_cast %685 : vector<1x16x24xf32> to vector<16x24xf32>
    %cst_496 = arith.constant dense<0.000000e+00> : vector<16x8xf32>
    %687 = tpu.matmul %686, %684, %cst_496 {dimension_numbers = #tpu.dot_dimension_numbers<[1], [0], [0], [1], [0, 0, 1, 1], [], []>} : vector<16x24xf32>, vector<24x8xf32>, vector<16x8xf32> -> vector<16x8xf32>
    %c0_497 = arith.constant 0 : index
    %c1_498 = arith.constant 1 : index
    %c11_499 = arith.constant 11 : index
    %c0_500 = arith.constant 0 : index
    %688 = vector.load %arg3[%c0_497, %c1_498, %c11_499, %c0_500] : memref<1x2x14x8xf32, #tpu.memory_space<vmem>>, vector<1x1x1x8xf32>
    %689 = vector.shape_cast %688 : vector<1x1x1x8xf32> to vector<1x8xf32>
    %690 = vector.broadcast %689 : vector<1x8xf32> to vector<16x8xf32>
    %691 = arith.addf %687, %690 : vector<16x8xf32>
    %692 = arith.negf %691 : vector<16x8xf32>
    %693 = math.exp %692 : vector<16x8xf32>
    %cst_501 = arith.constant 1.000000e+00 : f32
    %694 = vector.broadcast %cst_501 : f32 to vector<16x8xf32>
    %695 = arith.addf %694, %693 : vector<16x8xf32>
    %696 = arith.divf %694, %695 : vector<16x8xf32>
    %697 = arith.mulf %691, %696 : vector<16x8xf32>
    %c0_502 = arith.constant 0 : index
    %c1_503 = arith.constant 1 : index
    %c12_504 = arith.constant 12 : index
    %c0_505 = arith.constant 0 : index
    %c0_506 = arith.constant 0 : index
    %698 = vector.load %arg2[%c0_502, %c1_503, %c12_504, %c0_505, %c0_506] : memref<1x2x14x8x24xf32, #tpu.memory_space<vmem>>, vector<1x1x1x8x24xf32>
    %699 = vector.shape_cast %698 : vector<1x1x1x8x24xf32> to vector<8x24xf32>
    %cst_507 = arith.constant dense<0.000000e+00> : vector<16x24xf32>
    %700 = tpu.matmul %697, %699, %cst_507 {dimension_numbers = #tpu.dot_dimension_numbers<[1], [0], [0], [1], [0, 0, 1, 1], [], []>} : vector<16x8xf32>, vector<8x24xf32>, vector<16x24xf32> -> vector<16x24xf32>
    %701 = vector.extract_strided_slice %700 {offsets = [0, 0], sizes = [16, 8], strides = [1, 1]} : vector<16x24xf32> to vector<16x8xf32>
    %702 = vector.extract_strided_slice %700 {offsets = [0, 8], sizes = [16, 8], strides = [1, 1]} : vector<16x24xf32> to vector<16x8xf32>
    %703 = vector.extract_strided_slice %700 {offsets = [0, 16], sizes = [16, 8], strides = [1, 1]} : vector<16x24xf32> to vector<16x8xf32>
    %704 = tpu.concatenate %701, %702, %703 in 0 : vector<16x8xf32>, vector<16x8xf32>, vector<16x8xf32> -> vector<48x8xf32>
    %c5_508 = arith.constant 5 : index
    %c0_509 = arith.constant 0 : index
    %c0_510 = arith.constant 0 : index
    %705 = vector.load %arg6[%c5_508, %c0_509, %c0_510] : memref<12x32x96xf32, #tpu.memory_space<vmem>>, vector<1x32x48xf32>
    %706 = vector.shape_cast %705 : vector<1x32x48xf32> to vector<32x48xf32>
    %cst_511 = arith.constant dense<0.000000e+00> : vector<32x8xf32>
    %707 = tpu.matmul %706, %704, %cst_511 {dimension_numbers = #tpu.dot_dimension_numbers<[1], [0], [0], [1], [0, 0, 1, 1], [], []>} : vector<32x48xf32>, vector<48x8xf32>, vector<32x8xf32> -> vector<32x8xf32>
    %c0_512 = arith.constant 0 : index
    %c1_513 = arith.constant 1 : index
    %c12_514 = arith.constant 12 : index
    %c0_515 = arith.constant 0 : index
    %708 = vector.load %arg3[%c0_512, %c1_513, %c12_514, %c0_515] : memref<1x2x14x8xf32, #tpu.memory_space<vmem>>, vector<1x1x1x8xf32>
    %709 = vector.shape_cast %708 : vector<1x1x1x8xf32> to vector<1x8xf32>
    %710 = vector.broadcast %709 : vector<1x8xf32> to vector<32x8xf32>
    %711 = arith.addf %707, %710 : vector<32x8xf32>
    %712 = arith.negf %711 : vector<32x8xf32>
    %713 = math.exp %712 : vector<32x8xf32>
    %cst_516 = arith.constant 1.000000e+00 : f32
    %714 = vector.broadcast %cst_516 : f32 to vector<32x8xf32>
    %715 = arith.addf %714, %713 : vector<32x8xf32>
    %716 = arith.divf %714, %715 : vector<32x8xf32>
    %717 = arith.mulf %711, %716 : vector<32x8xf32>
    %c0_517 = arith.constant 0 : index
    %c1_518 = arith.constant 1 : index
    %c13_519 = arith.constant 13 : index
    %c0_520 = arith.constant 0 : index
    %c0_521 = arith.constant 0 : index
    %718 = vector.load %arg2[%c0_517, %c1_518, %c13_519, %c0_520, %c0_521] : memref<1x2x14x8x24xf32, #tpu.memory_space<vmem>>, vector<1x1x1x8x24xf32>
    %719 = vector.shape_cast %718 : vector<1x1x1x8x24xf32> to vector<8x24xf32>
    %cst_522 = arith.constant dense<0.000000e+00> : vector<32x24xf32>
    %720 = tpu.matmul %717, %719, %cst_522 {dimension_numbers = #tpu.dot_dimension_numbers<[1], [0], [0], [1], [0, 0, 1, 1], [], []>} : vector<32x8xf32>, vector<8x24xf32>, vector<32x24xf32> -> vector<32x24xf32>
    %721 = vector.extract_strided_slice %720 {offsets = [0, 0], sizes = [32, 8], strides = [1, 1]} : vector<32x24xf32> to vector<32x8xf32>
    %722 = vector.extract_strided_slice %720 {offsets = [0, 8], sizes = [32, 8], strides = [1, 1]} : vector<32x24xf32> to vector<32x8xf32>
    %723 = vector.extract_strided_slice %720 {offsets = [0, 16], sizes = [32, 8], strides = [1, 1]} : vector<32x24xf32> to vector<32x8xf32>
    %724 = tpu.concatenate %721, %722, %723 in 0 : vector<32x8xf32>, vector<32x8xf32>, vector<32x8xf32> -> vector<96x8xf32>
    %c0_523 = arith.constant 0 : index
    %c0_524 = arith.constant 0 : index
    %c0_525 = arith.constant 0 : index
    %725 = vector.load %arg6[%c0_523, %c0_524, %c0_525] : memref<12x32x96xf32, #tpu.memory_space<vmem>>, vector<1x32x96xf32>
    %726 = vector.shape_cast %725 : vector<1x32x96xf32> to vector<32x96xf32>
    %cst_526 = arith.constant dense<0.000000e+00> : vector<32x8xf32>
    %727 = tpu.matmul %726, %724, %cst_526 {dimension_numbers = #tpu.dot_dimension_numbers<[1], [0], [0], [1], [0, 0, 1, 1], [], []>} : vector<32x96xf32>, vector<96x8xf32>, vector<32x8xf32> -> vector<32x8xf32>
    %c0_527 = arith.constant 0 : index
    %c1_528 = arith.constant 1 : index
    %c13_529 = arith.constant 13 : index
    %c0_530 = arith.constant 0 : index
    %728 = vector.load %arg3[%c0_527, %c1_528, %c13_529, %c0_530] : memref<1x2x14x8xf32, #tpu.memory_space<vmem>>, vector<1x1x1x8xf32>
    %729 = vector.shape_cast %728 : vector<1x1x1x8xf32> to vector<1x8xf32>
    %730 = vector.broadcast %729 : vector<1x8xf32> to vector<32x8xf32>
    %731 = arith.addf %727, %730 : vector<32x8xf32>
    %c0_531 = arith.constant 0 : index
    %c1_532 = arith.constant 1 : index
    %c0_533 = arith.constant 0 : index
    %c0_534 = arith.constant 0 : index
    %732 = vector.load %arg7[%c0_531, %c1_532, %c0_533, %c0_534] : memref<1x2x32x8xf32, #tpu.memory_space<vmem>>, vector<1x1x32x8xf32>
    %733 = vector.shape_cast %732 : vector<1x1x32x8xf32> to vector<32x8xf32>
    %734 = vector.shape_cast %731 : vector<32x8xf32> to vector<1x1x32x8xf32>
    tpu.vector_store %arg7[%c0_531, %c1_532, %c0_533, %c0_534], %734 {strides = array<i32>} : memref<1x2x32x8xf32, #tpu.memory_space<vmem>>, vector<1x1x32x8xf32>,
    %c0_535 = arith.constant 0 : index
    %c0_536 = arith.constant 0 : index
    %c0_537 = arith.constant 0 : index
    %735 = vector.load %arg8[%c0_535, %c0_536, %c0_537] : memref<1x1x8xf32, #tpu.memory_space<vmem>>, vector<1x1x8xf32>
    %736 = vector.shape_cast %735 : vector<1x1x8xf32> to vector<1x8xf32>
    %737 = vector.shape_cast %643 : vector<1x8xf32> to vector<1x1x8xf32>
    tpu.vector_store %arg8[%c0_535, %c0_536, %c0_537], %737 {strides = array<i32>} : memref<1x1x8xf32, #tpu.memory_space<vmem>>, vector<1x1x8xf32>,
    return
  }
  func.func @transform_0(%arg0: i32) -> (i32, i32, i32, i32) {
    %c0_i32 = arith.constant 0 : i32
    %c0_i32_0 = arith.constant 0 : i32
    %c0_i32_1 = arith.constant 0 : i32
    %c0_i32_2 = arith.constant 0 : i32
    return %arg0, %c0_i32, %c0_i32_0, %c0_i32_1 : i32, i32, i32, i32
  }
  func.func @transform_1(%arg0: i32) -> (i32, i32, i32, i32, i32) {
    %c0_i32 = arith.constant 0 : i32
    %c0_i32_0 = arith.constant 0 : i32
    %c0_i32_1 = arith.constant 0 : i32
    %c0_i32_2 = arith.constant 0 : i32
    %c0_i32_3 = arith.constant 0 : i32
    return %arg0, %c0_i32, %c0_i32_0, %c0_i32_1, %c0_i32_2 : i32, i32, i32, i32, i32
  }
  func.func @transform_2(%arg0: i32) -> (i32, i32, i32, i32) {
    %c0_i32 = arith.constant 0 : i32
    %c0_i32_0 = arith.constant 0 : i32
    %c0_i32_1 = arith.constant 0 : i32
    %c0_i32_2 = arith.constant 0 : i32
    return %arg0, %c0_i32, %c0_i32_0, %c0_i32_1 : i32, i32, i32, i32
  }
  func.func @transform_3(%arg0: i32) -> (i32, i32, i32, i32) {
    %c0_i32 = arith.constant 0 : i32
    %c0_i32_0 = arith.constant 0 : i32
    %c0_i32_1 = arith.constant 0 : i32
    %c0_i32_2 = arith.constant 0 : i32
    return %arg0, %c0_i32, %c0_i32_0, %c0_i32_1 : i32, i32, i32, i32
  }
  func.func @transform_4(%arg0: i32) -> (i32, i32, i32, i32) {
    %c0_i32 = arith.constant 0 : i32
    %c0_i32_0 = arith.constant 0 : i32
    %c0_i32_1 = arith.constant 0 : i32
    %c0_i32_2 = arith.constant 0 : i32
    return %arg0, %c0_i32, %c0_i32_0, %c0_i32_1 : i32, i32, i32, i32
  }
  func.func @transform_5(%arg0: i32) -> (i32, i32, i32) {
    %c0_i32 = arith.constant 0 : i32
    %c0_i32_0 = arith.constant 0 : i32
    %c0_i32_1 = arith.constant 0 : i32
    %c0_i32_2 = arith.constant 0 : i32
    return %c0_i32, %c0_i32_0, %c0_i32_1 : i32, i32, i32
  }
  func.func @transform_6(%arg0: i32) -> (i32, i32, i32, i32) {
    %c0_i32 = arith.constant 0 : i32
    %c0_i32_0 = arith.constant 0 : i32
    %c0_i32_1 = arith.constant 0 : i32
    %c0_i32_2 = arith.constant 0 : i32
    return %arg0, %c0_i32, %c0_i32_0, %c0_i32_1 : i32, i32, i32, i32
  }
  func.func @transform_7(%arg0: i32) -> (i32, i32, i32) {
    %c0_i32 = arith.constant 0 : i32
    %c0_i32_0 = arith.constant 0 : i32
    %c0_i32_1 = arith.constant 0 : i32
    return %arg0, %c0_i32, %c0_i32_0 : i32, i32, i32
  }
}

</mosaic_0001>

<bundles_post_ra>
// kernel: squeeze.3
= control target key start
LH: loop header
LB: loop body
LE: loop exit
PB: predicated region body
PF: predicated region fallthrough
CT: control target
= control target key end

     0   :  { %vm12_vm0 = vcmask 130048   ;;  %s89_s0 = inlined_call_operand.vmem [shape: f32[2,2,32], index: 0, kind: input, shape index: {}]   ;;  %s90_s1 = inlined_call_operand.vmem [shape: f32[4,2,16], index: 1, kind: output, shape index: {}]  }
   0x1   :  { %v55_v0 = vld [vmem:[%s89_s0 + $0x2] sm:$0x3]  ;;  %v9_v1 = vld [vmem:[%s89_s0] sm:$0x3]  ;;  %s60_s0 = smov 112  }
   0x2   :  { %8 = vst [vmem:[#allocation1 + $0x8] sm:$0x3] %v55_v0  ;;  %10 = vst [vmem:[#allocation1] sm:$0x3] %v9_v1 }
   0x9   :  { %v19_v2 = vld.sshfl [vmem:[#allocation1] sm:$0xff pattern:$0x99999810]  }
   0xa   :  { %v11_v3 = vld [vmem:[#allocation1] sm:$0x3]   ;;  %20 = vrot.lane.b32.xlu0 %v19_v2, %s60_s0  ;;  %v15_v4 = vld [vmem:[#allocation1 + $0x8] sm:$0x3]  }
   0xb   :  { %13 = vst.msk [vmem:[#allocation0] ss:$8 sm:$0x3] %vm12_vm0, %v11_v3   ;;  %18 = vst.msk [vmem:[#allocation0 + $0x10] ss:$8 sm:$0x3] %vm12_vm0, %v15_v4  }
  0x7c   :  { %v21_v5 = vpop.permute.xlu0 %20  }
  0x7d   :  { %24 = vst.msk [vmem:[#allocation0 + $0x1] ss:$8 sm:$0xf] %vm12_vm0, %v21_v5  }
  0x84   :  { %v29_v6 = vld [vmem:[#allocation0] sm:$0x3]  ;;  %v34_v7 = vld [vmem:[#allocation0 + $0x8] sm:$0x3]  ;;  %v40_v8 = vld [vmem:[#allocation0 + $0x10] sm:$0x3] }
  0x85   :  { %32 = vst [vmem:[%s90_s1] sm:$0x3] %v29_v6  ;;  %56 = vst [vmem:[%s90_s1 + $0x2] sm:$0x3] %v34_v7  ;;  %v47_v9 = vld [vmem:[#allocation0 + $0x18] sm:$0x3] }
  0x86   :  { %57 = vst [vmem:[%s90_s1 + $0x4] sm:$0x3] %v40_v8  ;;  %58 = vst [vmem:[%s90_s1 + $0x6] sm:$0x3] %v47_v9 }

// kernel: msat_forward.1
= control target key start
LH: loop header
LB: loop body
LE: loop exit
PB: predicated region body
PF: predicated region fallthrough
CT: control target
= control target key end

     0   :  { %13 = vsyncpa [#allocation3], 0  ;;  %s11217_s24 = smov 0   ;;  %s12256_s0 = inlined_call_operand.vmem [shape: f32[2,2,32,8], index: 0, kind: input, shape index: {}]   ;;  %s12257_s1 = inlined_call_operand.vmem [shape: f32[2,2,14,8,24], index: 1, kind: input, shape index: {}]   ;;  %s12258_s2 = inlined_call_operand.vmem [shape: f32[2,2,14,8], index: 2, kind: input, shape index: {}]   ;;  %s12259_s3 = inlined_call_operand.vmem [shape: f32[2,2,8,512], index: 3, kind: input, shape index: {}]   ;;  %s12260_s4 = inlined_call_operand.vmem [shape: f32[2,2,8,512], index: 4, kind: input, shape index: {}]   ;;  %s12261_s5 = inlined_call_operand.hbm [shape: f32[12,32,96], index: 5, kind: input, shape index: {}]   ;;  %s12262_s6 = inlined_call_operand.vmem [shape: f32[2,2,32,8], index: 6, kind: output, shape index: {0}]   ;;  %s12263_s7 = inlined_call_operand.vmem [shape: f32[2,1,8], index: 7, kind: output, shape index: {1}]  }
   0x1 LB: > { %s9605_s25 = sadd.s32 4294967295, %s11167_s24   ;;  %p9607_p0 = scmp.ge.s32.totalorder %s11167_s24, 1  ;;  %s11167_s24 = sphi %s11217_s24, %s19_s24  }
   0x2   : > { %p227_p1 = scmp.lt.s32.totalorder %s11167_s24, 3  ;;  %s11169_s26 = smov [#allocation2]  }
   0x3   : > { %s239_s27 = sshll.u32 %s11169_s26, 4  ;;  %p10968_p3 = scmp.eq.s32.totalorder %s9605_s25, 0  ;;  %s240_s27 = int_to_ptr.vmem [resolvable:$true] %s239_s27 }
   0x4   : > { %p11225_p2 = pnand %p9607_p0, %p227_p1  ;;  %s11142_s29 = scalar_lea.vmem %s240_s27, 6144 }
   0x5   : > { %p11143_p7 = scmp.ne.s32.totalorder %s240_s27, %s11142_s29  ;;  %p11150_p10 = scmp.lt.s32.totalorder %s240_s27, %s240_s27 }
   0x6   : > { %p10964_p4 = pneg %p11225_p2  ;;  %p11151_p11 = scmp.lt.s32.totalorder %s11142_s29, %s11142_s29 }
   0x8   : > { %p10965_p5 = pnand %p10968_p3, %p10964_p4  ;;  %p11152_p12 = por %p11151_p11, %p11150_p10 }
   0xa   : > { %p11133_p6 = pneg %p10965_p5 }
   0xc   : > { %p11145_p8 = pnand %p11143_p7, %p11133_p6 }
   0xe   : > { %p11146_p9 = pneg %p11145_p8 }
  0x10   : > { %p11153_p13 = pnand %p11152_p12, %p11146_p9 }
  0x12   : > { %11156 = shalt.err (!%p11153_p13)
}
  0x13   : > { %s11170_s30 = smov 128   ;;  %s11171_s8 = smov 8  }
  0x14   : > { %10967 = dma.hbm_to_vmem [thread:$0]  (!%p10965_p5), %s12261_s5, 6144, %s240_s27, [#allocation3], %s11170_s30, %s11170_s30, %s11171_s8  }
  0x15   : > { %295 = sbr.rel (%p11225_p2) target bundleno = 23178 (0x5a8a), region = 44 }
  0x1a   : > { %11162 = dma.done.wait (%p10968_p3), [#allocation3], 6144  }
  0x1b   : > { %11164 = vsyncadd (%p10968_p3), [#allocation3], 4294961152  ;;  %p350_p0 = scmp.lt.s32.totalorder %s9605_s25, 1  ;;  %vm388_vm0 = vcmask 64512   ;;  %s11172_s19 = smov 112   ;;  %v11272_v9 = vld [vmem:[#allocation2] sm:$0xff] }
  0x1c   : > { %s11173_s20 = smov 120   ;;  %vm523_vm1 = vcmask 785408   ;;  %v11277_v18 = vld [vmem:[#allocation2 + $0x8] sm:$0xff]  ;;  %v11279_v19 = vld [vmem:[#allocation2 + $0x10] sm:$0xff]  ;;  %v11285_v20 = vld [vmem:[#allocation2 + $0x18] sm:$0xff]  ;;  %vm11175_vm2 = vmmov 0  }
  0x1d   : > { %s12279_s25 = smov (!%p350_p0, %s9605_s25), 1  ;;  %vm1228_vm3 = vcmask 392192   ;;  %vm1391_vm4 = vcmask 195584   ;;  %vm1698_vm5 = vcmask 1041408  }
  0x1e   : > { %s10959_s11 = smul.u32 224, %s12279_s25  ;;  %s11243_s12 = sshll.u32 %s12279_s25, 6 }
  0x1f   : > { %s11249_s15 = scalar_lea.vmem %s12256_s0, %s11243_s12  ;;  %s9955_s21 = sshll.u32 %s12279_s25, 5 }
  0x20   : > { %s11254_s18 = scalar_lea.vmem %s12257_s1, %s10959_s11  ;;  %v383_v1 = vld [vmem:[%s11249_s15] sm:$0xff]  ;;  %v384_v2 = vld [vmem:[%s11249_s15 + $0x8] sm:$0xff]  ;;  %v385_v3 = vld [vmem:[%s11249_s15 + $0x10] sm:$0xff]  ;;  %s11294_s26 = scalar_lea.vmem %s12258_s2, %s9955_s21 }
  0x21   : > { %v387_v0 = vld [vmem:[%s11254_s18] sm:$0xff]  ;;  %10293 = vmatprep.mubr.msk.f32.mxu1 %vm388_vm0, %v383_v1  ;;  %v386_v4 = vld [vmem:[%s11249_s15 + $0x18] sm:$0xff]  ;;  %v9636_v21 = vld [vmem:[%s11254_s18 + $0x8] sm:$0xff]  ;;  %s11375_s29 = scalar_lea.vmem %s12259_s3, %s11243_s12  ;;  %s11428_s9 = scalar_lea.vmem %s12260_s4, %s11243_s12 }
  0x22   : > { %10291 = vmatprep.subr.mxu1 %v387_v0  ;;  %10329 = vmatprep.subr.mxu0 %v9636_v21  ;;  %v9627_v22 = vld [vmem:[%s11294_s26] ss:$0 sm:$0xff]  ;;  %v9650_v63 = vld [vmem:[%s11254_s18 + $0x10] sm:$0xff]  ;;  %s11816_s13 = scalar_lea.vmem %s12262_s6, %s11243_s12 }
  0x23   : > { %10292 = vmatpush3.msra.mxu1 %v387_v0  ;;  %10330 = vmatpush3.msra.mxu0 %v9636_v21  ;;  %v9641_v0 = vld [vmem:[%s11294_s26 + $0x1] ss:$0 sm:$0xff] }
  0x24   : > { %10294 = vmatmul.mubr.msk.f32.vlgmr.msra.gmra.mxu1 %vm388_vm0, %v384_v2 }
  0x25   : > { %10296 = vmatprep.mubr.msk.f32.mxu1 %vm388_vm0, %v385_v3 }
  0x28   : > { %10297 = vmatmul.mubr.msk.f32.gmra.mxu1 %vm388_vm0, %v386_v4 }
  0x29   : > { %10323 = vmatprep.mubr.msk.f32.mxu1 %vm523_vm1, %v11272_v9 }
  0xe4   : > { %v10295_v5 = vpop.f32.mrf.mxu1 }
  0xe5   : > { %504 = vrot.lane.b32.xlu1 %v10295_v5, %s11172_s19 }
  0xe6   : > { %v467_v6 = vpop.f32.mrf.mxu1 }
  0xe8   : > { %v10298_v7 = vpop.f32.mrf.mxu1 }
  0xe9   : > { %502 = vrot.lane.b32.xlu1 %v467_v6, %s11172_s19  ;;  %508 = vrot.lane.b32.xlu0 %v10298_v7, %s11172_s19 }
  0xea   : > { %v477_v8 = vpop.f32.mrf.mxu1 }
  0xed   : > { %494 = vrot.lane.b32.xlu1 %v477_v8, %s11173_s20  ;;  %506 = vrot.lane.b32.xlu0 %v477_v8, %s11172_s19 }
  0xf1   : > { %490 = vrot.lane.b32.xlu1 %v467_v6, %s11173_s20  ;;  %496 = vrot.lane.b32.xlu0 %v10298_v7, %s11173_s20 }
  0xf5   : > { %492 = vrot.lane.b32.xlu0 %v10295_v5, %s11173_s20 }
 0x157   : > { %v505_v10 = vpop.permute.xlu1 %504 }
 0x15b   : > { %v509_v11 = vpop.permute.xlu0 %508  ;;  %v503_v12 = vpop.permute.xlu1 %502 }
 0x15c   : > { %10299 = vmatprep.subr.mxu1 %v509_v11 }
 0x15d   : > { %10300 = vmatpush3.msra.mxu1 %v509_v11 }
 0x15f   : > { %v507_v13 = vpop.permute.xlu0 %506  ;;  %v495_v15 = vpop.permute.xlu1 %494 }
 0x160   : > { %10301 = vmatprep.subr.mxu1 %v507_v13 }
 0x161   : > { %10302 = vmatpush3.msra.mxu1 %v507_v13 }
 0x162   : > { %10303 = vmatprep.subr.mxu1 %v505_v10 }
 0x163   : > { %10304 = vmatpush3.msra.mxu1 %v505_v10  ;;  %v497_v14 = vpop.permute.xlu0 %496  ;;  %v491_v17 = vpop.permute.xlu1 %490 }
 0x164   : > { %10305 = vmatprep.subr.mxu1 %v503_v12 }
 0x165   : > { %10306 = vmatpush3.msra.mxu1 %v503_v12 }
 0x166   : > { %10307 = vmatprep.subr.mxu1 %v497_v14 }
 0x167   : > { %10308 = vmatpush3.msra.mxu1 %v497_v14  ;;  %v493_v16 = vpop.permute.xlu0 %492 }
 0x168   : > { %10309 = vmatprep.subr.mxu1 %v495_v15 }
 0x169   : > { %10310 = vmatpush3.msra.mxu1 %v495_v15 }
 0x16a   : > { %10311 = vmatprep.subr.mxu1 %v493_v16 }
 0x16b   : > { %10312 = vmatpush3.msra.mxu1 %v493_v16 }
 0x16c   : > { %10313 = vmatprep.subr.mxu1 %v491_v17 }
 0x16d   : > { %10314 = vmatpush3.msra.mxu1 %v491_v17 }
 0x16e   : > { %10315 = vmatprep.subr.mxu1 %v10298_v7 }
 0x16f   : > { %10316 = vmatpush3.msra.mxu1 %v10298_v7 }
 0x170   : > { %10317 = vmatprep.subr.mxu1 %v477_v8 }
 0x171   : > { %10318 = vmatpush3.msra.mxu1 %v477_v8 }
 0x172   : > { %10319 = vmatprep.subr.mxu1 %v10295_v5 }
 0x173   : > { %10320 = vmatpush3.msra.mxu1 %v10295_v5 }
 0x174   : > { %10321 = vmatprep.subr.mxu1 %v467_v6 }
 0x175   : > { %10322 = vmatpush3.msra.mxu1 %v467_v6 }
 0x176   : > { %10324 = vmatmul.mubr.msk.f32.vlgmr.msra.gmra.mxu1 %vm523_vm1, %v11277_v18  ;;  %10367 = vmatprep.subr.mxu1 %v9650_v63 }
 0x177   : > { %10326 = vmatprep.mubr.msk.f32.mxu1 %vm523_vm1, %v11279_v19  ;;  %10368 = vmatpush3.msra.mxu1 %v9650_v63 }
 0x17a   : > { %10327 = vmatmul.mubr.msk.f32.gmra.mxu1 %vm523_vm1, %v11285_v20 }
 0x236   : > { %v10325_v23 = vpop.f32.mrf.mxu1 }
 0x237   : > { %v608_v24 = vadd.f32 %v10325_v23, %v9627_v22 }
 0x238   : > { %v602_v25 = vpop.f32.mrf.mxu1 }
 0x239   : > { %v9633_v26 = vmul.f32 -1.442695, %v608_v24  ;;  %v603_v27 = vadd.f32 %v9627_v22, %v602_v25 }
 0x23a   : > { %v10328_v28 = vpop.f32.mrf.mxu1 }
 0x23b   : > { %10986 = vpow2.f32 %v9633_v26  ;;  %v9632_v29 = vmul.f32 -1.442695, %v603_v27  ;;  %v618_v30 = vadd.f32 %v10328_v28, %v9627_v22 }
 0x23c   : > { %v612_v31 = vpop.f32.mrf.mxu1 }
 0x23d   : > { %10988 = vpow2.f32 %v9632_v29  ;;  %v9635_v32 = vmul.f32 -1.442695, %v618_v30  ;;  %v613_v33 = vadd.f32 %v9627_v22, %v612_v31 }
 0x23f   : > { %10990 = vpow2.f32 %v9635_v32  ;;  %v9634_v34 = vmul.f32 -1.442695, %v613_v33 }
 0x241   : > { %10992 = vpow2.f32 %v9634_v34 }
 0x248   : > { %v10987_v35 = vpop.eup %10986 }
 0x249   : > { %v634_v36 = vadd.f32 1.0, %v10987_v35 }
 0x24a   : > { %v10989_v37 = vpop.eup %10988 }
 0x24b   : > { %v633_v38 = vadd.f32 1.0, %v10989_v37  ;;  %10994 = vrcp.f32 %v634_v36 }
 0x24c   : > { %v10991_v39 = vpop.eup %10990 }
 0x24d   : > { %10996 = vrcp.f32 %v633_v38  ;;  %v636_v40 = vadd.f32 1.0, %v10991_v39 }
 0x24e   : > { %v10993_v41 = vpop.eup %10992 }
 0x24f   : > { %v635_v42 = vadd.f32 1.0, %v10993_v41  ;;  %10998 = vrcp.f32 %v636_v40 }
 0x251   : > { %11000 = vrcp.f32 %v635_v42  ;;  %v1023_v42 = vld [vmem:[#allocation2 + $0x28] sm:$0xff] }
 0x258   : > { %v10995_v43 = vpop.eup %10994 }
 0x259   : > { %v646_v46 = vmul.f32 %v10995_v43, %v608_v24  ;;  %v9660_v43 = vld [vmem:[%s11254_s18 + $0x18] sm:$0xff] }
 0x25a   : > { %v10997_v44 = vpop.eup %10996 }
 0x25b   : > { %v645_v45 = vmul.f32 %v10997_v44, %v603_v27  ;;  %v9655_v44 = vld [vmem:[%s11294_s26 + $0x2] ss:$0 sm:$0xff] }
 0x25c   : > { %v10999_v47 = vpop.eup %10998 }
 0x25d   : > { %10331 = vmatprep.mubr.msk.f32.mxu0 %vm388_vm0, %v645_v45  ;;  %v648_v50 = vmul.f32 %v10999_v47, %v618_v30 }
 0x25e   : > { %v11001_v48 = vpop.eup %11000  ;;  %10332 = vmatmul.mubr.msk.f32.vlgmr.msra.gmra.mxu0 %vm388_vm0, %v646_v46 }
 0x25f   : > { %v647_v49 = vmul.f32 %v11001_v48, %v613_v33  ;;  %v1022_v33 = vld [vmem:[#allocation2 + $0x20] sm:$0xff] }
 0x261   : > { %10334 = vmatprep.mubr.msk.f32.mxu0 %vm388_vm0, %v647_v49 }
 0x262   : > { %10335 = vmatmul.mubr.msk.f32.gmra.mxu0 %vm388_vm0, %v648_v50 }
 0x263   : > { %10361 = vmatprep.mubr.msk.f32.mxu0 %vm523_vm1, %v11272_v9 }
 0x31e   : > { %v10333_v51 = vpop.f32.mrf.mxu0 }
 0x320   : > { %v729_v52 = vpop.f32.mrf.mxu0 }
 0x322   : > { %v10336_v53 = vpop.f32.mrf.mxu0 }
 0x323   : > { %770 = vrot.lane.b32.xlu0 %v10336_v53, %s11172_s19 }
 0x324   : > { %v739_v54 = vpop.f32.mrf.mxu0 }
 0x325   : > { %768 = vrot.lane.b32.xlu1 %v739_v54, %s11172_s19 }
 0x327   : > { %766 = vrot.lane.b32.xlu0 %v10333_v51, %s11172_s19 }
 0x329   : > { %764 = vrot.lane.b32.xlu1 %v729_v52, %s11172_s19 }
 0x32b   : > { %758 = vrot.lane.b32.xlu0 %v10336_v53, %s11173_s20 }
 0x32d   : > { %756 = vrot.lane.b32.xlu1 %v739_v54, %s11173_s20 }
 0x32f   : > { %754 = vrot.lane.b32.xlu0 %v10333_v51, %s11173_s20 }
 0x331   : > { %752 = vrot.lane.b32.xlu1 %v729_v52, %s11173_s20 }
 0x395   : > { %v771_v55 = vpop.permute.xlu0 %770 }
 0x396   : > { %10337 = vmatprep.subr.mxu0 %v771_v55 }
 0x397   : > { %10338 = vmatpush3.msra.mxu0 %v771_v55  ;;  %v769_v56 = vpop.permute.xlu1 %768 }
 0x398   : > { %10339 = vmatprep.subr.mxu0 %v769_v56 }
 0x399   : > { %v767_v57 = vpop.permute.xlu0 %766  ;;  %10340 = vmatpush3.msra.mxu0 %v769_v56 }
 0x39a   : > { %10341 = vmatprep.subr.mxu0 %v767_v57 }
 0x39b   : > { %10342 = vmatpush3.msra.mxu0 %v767_v57  ;;  %v765_v58 = vpop.permute.xlu1 %764 }
 0x39c   : > { %10343 = vmatprep.subr.mxu0 %v765_v58 }
 0x39d   : > { %v759_v59 = vpop.permute.xlu0 %758  ;;  %10344 = vmatpush3.msra.mxu0 %v765_v58 }
 0x39e   : > { %10345 = vmatprep.subr.mxu0 %v759_v59 }
 0x39f   : > { %10346 = vmatpush3.msra.mxu0 %v759_v59  ;;  %v757_v60 = vpop.permute.xlu1 %756  ;;  %v11174_v59 = vmov 0.0  }
 0x3a0   : > { %10347 = vmatprep.subr.mxu0 %v757_v60 }
 0x3a1   : > { %v755_v61 = vpop.permute.xlu0 %754  ;;  %10348 = vmatpush3.msra.mxu0 %v757_v60 }
 0x3a2   : > { %10349 = vmatprep.subr.mxu0 %v755_v61 }
 0x3a3   : > { %10350 = vmatpush3.msra.mxu0 %v755_v61  ;;  %v753_v62 = vpop.permute.xlu1 %752 }
 0x3a4   : > { %10351 = vmatprep.subr.mxu0 %v753_v62 }
 0x3a5   : > { %10352 = vmatpush3.msra.mxu0 %v753_v62 }
 0x3a6   : > { %10353 = vmatprep.subr.mxu0 %v10336_v53 }
 0x3a7   : > { %10354 = vmatpush3.msra.mxu0 %v10336_v53 }
 0x3a8   : > { %10355 = vmatprep.subr.mxu0 %v739_v54 }
 0x3a9   : > { %10356 = vmatpush3.msra.mxu0 %v739_v54 }
 0x3aa   : > { %10357 = vmatprep.subr.mxu0 %v10333_v51 }
 0x3ab   : > { %10358 = vmatpush3.msra.mxu0 %v10333_v51 }
 0x3ac   : > { %10359 = vmatprep.subr.mxu0 %v729_v52 }
 0x3ad   : > { %10360 = vmatpush3.msra.mxu0 %v729_v52 }
 0x3ae   : > { %10362 = vmatmul.mubr.msk.f32.vlgmr.msra.gmra.mxu0 %vm523_vm1, %v11277_v18  ;;  %10407 = vmatprep.subr.mxu0 %v11174_v59 }
 0x3af   : > { %10364 = vmatprep.mubr.msk.f32.mxu0 %vm523_vm1, %v11279_v19 }
 0x3b2   : > { %10365 = vmatmul.mubr.msk.f32.gmra.mxu0 %vm523_vm1, %v11285_v20 }
 0x3b3   : > { %10419 = vmatprep.mubr.msk.f32.mxu0 %vm11175_vm2, %v11174_v59 }
 0x46e   : > { %v10363_v1 = vpop.f32.mrf.mxu0 }
 0x46f   : > { %v853_v2 = vadd.f32 %v10363_v1, %v9641_v0 }
 0x470   : > { %v847_v3 = vpop.f32.mrf.mxu0 }
 0x471   : > { %v9647_v4 = vmul.f32 -1.442695, %v853_v2  ;;  %v848_v5 = vadd.f32 %v9641_v0, %v847_v3  ;;  %v9665_v3 = vld [vmem:[%s11254_s18 + $0x20] sm:$0xff] }
 0x472   : > { %v10366_v6 = vpop.f32.mrf.mxu0 }
 0x473   : > { %11002 = vpow2.f32 %v9647_v4  ;;  %v9646_v7 = vmul.f32 -1.442695, %v848_v5  ;;  %v863_v8 = vadd.f32 %v10366_v6, %v9641_v0  ;;  %v9663_v4 = vld [vmem:[%s11294_s26 + $0x3] ss:$0 sm:$0xff] }
 0x474   : > { %v857_v9 = vpop.f32.mrf.mxu0 }
 0x475   : > { %11004 = vpow2.f32 %v9646_v7  ;;  %v9649_v10 = vmul.f32 -1.442695, %v863_v8  ;;  %v858_v11 = vadd.f32 %v9641_v0, %v857_v9 }
 0x477   : > { %11006 = vpow2.f32 %v9649_v10  ;;  %v9648_v12 = vmul.f32 -1.442695, %v858_v11 }
 0x479   : > { %11008 = vpow2.f32 %v9648_v12  ;;  %v11365_v12 = vld [vmem:[#allocation2 + $0x60] sm:$0xff] }
 0x480   : > { %v11003_v13 = vpop.eup %11002 }
 0x481   : > { %v879_v14 = vadd.f32 1.0, %v11003_v13  ;;  %v11378_v13 = vld [vmem:[%s11375_s29 + $0x18] sm:$0xff] }
 0x482   : > { %v11005_v15 = vpop.eup %11004 }
 0x483   : > { %v878_v16 = vadd.f32 1.0, %v11005_v15  ;;  %11010 = vrcp.f32 %v879_v14  ;;  %v9667_v14 = vld [vmem:[%s11294_s26 + $0x4] ss:$0 sm:$0xff] }
 0x484   : > { %v11007_v17 = vpop.eup %11006 }
 0x485   : > { %11012 = vrcp.f32 %v878_v16  ;;  %v881_v18 = vadd.f32 1.0, %v11007_v17  ;;  %v1474_v17 = vld [vmem:[#allocation2 + $0xc0] sm:$0x3] }
 0x486   : > { %v11009_v19 = vpop.eup %11008 }
 0x487   : > { %v880_v20 = vadd.f32 1.0, %v11009_v19  ;;  %11014 = vrcp.f32 %v881_v18  ;;  %v11385_v18 = vld [vmem:[%s11375_s29 + $0x8] sm:$0xff] }
 0x489   : > { %11016 = vrcp.f32 %v880_v20  ;;  %v11392_v20 = vld [vmem:[%s11375_s29] sm:$0xff] }
 0x490   : > { %v11011_v21 = vpop.eup %11010 }
 0x491   : > { %v891_v24 = vmul.f32 %v11011_v21, %v853_v2  ;;  %v1222_v2 = vld [vmem:[#allocation2 + $0x40] sm:$0xff]  ;;  %v11395_v21 = vld [vmem:[%s11375_s29 + $0x10] sm:$0xff] }
 0x492   : > { %v11013_v22 = vpop.eup %11012 }
 0x493   : > { %v890_v23 = vmul.f32 %v11013_v22, %v848_v5 }
 0x494   : > { %v11015_v25 = vpop.eup %11014 }
 0x495   : > { %10369 = vmatprep.mubr.msk.f32.mxu1 %vm388_vm0, %v890_v23  ;;  %v893_v28 = vmul.f32 %v11015_v25, %v863_v8 }
 0x496   : > { %v11017_v26 = vpop.eup %11016  ;;  %10370 = vmatmul.mubr.msk.f32.vlgmr.msra.gmra.mxu1 %vm388_vm0, %v891_v24 }
 0x497   : > { %v892_v27 = vmul.f32 %v11017_v26, %v858_v11 }
 0x499   : > { %10372 = vmatprep.mubr.msk.f32.mxu1 %vm388_vm0, %v892_v27 }
 0x49a   : > { %10373 = vmatmul.mubr.msk.f32.gmra.mxu1 %vm388_vm0, %v893_v28 }
 0x49b   : > { %10399 = vmatprep.mubr.msk.f32.mxu1 %vm523_vm1, %v1022_v33 }
 0x556   : > { %v10371_v29 = vpop.f32.mrf.mxu1 }
 0x558   : > { %v974_v30 = vpop.f32.mrf.mxu1 }
 0x55a   : > { %v10374_v31 = vpop.f32.mrf.mxu1 }
 0x55b   : > { %1015 = vrot.lane.b32.xlu0 %v10374_v31, %s11172_s19 }
 0x55c   : > { %v984_v32 = vpop.f32.mrf.mxu1 }
 0x55d   : > { %1013 = vrot.lane.b32.xlu1 %v984_v32, %s11172_s19 }
 0x55f   : > { %1011 = vrot.lane.b32.xlu0 %v10371_v29, %s11172_s19 }
 0x561   : > { %1009 = vrot.lane.b32.xlu1 %v974_v30, %s11172_s19 }
 0x563   : > { %1003 = vrot.lane.b32.xlu0 %v10374_v31, %s11173_s20 }
 0x565   : > { %1001 = vrot.lane.b32.xlu1 %v984_v32, %s11173_s20 }
 0x567   : > { %999 = vrot.lane.b32.xlu0 %v10371_v29, %s11173_s20 }
 0x569   : > { %997 = vrot.lane.b32.xlu1 %v974_v30, %s11173_s20 }
 0x5cd   : > { %v1016_v34 = vpop.permute.xlu0 %1015 }
 0x5ce   : > { %10375 = vmatprep.subr.mxu1 %v1016_v34 }
 0x5cf   : > { %10376 = vmatpush3.msra.mxu1 %v1016_v34  ;;  %v1014_v35 = vpop.permute.xlu1 %1013 }
 0x5d0   : > { %10377 = vmatprep.subr.mxu1 %v1014_v35 }
 0x5d1   : > { %v1012_v36 = vpop.permute.xlu0 %1011  ;;  %10378 = vmatpush3.msra.mxu1 %v1014_v35  ;;  %v1693_v35 = vlaneseq }
 0x5d2   : > { %10379 = vmatprep.subr.mxu1 %v1012_v36 }
 0x5d3   : > { %10380 = vmatpush3.msra.mxu1 %v1012_v36  ;;  %v1010_v37 = vpop.permute.xlu1 %1009  ;;  %v11405_v36 = vand.u32 127, %v1693_v35 }
 0x5d4   : > { %10381 = vmatprep.subr.mxu1 %v1010_v37 }
 0x5d5   : > { %v1004_v38 = vpop.permute.xlu0 %1003  ;;  %10382 = vmatpush3.msra.mxu1 %v1010_v37  ;;  %v11408_v37 = vadd.s32 128, %v11405_v36 }
 0x5d6   : > { %10383 = vmatprep.subr.mxu1 %v1004_v38 }
 0x5d7   : > { %10384 = vmatpush3.msra.mxu1 %v1004_v38  ;;  %v1002_v39 = vpop.permute.xlu1 %1001  ;;  %v11411_v38 = vadd.s32 256, %v11405_v36 }
 0x5d8   : > { %10385 = vmatprep.subr.mxu1 %v1002_v39 }
 0x5d9   : > { %v1000_v40 = vpop.permute.xlu0 %999  ;;  %10386 = vmatpush3.msra.mxu1 %v1002_v39  ;;  %v11414_v39 = vadd.s32 384, %v11405_v36 }
 0x5da   : > { %10387 = vmatprep.subr.mxu1 %v1000_v40 }
 0x5db   : > { %10388 = vmatpush3.msra.mxu1 %v1000_v40  ;;  %v998_v41 = vpop.permute.xlu1 %997 }
 0x5dc   : > { %10389 = vmatprep.subr.mxu1 %v998_v41 }
 0x5dd   : > { %10390 = vmatpush3.msra.mxu1 %v998_v41 }
 0x5de   : > { %10391 = vmatprep.subr.mxu1 %v10374_v31 }
 0x5df   : > { %10392 = vmatpush3.msra.mxu1 %v10374_v31 }
 0x5e0   : > { %10393 = vmatprep.subr.mxu1 %v984_v32 }
 0x5e1   : > { %10394 = vmatpush3.msra.mxu1 %v984_v32 }
 0x5e2   : > { %10395 = vmatprep.subr.mxu1 %v10371_v29 }
 0x5e3   : > { %10396 = vmatpush3.msra.mxu1 %v10371_v29 }
 0x5e4   : > { %10397 = vmatprep.subr.mxu1 %v974_v30 }
 0x5e5   : > { %10398 = vmatpush3.msra.mxu1 %v974_v30 }
 0x5e6   : > { %10400 = vmatmul.mubr.msk.f32.vlgmr.msra.gmra.mxu1 %vm523_vm1, %v1023_v42  ;;  %10402 = vmatprep.subr.mxu1 %v9660_v43 }
 0x5e7   : > { %10403 = vmatpush3.msra.mxu1 %v9660_v43 }
 0x5e8   : > { %10427 = vmatprep.subr.mxu1 %v11174_v59 }
 0x6a6   : > { %v10401_v45 = vpop.f32.mrf.mxu1 }
 0x6a7   : > { %v1107_v46 = vadd.f32 %v10401_v45, %v9655_v44 }
 0x6a8   : > { %v1101_v47 = vpop.f32.mrf.mxu1 }
 0x6a9   : > { %v9659_v48 = vmul.f32 -1.442695, %v1107_v46  ;;  %v1102_v49 = vadd.f32 %v9655_v44, %v1101_v47 }
 0x6ab   : > { %11018 = vpow2.f32 %v9659_v48  ;;  %v9658_v50 = vmul.f32 -1.442695, %v1102_v49 }
 0x6ad   : > { %11020 = vpow2.f32 %v9658_v50 }
 0x6b8   : > { %v11019_v51 = vpop.eup %11018 }
 0x6b9   : > { %v1117_v52 = vadd.f32 1.0, %v11019_v51 }
 0x6ba   : > { %v11021_v53 = vpop.eup %11020 }
 0x6bb   : > { %v1116_v54 = vadd.f32 1.0, %v11021_v53  ;;  %11022 = vrcp.f32 %v1117_v52 }
 0x6bd   : > { %11024 = vrcp.f32 %v1116_v54 }
 0x6c8   : > { %v11023_v55 = vpop.eup %11022 }
 0x6c9   : > { %v1123_v58 = vmul.f32 %v11023_v55, %v1107_v46 }
 0x6ca   : > { %v11025_v56 = vpop.eup %11024 }
 0x6cb   : > { %v1122_v57 = vmul.f32 %v11025_v56, %v1102_v49 }
 0x6cd   : > { %10404 = vmatprep.mubr.msk.f32.mxu1 %vm388_vm0, %v1122_v57 }
 0x6ce   : > { %10405 = vmatmul.mubr.msk.f32.vlgmr.msra.gmra.mxu1 %vm388_vm0, %v1123_v58  ;;  %v11431_v58 = vld [vmem:[%s11428_s9 + $0x8] sm:$0xff] }
 0x6cf   : > { %10433 = vmatprep.mubr.msk.f32.mxu1 %vm11175_vm2, %v11174_v59 }
 0x78e   : > { %v10406_v60 = vpop.f32.mrf.mxu1 }
 0x78f   : > { %1217 = vrot.lane.b32.xlu0 %v10406_v60, %s11172_s19 }
 0x790   : > { %v1198_v61 = vpop.f32.mrf.mxu1 }
 0x791   : > { %1215 = vrot.lane.b32.xlu1 %v1198_v61, %s11172_s19 }
 0x793   : > { %1211 = vrot.lane.b32.xlu0 %v10406_v60, %s11173_s20 }
 0x795   : > { %1209 = vrot.lane.b32.xlu1 %v1198_v61, %s11173_s20 }
 0x801   : > { %v1218_v62 = vpop.permute.xlu0 %1217 }
 0x802   : > { %10408 = vmatpush3.msra.mxu0 %v1218_v62  ;;  %v11442_v62 = vld [vmem:[%s11428_s9 + $0x10] sm:$0xff] }
 0x803   : > { %10409 = vmatprep.subr.mxu0 %v11174_v59  ;;  %v1216_v63 = vpop.permute.xlu1 %1215 }
 0x804   : > { %10410 = vmatpush3.msra.mxu0 %v1216_v63 }
 0x805   : > { %v1212_v0 = vpop.permute.xlu0 %1211  ;;  %10411 = vmatprep.subr.mxu0 %v11174_v59 }
 0x806   : > { %10412 = vmatpush3.msra.mxu0 %v1212_v0 }
 0x807   : > { %10413 = vmatprep.subr.mxu0 %v11174_v59  ;;  %v1210_v1 = vpop.permute.xlu1 %1209 }
 0x808   : > { %10414 = vmatpush3.msra.mxu0 %v1210_v1 }
 0x809   : > { %10415 = vmatprep.subr.mxu0 %v11174_v59 }
 0x80a   : > { %10416 = vmatpush3.msra.mxu0 %v10406_v60  ;;  %v11434_v60 = vld [vmem:[%s11428_s9 + $0x18] sm:$0xff] }
 0x80b   : > { %10417 = vmatprep.subr.mxu0 %v11174_v59 }
 0x80c   : > { %10418 = vmatpush3.msra.mxu0 %v1198_v61  ;;  %v11439_v61 = vld [vmem:[%s11428_s9] sm:$0xff] }
 0x80d   : > { %10420 = vmatmul.mubr.msk.f32.vlgmr.msra.gmra.mxu0 %vm1228_vm3, %v1222_v2  ;;  %10422 = vmatprep.subr.mxu0 %v11174_v59 }
 0x80e   : > { %10424 = vmatprep.mubr.msk.f32.mxu0 %vm11175_vm2, %v11174_v59  ;;  %10423 = vmatpush3.msra.mxu0 %v9665_v3 }
 0x80f   : > { %10436 = vmatprep.subr.mxu0 %v11174_v59 }
 0x8cd   : > { %v1298_v5 = vpop.f32.mrf.mxu0 }
 0x8ce   : > { %v1299_v6 = vadd.f32 %v9663_v4, %v1298_v5  ;;  %v11176_v4 = vmov 1.0  }
 0x8cf   : > { %v10421_v7 = vpop.f32.mrf.mxu0 }
 0x8d0   : > { %10425 = vmatmul.mubr.msk.f32.vlgmr.msra.gmra.mxu0 %vm388_vm0, %v1299_v6 }
 0x8d1   : > { %10438 = vmatprep.mubr.msk.f32.mxu0 %vm11175_vm2, %v11174_v59 }
 0x990   : > { %v1373_v8 = vpop.f32.mrf.mxu0 }
 0x991   : > { %1378 = vrot.lane.b32.xlu1 %v1373_v8, %s11173_s20  ;;  %1381 = vrot.lane.b32.xlu0 %v1373_v8, %s11172_s19 }
 0x992   : > { %v10426_v9 = vpop.f32.mrf.mxu0 }
 0xa03   : > { %v1382_v10 = vpop.permute.xlu0 %1381  ;;  %v1379_v11 = vpop.permute.xlu1 %1378 }
 0xa04   : > { %10428 = vmatpush3.msra.mxu1 %v1382_v10 }
 0xa05   : > { %10429 = vmatprep.subr.mxu1 %v11174_v59 }
 0xa06   : > { %10430 = vmatpush3.msra.mxu1 %v1379_v11  ;;  %v9682_v11 = vld [vmem:[%s11254_s18 + $0x28] sm:$0xff] }
 0xa07   : > { %10431 = vmatprep.subr.mxu1 %v11174_v59 }
 0xa08   : > { %10432 = vmatpush3.msra.mxu1 %v1373_v8  ;;  %v1893_v8 = vld [vmem:[#allocation2 + $0x120] sm:$0xff] }
 0xa09   : > { %10434 = vmatmul.mubr.msk.f32.vlgmr.msra.gmra.mxu1 %vm1391_vm4, %v11365_v12  ;;  %1652 = vmatprep.subr.mxu1 %v11378_v13 }
 0xa0a   : > { %1686 = vmatprep.mubr.f32.mxu1 %v11174_v59  ;;  %1653 = vmatpush1.msra.mxu1 %v11395_v21 }
 0xa0b   : > { %1852 = vmatprep.subr.mxu1 %v11434_v60 }
 0xac9   : > { %v1461_v15 = vpop.f32.mrf.mxu1 }
 0xaca   : > { %v11382_v16 = vadd.f32 %v9667_v14, %v1461_v15 }
 0xacb   : > { %v10435_v19 = vpop.f32.mrf.mxu1 }
 0xacc   : > { %10437 = vmatpush3.msra.mxu0 %v11382_v16 }
 0xacd   : > { %10439 = vmatmul.mubr.msk.f32.vlgmr.msra.gmra.mxu0 %vm388_vm0, %v1474_v17  ;;  %1581 = vmatprep.subr.mxu0 %v11385_v18 }
 0xace   : > { %1615 = vmatprep.mubr.f32.mxu0 %v11174_v59  ;;  %1582 = vmatpush1.msra.mxu0 %v11392_v20 }
 0xacf   : > { %1782 = vmatprep.subr.mxu0 %v11431_v58 }
 0xb8d   : > { %v1544_v22 = vpop.f32.mrf.mxu0 }
 0xb8e   : > { %9670 = vmatmul.mubr.msk.f32.vlgmr.msra.gmra.mxu0 %vm388_vm0, %v1544_v22  ;;  %9671 = vmatmul.mubr.msk.f32.vlgmr.msra.gmra.mxu1 %vm388_vm0, %v1544_v22 }
 0xb8f   : > { %v10440_v23 = vpop.f32.mrf.mxu0  ;;  %1783 = vmatpush1.xpose.msra.mxu0 %v11439_v61  ;;  %1853 = vmatpush1.xpose.msra.mxu1 %v11442_v62 }
 0xb90   : > { %10441 = vmatprep.subr.mxu0 %v11174_v59  ;;  %10446 = vmatprep.subr.mxu1 %v11174_v59 }
 0xc4e   : > { %v1617_v24 = vpop.f32.mrf.mxu0  ;;  %v1688_v25 = vpop.f32.mrf.mxu1 }
 0xc4f   : > { %v1699_v28 = vsel %vm1698_vm5, %v1617_v24, -inf  ;;  %v1701_v29 = vsel %vm1698_vm5, %v1688_v25, -inf }
 0xc50   : > { %v1619_v26 = vpop.f32.mrf.mxu0  ;;  %v1690_v27 = vpop.f32.mrf.mxu1 }
 0xc51   : > { %v1700_v30 = vsel %vm1698_vm5, %v1619_v26, -inf  ;;  %v1702_v31 = vsel %vm1698_vm5, %v1690_v27, -inf }
 0xc52   : > { %v1703_v32 = vmax.f32 %v1699_v28, %v1700_v30  ;;  %v1704_v33 = vmax.f32 %v1701_v29, %v1702_v31 }
 0xc54   : > { %v1705_v34 = vmax.f32 %v1703_v32, %v1704_v33  ;;  %v2144_v32 = vld [vmem:[#allocation2 + $0xe0] sm:$0xf] }
 0xc56   : > { %1706 = vmax.xlane.f32.xlu0 %v1705_v34 }
 0xcdf   : > { %v1707_v40 = vpop.xlane.xlu0 %1706 }
 0xce0   : > { %vm1708_vm6 = vcmp.ge.f32.partialorder %v1617_v24, %v1707_v40  ;;  %vm1709_vm7 = vcmp.ge.f32.partialorder %v1619_v26, %v1707_v40  ;;  %vm1710_vm8 = vcmp.ge.f32.partialorder %v1688_v25, %v1707_v40  ;;  %vm1711_vm9 = vcmp.ge.f32.partialorder %v1690_v27, %v1707_v40  ;;  %v9684_v24 = vld [vmem:[%s11294_s26 + $0x5] ss:$0 sm:$0xff] }
 0xce1   : > { %v1712_v41 = vsel %vm1708_vm6, %v11405_v36, 512  ;;  %v1713_v42 = vsel %vm1709_vm7, %v11408_v37, 512  ;;  %v1714_v43 = vsel %vm1710_vm8, %v11411_v38, 512  ;;  %v1715_v44 = vsel %vm1711_vm9, %v11414_v39, 512 }
 0xce2   : > { %v1716_v45 = vsel %vm1698_vm5, %v1712_v41, 2147483647  ;;  %v1717_v46 = vsel %vm1698_vm5, %v1713_v42, 2147483647  ;;  %v1718_v47 = vsel %vm1698_vm5, %v1714_v43, 2147483647 }
 0xce3   : > { %v1719_v48 = vsel %vm1698_vm5, %v1715_v44, 2147483647  ;;  %vm1720_vm10 = vcmp.lt.s32.totalorder %v1716_v45, %v1717_v46  ;;  %vm1894_vm8 = vcmask 15360   ;;  %vm2363_vm9 = vcmask 1043456  }
 0xce4   : > { %v1721_v49 = vsel %vm1720_vm10, %v1716_v45, %v1717_v46  ;;  %vm1722_vm11 = vcmp.lt.s32.totalorder %v1718_v47, %v1719_v48 }
 0xce5   : > { %v1723_v50 = vsel %vm1722_vm11, %v1718_v47, %v1719_v48 }
 0xce6   : > { %vm1724_vm12 = vcmp.lt.s32.totalorder %v1721_v49, %v1723_v50 }
 0xce7   : > { %v1725_v51 = vsel %vm1724_vm12, %v1721_v49, %v1723_v50 }
 0xce8   : > { %v1727_v52 = vshra.s32 %v1725_v51, 16  ;;  %v1726_v54 = vand.u32 65535, %v1725_v51 }
 0xcea   : > { %v1729_v53 = vcvt.s32.f32 %v1727_v52  ;;  %v1728_v56 = vcvt.s32.f32 %v1726_v54 }
 0xcec   : > { %1730 = vmin.xlane.f32.xlu1 %v1729_v53 }
 0xd75   : > { %v1731_v55 = vpop.xlane.xlu1 %1730 }
 0xd76   : > { %vm1732_vm13 = vcmp.eq.f32.partialorder %v1729_v53, %v1731_v55  ;;  %v1737_v63 = vcvt.f32.s32 %v1731_v55 }
 0xd77   : > { %v1733_v57 = vsel %vm1732_vm13, %v1728_v56, inf }
 0xd78   : > { %1734 = vmin.xlane.f32.xlu0 %v1733_v57  ;;  %v1738_v1 = vshll.u32 %v1737_v63, 16 }
 0xe01   : > { %v1735_v0 = vpop.xlane.xlu0 %1734 }
 0xe02   : > { %v1736_v2 = vcvt.f32.s32 %v1735_v0 }
 0xe04   : > { %v1739_v3 = vadd.s32 %v1738_v1, %v1736_v2 }
 0xe06   : > { %vm1741_vm14 = vcmp.eq.s32.totalorder %v11408_v37, %v1739_v3  ;;  %vm1743_vm15 = vcmp.eq.s32.totalorder %v11414_v39, %v1739_v3  ;;  %vm1740_vm6 = vcmp.eq.s32.totalorder %v11405_v36, %v1739_v3  ;;  %vm1742_vm7 = vcmp.eq.s32.totalorder %v11411_v38, %v1739_v3 }
 0xe07   : > { %9676 = vmatprep.mubr.msk.f32.mxu0 %vm1741_vm14, %v11176_v4  ;;  %9678 = vmatprep.mubr.msk.f32.mxu1 %vm1743_vm15, %v11176_v4 }
 0xe08   : > { %9677 = vmatmul.mubr.msk.f32.vlgmr.msra.gmra.mxu0 %vm1740_vm6, %v11176_v4  ;;  %9679 = vmatmul.mubr.msk.f32.vlgmr.msra.gmra.mxu1 %vm1742_vm7, %v11176_v4 }
 0xe09   : > { %10443 = vmatprep.mubr.msk.f32.mxu0 %vm11175_vm2, %v11174_v59  ;;  %10448 = vmatprep.mubr.msk.f32.mxu1 %vm11175_vm2, %v11174_v59 }
 0xe0a   : > { %10447 = vmatpush3.msra.mxu1 %v9682_v11 }
 0xe0b   : > { %10460 = vmatprep.subr.mxu1 %v11174_v59 }
 0xec8   : > { %v1818_v5 = vpop.f32.mrf.mxu0  ;;  %v1888_v6 = vpop.f32.mrf.mxu1 }
 0xec9   : > { %v1889_v7 = vadd.f32 %v1888_v6, %v1818_v5 }
 0xeca   : > { %v1820_v9 = vpop.f32.mrf.mxu0  ;;  %v1890_v10 = vpop.f32.mrf.mxu1 }
 0xecb   : > { %10442 = vmatpush3.msk.msra.mxu0 %vm1698_vm5, %v1889_v7 }
 0xecc   : > { %10444 = vmatmul.mubr.msk.f32.vlgmr.msra.gmra.mxu0 %vm1894_vm8, %v1893_v8  ;;  %10451 = vmatprep.subr.mxu0 %v11174_v59 }
 0xecd   : > { %10457 = vmatprep.mubr.msk.f32.mxu0 %vm11175_vm2, %v11174_v59 }
 0xf8c   : > { %v1967_v14 = vpop.f32.mrf.mxu0 }
 0xf8d   : > { %10449 = vmatmul.mubr.msk.f32.vlgmr.msra.gmra.mxu1 %vm388_vm0, %v1967_v14  ;;  %v2128_v28 = vmul.f32 0.5, %v1967_v14 }
 0xf8e   : > { %v10445_v15 = vpop.f32.mrf.mxu0  ;;  %10462 = vmatprep.mubr.msk.f32.mxu1 %vm11175_vm2, %v11174_v59 }
0x104d   : > { %v2042_v17 = vpop.f32.mrf.mxu1 }
0x104e   : > { %2047 = vrot.lane.b32.xlu1 %v2042_v17, %s11173_s20  ;;  %2050 = vrot.lane.b32.xlu0 %v2042_v17, %s11172_s19 }
0x104f   : > { %v10450_v19 = vpop.f32.mrf.mxu1 }
0x10c0   : > { %v2051_v22 = vpop.permute.xlu0 %2050  ;;  %v2048_v23 = vpop.permute.xlu1 %2047 }
0x10c1   : > { %10452 = vmatpush3.msra.mxu0 %v2051_v22 }
0x10c2   : > { %10453 = vmatprep.subr.mxu0 %v11174_v59 }
0x10c3   : > { %10454 = vmatpush3.msra.mxu0 %v2048_v23 }
0x10c4   : > { %10455 = vmatprep.subr.mxu0 %v11174_v59 }
0x10c5   : > { %10456 = vmatpush3.msra.mxu0 %v2042_v17 }
0x10c6   : > { %10458 = vmatmul.mubr.msk.f32.vlgmr.msra.gmra.mxu0 %vm1391_vm4, %v11365_v12  ;;  %2322 = vmatprep.subr.mxu0 %v11378_v13 }
0x10c7   : > { %2323 = vmatpush1.msra.mxu0 %v11395_v21  ;;  %2356 = vmatprep.mubr.f32.mxu0 %v11174_v59 }
0x10c8   : > { %2517 = vmatprep.subr.mxu0 %v11434_v60 }
0x1186   : > { %v2124_v25 = vpop.f32.mrf.mxu0 }
0x1187   : > { %v2125_v26 = vadd.f32 %v9684_v24, %v2124_v25  ;;  %v2558_v24 = vld [vmem:[#allocation2 + $0x140] sm:$0xff] }
0x1188   : > { %v10459_v27 = vpop.f32.mrf.mxu0 }
0x1189   : > { %v2129_v29 = vmul.f32 0.5, %v2125_v26  ;;  %v9699_v27 = vld [vmem:[%s11254_s18 + $0x30] sm:$0xff] }
0x118b   : > { %v11481_v30 = vadd.f32 %v2129_v29, %v2128_v28 }
0x118d   : > { %v11485_v31 = vsub.f32 %v11382_v16, %v11481_v30 }
0x118f   : > { %10461 = vmatpush3.msra.mxu1 %v11485_v31 }
0x1190   : > { %10463 = vmatmul.mubr.msk.f32.vlgmr.msra.gmra.mxu1 %vm388_vm0, %v2144_v32  ;;  %2251 = vmatprep.subr.mxu1 %v11385_v18 }
0x1191   : > { %2252 = vmatpush1.msra.mxu1 %v11392_v20  ;;  %2285 = vmatprep.mubr.f32.mxu1 %v11174_v59 }
0x1192   : > { %2447 = vmatprep.subr.mxu1 %v11431_v58 }
0x1250   : > { %v2214_v33 = vpop.f32.mrf.mxu1 }
0x1251   : > { %9687 = vmatmul.mubr.msk.f32.vlgmr.msra.gmra.mxu1 %vm388_vm0, %v2214_v33  ;;  %9688 = vmatmul.mubr.msk.f32.vlgmr.msra.gmra.mxu0 %vm388_vm0, %v2214_v33 }
0x1252   : > { %v10464_v34 = vpop.f32.mrf.mxu1  ;;  %2448 = vmatpush1.xpose.msra.mxu1 %v11439_v61  ;;  %2518 = vmatpush1.xpose.msra.mxu0 %v11442_v62 }
0x1253   : > { %10465 = vmatprep.subr.mxu1 %v11174_v59  ;;  %10470 = vmatprep.subr.mxu0 %v11174_v59 }
0x1311   : > { %v2287_v35 = vpop.f32.mrf.mxu1  ;;  %v2358_v40 = vpop.f32.mrf.mxu0 }
0x1312   : > { %v2364_v43 = vsel %vm2363_vm9, %v2287_v35, -inf  ;;  %v2366_v44 = vsel %vm2363_vm9, %v2358_v40, -inf }
0x1313   : > { %v2289_v41 = vpop.f32.mrf.mxu1  ;;  %v2360_v42 = vpop.f32.mrf.mxu0 }
0x1314   : > { %v2365_v45 = vsel %vm2363_vm9, %v2289_v41, -inf  ;;  %v2367_v46 = vsel %vm2363_vm9, %v2360_v42, -inf }
0x1315   : > { %v2368_v47 = vmax.f32 %v2364_v43, %v2365_v45  ;;  %v2369_v48 = vmax.f32 %v2366_v44, %v2367_v46 }
0x1317   : > { %v2370_v49 = vmax.f32 %v2368_v47, %v2369_v48  ;;  %v2809_v48 = vld [vmem:[#allocation2 + $0x100] sm:$0x3f] }
0x1319   : > { %2371 = vmax.xlane.f32.xlu1 %v2370_v49 }
0x13a2   : > { %v2372_v50 = vpop.xlane.xlu1 %2371 }
0x13a3   : > { %vm2373_vm10 = vcmp.ge.f32.partialorder %v2287_v35, %v2372_v50  ;;  %vm2374_vm11 = vcmp.ge.f32.partialorder %v2289_v41, %v2372_v50  ;;  %vm2375_vm12 = vcmp.ge.f32.partialorder %v2358_v40, %v2372_v50  ;;  %vm2376_vm13 = vcmp.ge.f32.partialorder %v2360_v42, %v2372_v50  ;;  %v9701_v40 = vld [vmem:[%s11294_s26 + $0x6] ss:$0 sm:$0xff] }
0x13a4   : > { %v2377_v51 = vsel %vm2373_vm10, %v11405_v36, 512  ;;  %v2378_v52 = vsel %vm2374_vm11, %v11408_v37, 512  ;;  %v2379_v53 = vsel %vm2375_vm12, %v11411_v38, 512  ;;  %v2380_v54 = vsel %vm2376_vm13, %v11414_v39, 512 }
0x13a5   : > { %v2381_v55 = vsel %vm2363_vm9, %v2377_v51, 2147483647  ;;  %v2382_v56 = vsel %vm2363_vm9, %v2378_v52, 2147483647  ;;  %v2383_v57 = vsel %vm2363_vm9, %v2379_v53, 2147483647 }
0x13a6   : > { %v2384_v63 = vsel %vm2363_vm9, %v2380_v54, 2147483647  ;;  %vm2385_vm14 = vcmp.lt.s32.totalorder %v2381_v55, %v2382_v56 }
0x13a7   : > { %v2386_v0 = vsel %vm2385_vm14, %v2381_v55, %v2382_v56  ;;  %vm2387_vm15 = vcmp.lt.s32.totalorder %v2383_v57, %v2384_v63  ;;  %vm12264_vm14 = vcmask 31744  }
0x13a8   : > { %v2388_v1 = vsel %vm2387_vm15, %v2383_v57, %v2384_v63  ;;  %vm12266_vm15 = vcmask 1045504  }
0x13a9   : > { %vm2389_vm6 = vcmp.lt.s32.totalorder %v2386_v0, %v2388_v1 }
0x13aa   : > { %v2390_v2 = vsel %vm2389_vm6, %v2386_v0, %v2388_v1 }
0x13ab   : > { %v2392_v3 = vshra.s32 %v2390_v2, 16  ;;  %v2391_v6 = vand.u32 65535, %v2390_v2 }
0x13ad   : > { %v2394_v5 = vcvt.s32.f32 %v2392_v3  ;;  %v2393_v8 = vcvt.s32.f32 %v2391_v6 }
0x13af   : > { %2395 = vmin.xlane.f32.xlu0 %v2394_v5 }
0x1438   : > { %v2396_v7 = vpop.xlane.xlu0 %2395 }
0x1439   : > { %vm2397_vm7 = vcmp.eq.f32.partialorder %v2394_v5, %v2396_v7  ;;  %v2402_v10 = vcvt.f32.s32 %v2396_v7 }
0x143a   : > { %v2398_v9 = vsel %vm2397_vm7, %v2393_v8, inf }
0x143b   : > { %2399 = vmin.xlane.f32.xlu0 %v2398_v9  ;;  %v2403_v14 = vshll.u32 %v2402_v10, 16 }
0x14c4   : > { %v2400_v11 = vpop.xlane.xlu0 %2399 }
0x14c5   : > { %v2401_v15 = vcvt.f32.s32 %v2400_v11 }
0x14c7   : > { %v2404_v17 = vadd.s32 %v2403_v14, %v2401_v15 }
0x14c9   : > { %vm2406_vm10 = vcmp.eq.s32.totalorder %v11408_v37, %v2404_v17  ;;  %vm2408_vm11 = vcmp.eq.s32.totalorder %v11414_v39, %v2404_v17  ;;  %vm2405_vm12 = vcmp.eq.s32.totalorder %v11405_v36, %v2404_v17  ;;  %vm2407_vm13 = vcmp.eq.s32.totalorder %v11411_v38, %v2404_v17 }
0x14ca   : > { %9693 = vmatprep.mubr.msk.f32.mxu1 %vm2406_vm10, %v11176_v4  ;;  %9695 = vmatprep.mubr.msk.f32.mxu0 %vm2408_vm11, %v11176_v4 }
0x14cb   : > { %9694 = vmatmul.mubr.msk.f32.vlgmr.msra.gmra.mxu1 %vm2405_vm12, %v11176_v4  ;;  %9696 = vmatmul.mubr.msk.f32.vlgmr.msra.gmra.mxu0 %vm2407_vm13, %v11176_v4 }
0x14cc   : > { %10467 = vmatprep.mubr.msk.f32.mxu1 %vm11175_vm2, %v11174_v59  ;;  %10472 = vmatprep.mubr.msk.f32.mxu0 %vm11175_vm2, %v11174_v59 }
0x14cd   : > { %10471 = vmatpush3.msra.mxu0 %v9699_v27 }
0x14ce   : > { %10484 = vmatprep.subr.mxu0 %v11174_v59 }
0x158b   : > { %v2483_v19 = vpop.f32.mrf.mxu1  ;;  %v2553_v22 = vpop.f32.mrf.mxu0 }
0x158c   : > { %v2554_v23 = vadd.f32 %v2553_v22, %v2483_v19 }
0x158d   : > { %v2485_v25 = vpop.f32.mrf.mxu1  ;;  %v2555_v26 = vpop.f32.mrf.mxu0 }
0x158e   : > { %10466 = vmatpush3.msk.msra.mxu1 %vm2363_vm9, %v2554_v23 }
0x158f   : > { %10468 = vmatmul.mubr.msk.f32.vlgmr.msra.gmra.mxu1 %vm12264_vm14, %v2558_v24  ;;  %10475 = vmatprep.subr.mxu1 %v11174_v59 }
0x1590   : > { %10481 = vmatprep.mubr.msk.f32.mxu1 %vm11175_vm2, %v11174_v59 }
0x164f   : > { %v2632_v28 = vpop.f32.mrf.mxu1 }
0x1650   : > { %10473 = vmatmul.mubr.msk.f32.vlgmr.msra.gmra.mxu0 %vm388_vm0, %v2632_v28  ;;  %v2793_v44 = vmul.f32 0.5, %v2632_v28 }
0x1651   : > { %v10469_v29 = vpop.f32.mrf.mxu1  ;;  %10486 = vmatprep.mubr.msk.f32.mxu0 %vm11175_vm2, %v11174_v59 }
0x1710   : > { %v2707_v32 = vpop.f32.mrf.mxu0 }
0x1711   : > { %2712 = vrot.lane.b32.xlu0 %v2707_v32, %s11173_s20  ;;  %2715 = vrot.lane.b32.xlu1 %v2707_v32, %s11172_s19 }
0x1712   : > { %v10474_v33 = vpop.f32.mrf.mxu0 }
0x1783   : > { %v2716_v34 = vpop.permute.xlu1 %2715  ;;  %v2713_v35 = vpop.permute.xlu0 %2712 }
0x1784   : > { %10476 = vmatpush3.msra.mxu1 %v2716_v34 }
0x1785   : > { %10477 = vmatprep.subr.mxu1 %v11174_v59 }
0x1786   : > { %10478 = vmatpush3.msra.mxu1 %v2713_v35 }
0x1787   : > { %10479 = vmatprep.subr.mxu1 %v11174_v59 }
0x1788   : > { %10480 = vmatpush3.msra.mxu1 %v2707_v32 }
0x1789   : > { %10482 = vmatmul.mubr.msk.f32.vlgmr.msra.gmra.mxu1 %vm1391_vm4, %v11365_v12  ;;  %2987 = vmatprep.subr.mxu1 %v11378_v13 }
0x178a   : > { %2988 = vmatpush1.msra.mxu1 %v11395_v21  ;;  %3021 = vmatprep.mubr.f32.mxu1 %v11174_v59 }
0x178b   : > { %3182 = vmatprep.subr.mxu1 %v11434_v60 }
0x1849   : > { %v2789_v41 = vpop.f32.mrf.mxu1 }
0x184a   : > { %v2790_v42 = vadd.f32 %v9701_v40, %v2789_v41  ;;  %v3223_v41 = vld [vmem:[#allocation2 + $0x160] sm:$0xff] }
0x184b   : > { %v10483_v43 = vpop.f32.mrf.mxu1 }
0x184c   : > { %v2794_v45 = vmul.f32 0.5, %v2790_v42 }
0x184e   : > { %v11544_v46 = vadd.f32 %v2794_v45, %v2793_v44  ;;  %v9716_v44 = vld [vmem:[%s11254_s18 + $0x38] sm:$0xff] }
0x1850   : > { %v11548_v47 = vsub.f32 %v11485_v31, %v11544_v46 }
0x1852   : > { %10485 = vmatpush3.msra.mxu0 %v11548_v47 }
0x1853   : > { %10487 = vmatmul.mubr.msk.f32.vlgmr.msra.gmra.mxu0 %vm388_vm0, %v2809_v48  ;;  %2916 = vmatprep.subr.mxu0 %v11385_v18 }
0x1854   : > { %2917 = vmatpush1.msra.mxu0 %v11392_v20  ;;  %2950 = vmatprep.mubr.f32.mxu0 %v11174_v59 }
0x1855   : > { %3112 = vmatprep.subr.mxu0 %v11431_v58 }
0x1913   : > { %v2879_v49 = vpop.f32.mrf.mxu0 }
0x1914   : > { %9704 = vmatmul.mubr.msk.f32.vlgmr.msra.gmra.mxu0 %vm388_vm0, %v2879_v49  ;;  %9705 = vmatmul.mubr.msk.f32.vlgmr.msra.gmra.mxu1 %vm388_vm0, %v2879_v49 }
0x1915   : > { %v10488_v31 = vpop.f32.mrf.mxu0  ;;  %3113 = vmatpush1.xpose.msra.mxu0 %v11439_v61  ;;  %3183 = vmatpush1.xpose.msra.mxu1 %v11442_v62 }
0x1916   : > { %10489 = vmatprep.subr.mxu0 %v11174_v59  ;;  %10494 = vmatprep.subr.mxu1 %v11174_v59 }
0x19d4   : > { %v2952_v50 = vpop.f32.mrf.mxu0  ;;  %v3023_v51 = vpop.f32.mrf.mxu1 }
0x19d5   : > { %v3029_v54 = vsel %vm12266_vm15, %v2952_v50, -inf  ;;  %v3031_v55 = vsel %vm12266_vm15, %v3023_v51, -inf }
0x19d6   : > { %v2954_v52 = vpop.f32.mrf.mxu0  ;;  %v3025_v53 = vpop.f32.mrf.mxu1 }
0x19d7   : > { %v3030_v56 = vsel %vm12266_vm15, %v2954_v52, -inf  ;;  %v3032_v57 = vsel %vm12266_vm15, %v3025_v53, -inf }
0x19d8   : > { %v3033_v63 = vmax.f32 %v3029_v54, %v3030_v56  ;;  %v3034_v0 = vmax.f32 %v3031_v55, %v3032_v57 }
0x19da   : > { %v3035_v1 = vmax.f32 %v3033_v63, %v3034_v0 }
0x19dc   : > { %3036 = vmax.xlane.f32.xlu1 %v3035_v1 }
0x1a65   : > { %v3037_v2 = vpop.xlane.xlu1 %3036 }
0x1a66   : > { %vm3038_vm6 = vcmp.ge.f32.partialorder %v2952_v50, %v3037_v2  ;;  %vm3039_vm7 = vcmp.ge.f32.partialorder %v2954_v52, %v3037_v2  ;;  %vm3040_vm10 = vcmp.ge.f32.partialorder %v3023_v51, %v3037_v2  ;;  %vm3041_vm11 = vcmp.ge.f32.partialorder %v3025_v53, %v3037_v2 }
0x1a67   : > { %v3042_v3 = vsel %vm3038_vm6, %v11405_v36, 512  ;;  %v3043_v5 = vsel %vm3039_vm7, %v11408_v37, 512  ;;  %v3044_v6 = vsel %vm3040_vm10, %v11411_v38, 512  ;;  %v3045_v7 = vsel %vm3041_vm11, %v11414_v39, 512 }
0x1a68   : > { %v3046_v8 = vsel %vm12266_vm15, %v3042_v3, 2147483647  ;;  %v3047_v9 = vsel %vm12266_vm15, %v3043_v5, 2147483647  ;;  %v3048_v10 = vsel %vm12266_vm15, %v3044_v6, 2147483647 }
0x1a69   : > { %v3049_v11 = vsel %vm12266_vm15, %v3045_v7, 2147483647  ;;  %vm3050_vm12 = vcmp.lt.s32.totalorder %v3046_v8, %v3047_v9 }
0x1a6a   : > { %v3051_v14 = vsel %vm3050_vm12, %v3046_v8, %v3047_v9  ;;  %vm3052_vm13 = vcmp.lt.s32.totalorder %v3048_v10, %v3049_v11  ;;  %vm12265_vm12 = vcmask 48128  }
0x1a6b   : > { %v3053_v15 = vsel %vm3052_vm13, %v3048_v10, %v3049_v11 }
0x1a6c   : > { %vm3054_vm14 = vcmp.lt.s32.totalorder %v3051_v14, %v3053_v15 }
0x1a6d   : > { %v3055_v17 = vsel %vm3054_vm14, %v3051_v14, %v3053_v15 }
0x1a6e   : > { %v3057_v19 = vshra.s32 %v3055_v17, 16  ;;  %v3056_v23 = vand.u32 65535, %v3055_v17 }
0x1a70   : > { %v3059_v22 = vcvt.s32.f32 %v3057_v19  ;;  %v3058_v25 = vcvt.s32.f32 %v3056_v23 }
0x1a72   : > { %3060 = vmin.xlane.f32.xlu0 %v3059_v22 }
0x1afb   : > { %v3061_v24 = vpop.xlane.xlu0 %3060 }
0x1afc   : > { %vm3062_vm6 = vcmp.eq.f32.partialorder %v3059_v22, %v3061_v24  ;;  %v3067_v27 = vcvt.f32.s32 %v3061_v24 }
0x1afd   : > { %v3063_v26 = vsel %vm3062_vm6, %v3058_v25, inf  ;;  %v9730_v25 = vld [vmem:[%s11254_s18 + $0x40] sm:$0xff] }
0x1afe   : > { %3064 = vmin.xlane.f32.xlu1 %v3063_v26  ;;  %v3068_v29 = vshll.u32 %v3067_v27, 16 }
0x1b87   : > { %v3065_v28 = vpop.xlane.xlu1 %3064 }
0x1b88   : > { %v3066_v32 = vcvt.f32.s32 %v3065_v28 }
0x1b8a   : > { %v3069_v33 = vadd.s32 %v3068_v29, %v3066_v32 }
0x1b8c   : > { %vm3071_vm7 = vcmp.eq.s32.totalorder %v11408_v37, %v3069_v33  ;;  %vm3073_vm10 = vcmp.eq.s32.totalorder %v11414_v39, %v3069_v33  ;;  %vm3070_vm14 = vcmp.eq.s32.totalorder %v11405_v36, %v3069_v33  ;;  %vm3072_vm11 = vcmp.eq.s32.totalorder %v11411_v38, %v3069_v33 }
0x1b8d   : > { %9710 = vmatprep.mubr.msk.f32.mxu0 %vm3071_vm7, %v11176_v4  ;;  %9712 = vmatprep.mubr.msk.f32.mxu1 %vm3073_vm10, %v11176_v4 }
0x1b8e   : > { %9711 = vmatmul.mubr.msk.f32.vlgmr.msra.gmra.mxu0 %vm3070_vm14, %v11176_v4  ;;  %9713 = vmatmul.mubr.msk.f32.vlgmr.msra.gmra.mxu1 %vm3072_vm11, %v11176_v4 }
0x1b8f   : > { %10491 = vmatprep.mubr.msk.f32.mxu0 %vm11175_vm2, %v11174_v59  ;;  %10496 = vmatprep.mubr.msk.f32.mxu1 %vm11175_vm2, %v11174_v59 }
0x1b90   : > { %10495 = vmatpush3.msra.mxu1 %v9716_v44 }
0x1b91   : > { %3506 = vmatprep.subr.mxu1 %v11385_v18 }
0x1c4e   : > { %v3148_v34 = vpop.f32.mrf.mxu0  ;;  %v3218_v35 = vpop.f32.mrf.mxu1 }
0x1c4f   : > { %v3219_v40 = vadd.f32 %v3218_v35, %v3148_v34 }
0x1c50   : > { %v3150_v42 = vpop.f32.mrf.mxu0  ;;  %v3220_v43 = vpop.f32.mrf.mxu1 }
0x1c51   : > { %10490 = vmatpush3.msk.msra.mxu0 %vm12266_vm15, %v3219_v40  ;;  %v9732_v42 = vld [vmem:[%s11294_s26 + $0x8] ss:$0 sm:$0xff] }
0x1c52   : > { %10492 = vmatmul.mubr.msk.f32.vlgmr.msra.gmra.mxu0 %vm12265_vm12, %v3223_v41  ;;  %10499 = vmatprep.subr.mxu0 %v11174_v59  ;;  %v9734_v41 = vld [vmem:[%s11254_s18 + $0x48] sm:$0xff] }
0x1c53   : > { %10505 = vmatprep.mubr.msk.f32.mxu0 %vm11175_vm2, %v11174_v59 }
0x1d12   : > { %v3297_v45 = vpop.f32.mrf.mxu0 }
0x1d13   : > { %10497 = vmatmul.mubr.msk.f32.vlgmr.msra.gmra.mxu1 %vm388_vm0, %v3297_v45  ;;  %v3458_v53 = vmul.f32 0.5, %v3297_v45 }
0x1d14   : > { %v10493_v48 = vpop.f32.mrf.mxu0  ;;  %3507 = vmatpush1.msra.mxu1 %v11392_v20  ;;  %3540 = vmatprep.mubr.f32.mxu1 %v11174_v59 }
0x1d15   : > { %3577 = vmatprep.subr.mxu1 %v11378_v13  ;;  %v9718_v13 = vld [vmem:[%s11294_s26 + $0x7] ss:$0 sm:$0xff]  ;;  %v11653_v48 = vadd.f32 %v11544_v46, %v11481_v30 }
0x1dd3   : > { %v3372_v49 = vpop.f32.mrf.mxu1 }
0x1dd4   : > { %3377 = vrot.lane.b32.xlu1 %v3372_v49, %s11173_s20  ;;  %3380 = vrot.lane.b32.xlu0 %v3372_v49, %s11172_s19 }
0x1dd5   : > { %v10498_v31 = vpop.f32.mrf.mxu1 }
0x1e46   : > { %v3381_v50 = vpop.permute.xlu0 %3380  ;;  %v3378_v18 = vpop.permute.xlu1 %3377 }
0x1e47   : > { %10500 = vmatpush3.msra.mxu0 %v3381_v50 }
0x1e48   : > { %10501 = vmatprep.subr.mxu0 %v11174_v59 }
0x1e49   : > { %10502 = vmatpush3.msra.mxu0 %v3378_v18 }
0x1e4a   : > { %10503 = vmatprep.subr.mxu0 %v11174_v59 }
0x1e4b   : > { %10504 = vmatpush3.msra.mxu0 %v3372_v49 }
0x1e4c   : > { %10506 = vmatmul.mubr.msk.f32.vlgmr.msra.gmra.mxu0 %vm1391_vm4, %v11365_v12  ;;  %3693 = vmatprep.subr.mxu0 %v11431_v58 }
0x1e4d   : > { %3694 = vmatpush1.xpose.msra.mxu0 %v11439_v61 }
0x1e4e   : > { %10508 = vmatprep.subr.mxu0 %v11174_v59 }
0x1f0c   : > { %v3454_v20 = vpop.f32.mrf.mxu0 }
0x1f0d   : > { %v3455_v51 = vadd.f32 %v9718_v13, %v3454_v20 }
0x1f0e   : > { %v10507_v52 = vpop.f32.mrf.mxu0 }
0x1f0f   : > { %v3459_v54 = vmul.f32 0.5, %v3455_v51 }
0x1f11   : > { %v11607_v55 = vadd.f32 %v3459_v54, %v3458_v53  ;;  %v9738_v53 = vld [vmem:[%s11254_s18 + $0x50] sm:$0xff]  ;;  %v9736_v54 = vld [vmem:[%s11294_s26 + $0x9] ss:$0 sm:$0xff] }
0x1f13   : > { %v3462_v56 = vsub.f32 %v11548_v47, %v11607_v55  ;;  %v11657_v50 = vadd.f32 %v11607_v55, %v11653_v48 }
0x1f15   : > { %9720 = vmatmul.mubr.msk.f32.vlgmr.msra.gmra.mxu1 %vm388_vm0, %v3462_v56 }
0x1f16   : > { %3578 = vmatpush1.msra.mxu1 %v11395_v21  ;;  %3611 = vmatprep.mubr.f32.mxu1 %v11174_v59 }
0x1f17   : > { %3763 = vmatprep.subr.mxu1 %v11434_v60 }
0x1f19   : > { %9721 = vmatmul.mubr.msk.f32.vlgmr.msra.gmra.mxu1 %vm388_vm0, %v3462_v56 }
0x1f1a   : > { %3764 = vmatpush1.xpose.msra.mxu1 %v11442_v62 }
0x1f1b   : > { %10513 = vmatprep.subr.mxu1 %v11174_v59 }
0x1fd5   : > { %v3542_v58 = vpop.f32.mrf.mxu1 }
0x1fd7   : > { %v3544_v61 = vpop.f32.mrf.mxu1 }
0x1fd8   : > { %v3618_v0 = vmax.f32 %v3542_v58, %v3544_v61 }
0x1fd9   : > { %v3613_v57 = vpop.f32.mrf.mxu1 }
0x1fdb   : > { %v3615_v63 = vpop.f32.mrf.mxu1 }
0x1fdc   : > { %v3619_v47 = vmax.f32 %v3613_v57, %v3615_v63 }
0x1fde   : > { %v3620_v1 = vmax.f32 %v3618_v0, %v3619_v47  ;;  %v9743_v47 = vld [vmem:[%s11254_s18 + $0x58] sm:$0xff] }
0x1fe0   : > { %3621 = vmax.xlane.f32.xlu1 %v3620_v1  ;;  %v9740_v1 = vld [vmem:[%s11294_s26 + $0xa] ss:$0 sm:$0xff] }
0x2069   : > { %v3622_v2 = vpop.xlane.xlu1 %3621 }
0x206a   : > { %vm3623_vm13 = vcmp.ge.f32.partialorder %v3542_v58, %v3622_v2  ;;  %vm3624_vm6 = vcmp.ge.f32.partialorder %v3544_v61, %v3622_v2  ;;  %vm3625_vm7 = vcmp.ge.f32.partialorder %v3613_v57, %v3622_v2  ;;  %vm3626_vm10 = vcmp.ge.f32.partialorder %v3615_v63, %v3622_v2 }
0x206b   : > { %v3627_v21 = vsel %vm3623_vm13, %v11405_v36, 512  ;;  %v3628_v60 = vsel %vm3624_vm6, %v11408_v37, 512  ;;  %v3629_v62 = vsel %vm3625_vm7, %v11411_v38, 512  ;;  %v3630_v3 = vsel %vm3626_vm10, %v11414_v39, 512 }
0x206c   : > { %vm3631_vm14 = vcmp.lt.s32.totalorder %v3627_v21, %v3628_v60  ;;  %vm3633_vm11 = vcmp.lt.s32.totalorder %v3629_v62, %v3630_v3 }
0x206d   : > { %v3632_v5 = vsel %vm3631_vm14, %v3627_v21, %v3628_v60  ;;  %v3634_v6 = vsel %vm3633_vm11, %v3629_v62, %v3630_v3 }
0x206e   : > { %vm3635_vm12 = vcmp.lt.s32.totalorder %v3632_v5, %v3634_v6 }
0x206f   : > { %v3636_v7 = vsel %vm3635_vm12, %v3632_v5, %v3634_v6 }
0x2070   : > { %v3638_v8 = vshra.s32 %v3636_v7, 16  ;;  %v3637_v10 = vand.u32 65535, %v3636_v7 }
0x2072   : > { %v3640_v9 = vcvt.s32.f32 %v3638_v8  ;;  %v3639_v14 = vcvt.s32.f32 %v3637_v10  ;;  %v4378_v8 = vld [vmem:[#allocation2 + $0x80] sm:$0xff] }
0x2074   : > { %3641 = vmin.xlane.f32.xlu0 %v3640_v9 }
0x20fd   : > { %v3642_v11 = vpop.xlane.xlu0 %3641 }
0x20fe   : > { %vm3643_vm15 = vcmp.eq.f32.partialorder %v3640_v9, %v3642_v11  ;;  %v3648_v17 = vcvt.f32.s32 %v3642_v11 }
0x20ff   : > { %v3644_v15 = vsel %vm3643_vm15, %v3639_v14, inf  ;;  %v4379_v14 = vld [vmem:[#allocation2 + $0x88] sm:$0xff] }
0x2100   : > { %3645 = vmin.xlane.f32.xlu0 %v3644_v15  ;;  %v3649_v22 = vshll.u32 %v3648_v17, 16  ;;  %v9750_v15 = vld [vmem:[%s11254_s18 + $0x60] sm:$0xff]  ;;  %v9745_v17 = vld [vmem:[%s11294_s26 + $0xb] ss:$0 sm:$0xff] }
0x2189   : > { %v3646_v19 = vpop.xlane.xlu0 %3645 }
0x218a   : > { %v3647_v23 = vcvt.f32.s32 %v3646_v19 }
0x218c   : > { %v3650_v24 = vadd.s32 %v3649_v22, %v3647_v23 }
0x218e   : > { %vm3652_vm13 = vcmp.eq.s32.totalorder %v11408_v37, %v3650_v24  ;;  %vm3654_vm6 = vcmp.eq.s32.totalorder %v11414_v39, %v3650_v24  ;;  %vm3651_vm12 = vcmp.eq.s32.totalorder %v11405_v36, %v3650_v24  ;;  %vm3653_vm7 = vcmp.eq.s32.totalorder %v11411_v38, %v3650_v24 }
0x218f   : > { %9726 = vmatprep.mubr.msk.f32.mxu0 %vm3652_vm13, %v11176_v4  ;;  %9728 = vmatprep.mubr.msk.f32.mxu1 %vm3654_vm6, %v11176_v4 }
0x2190   : > { %9727 = vmatmul.mubr.msk.f32.vlgmr.msra.gmra.mxu0 %vm3651_vm12, %v11176_v4  ;;  %9729 = vmatmul.mubr.msk.f32.vlgmr.msra.gmra.mxu1 %vm3653_vm7, %v11176_v4 }
0x2191   : > { %10510 = vmatprep.mubr.msk.f32.mxu0 %vm11175_vm2, %v11174_v59  ;;  %10519 = vmatprep.mubr.msk.f32.mxu1 %vm11175_vm2, %v11174_v59 }
0x2192   : > { %10509 = vmatpush3.msra.mxu0 %v9730_v25 }
0x2193   : > { %10522 = vmatprep.subr.mxu0 %v11174_v59 }
0x2250   : > { %v3729_v26 = vpop.f32.mrf.mxu0  ;;  %v3799_v27 = vpop.f32.mrf.mxu1 }
0x2251   : > { %v3800_v28 = vadd.f32 %v3799_v27, %v3729_v26 }
0x2252   : > { %v3731_v29 = vpop.f32.mrf.mxu0  ;;  %v3801_v32 = vpop.f32.mrf.mxu1 }
0x2253   : > { %10511 = vmatmul.mubr.msk.f32.vlgmr.msra.gmra.mxu0 %vm388_vm0, %v3800_v28  ;;  %v3960_v49 = vmul.f32 0.5, %v3800_v28 }
0x2254   : > { %10524 = vmatprep.mubr.msk.f32.mxu0 %vm11175_vm2, %v11174_v59  ;;  %10523 = vmatpush3.msra.mxu0 %v9734_v41  ;;  %v4578_v41 = vld [vmem:[#allocation2 + $0xa0] sm:$0xff] }
0x2255   : > { %10527 = vmatprep.subr.mxu0 %v11174_v59 }
0x2313   : > { %v3874_v33 = vpop.f32.mrf.mxu0 }
0x2314   : > { %3879 = vrot.lane.b32.xlu0 %v3874_v33, %s11173_s20  ;;  %3882 = vrot.lane.b32.xlu1 %v3874_v33, %s11172_s19 }
0x2315   : > { %v10512_v34 = vpop.f32.mrf.mxu0 }
0x2386   : > { %v3883_v35 = vpop.permute.xlu1 %3882  ;;  %v3880_v40 = vpop.permute.xlu0 %3879 }
0x2387   : > { %10514 = vmatpush3.msra.mxu1 %v3883_v35 }
0x2388   : > { %10515 = vmatprep.subr.mxu1 %v11174_v59 }
0x2389   : > { %10516 = vmatpush3.msra.mxu1 %v3880_v40 }
0x238a   : > { %10517 = vmatprep.subr.mxu1 %v11174_v59 }
0x238b   : > { %10518 = vmatpush3.msra.mxu1 %v3874_v33 }
0x238c   : > { %10520 = vmatmul.mubr.msk.f32.vlgmr.msra.gmra.mxu1 %vm1391_vm4, %v11365_v12  ;;  %10536 = vmatprep.subr.mxu1 %v11174_v59 }
0x238d   : > { %10538 = vmatprep.mubr.msk.f32.mxu1 %vm11175_vm2, %v11174_v59  ;;  %10537 = vmatpush3.msra.mxu1 %v9738_v53  ;;  %v9773_v53 = vld [vmem:[%s11249_s15 + $0x28] sm:$0xff] }
0x238e   : > { %10541 = vmatprep.subr.mxu1 %v11174_v59 }
0x244c   : > { %v3956_v43 = vpop.f32.mrf.mxu1 }
0x244d   : > { %v3957_v44 = vadd.f32 %v9732_v42, %v3956_v43 }
0x244e   : > { %v10521_v45 = vpop.f32.mrf.mxu1 }
0x244f   : > { %v3961_v31 = vmul.f32 0.5, %v3957_v44 }
0x2451   : > { %v3962_v18 = vadd.f32 %v3961_v31, %v3960_v49 }
0x2453   : > { %v11660_v13 = vadd.f32 %v3962_v18, %v11657_v50  ;;  %v4579_v18 = vld [vmem:[#allocation2 + $0xa8] sm:$0xff] }
0x2455   : > { %10525 = vmatmul.mubr.msk.f32.vlgmr.msra.gmra.mxu0 %vm388_vm0, %v11660_v13 }
0x2456   : > { %10533 = vmatprep.mubr.msk.f32.mxu0 %vm11175_vm2, %v11174_v59 }
0x2515   : > { %v4045_v20 = vpop.f32.mrf.mxu0 }
0x2516   : > { %4053 = vrot.lane.b32.xlu1 %v4045_v20, %s11172_s19 }
0x2517   : > { %v10526_v46 = vpop.f32.mrf.mxu0 }
0x2518   : > { %v4580_v46 = vld [vmem:[#allocation2 + $0xb0] sm:$0xff] }
0x251a   : > { %4050 = vrot.lane.b32.xlu1 %v4045_v20, %s11173_s20 }
0x2588   : > { %v4054_v51 = vpop.permute.xlu1 %4053 }
0x2589   : > { %10528 = vmatpush3.msra.mxu0 %v4054_v51  ;;  %v4581_v51 = vld [vmem:[#allocation2 + $0xb8] sm:$0xff] }
0x258a   : > { %10529 = vmatprep.subr.mxu0 %v11174_v59 }
0x258c   : > { %v4051_v52 = vpop.permute.xlu1 %4050 }
0x258d   : > { %10530 = vmatpush3.msra.mxu0 %v4051_v52  ;;  %v9772_v52 = vld [vmem:[%s11249_s15 + $0x20] sm:$0xff] }
0x258e   : > { %10531 = vmatprep.subr.mxu0 %v11174_v59 }
0x258f   : > { %10532 = vmatpush3.msra.mxu0 %v4045_v20  ;;  %v9776_v20 = vld [vmem:[%s11254_s18 + $0x70] sm:$0xff] }
0x2590   : > { %10534 = vmatmul.mubr.msk.f32.vlgmr.msra.gmra.mxu0 %vm1391_vm4, %v11365_v12  ;;  %10550 = vmatprep.subr.mxu0 %v11174_v59 }
0x2591   : > { %10552 = vmatprep.mubr.msk.f32.mxu0 %vm11175_vm2, %v11174_v59  ;;  %10551 = vmatpush3.msra.mxu0 %v9743_v47 }
0x2650   : > { %v4127_v55 = vpop.f32.mrf.mxu0 }
0x2651   : > { %v4128_v56 = vadd.f32 %v9736_v54, %v4127_v55  ;;  %v9774_v54 = vld [vmem:[%s11249_s15 + $0x30] sm:$0xff]  ;;  %v9775_v55 = vld [vmem:[%s11249_s15 + $0x38] sm:$0xff]  ;;  %s382_s15 = scalar_lea.vmem %s12263_s7, %s12279_s25 }
0x2652   : > { %v10535_v58 = vpop.f32.mrf.mxu0 }
0x2653   : > { %10539 = vmatmul.mubr.msk.f32.vlgmr.msra.gmra.mxu1 %vm388_vm0, %v4128_v56  ;;  %v9762_v56 = vld [vmem:[%s11254_s18 + $0x68] sm:$0xff] }
0x2654   : > { %10547 = vmatprep.mubr.msk.f32.mxu1 %vm11175_vm2, %v11174_v59  ;;  %v9753_v58 = vld [vmem:[%s11294_s26 + $0xc] ss:$0 sm:$0xff] }
0x2713   : > { %v4202_v61 = vpop.f32.mrf.mxu1 }
0x2714   : > { %4207 = vrot.lane.b32.xlu1 %v4202_v61, %s11173_s20  ;;  %4210 = vrot.lane.b32.xlu0 %v4202_v61, %s11172_s19 }
0x2715   : > { %v10540_v57 = vpop.f32.mrf.mxu1 }
0x2786   : > { %v4211_v63 = vpop.permute.xlu0 %4210  ;;  %v4208_v0 = vpop.permute.xlu1 %4207 }
0x2787   : > { %10542 = vmatpush3.msra.mxu1 %v4211_v63 }
0x2788   : > { %10543 = vmatprep.subr.mxu1 %v11174_v59 }
0x2789   : > { %10544 = vmatpush3.msra.mxu1 %v4208_v0 }
0x278a   : > { %10545 = vmatprep.subr.mxu1 %v11174_v59 }
0x278b   : > { %10546 = vmatpush3.msra.mxu1 %v4202_v61 }
0x278c   : > { %10548 = vmatmul.mubr.msk.f32.vlgmr.msra.gmra.mxu1 %vm1391_vm4, %v11365_v12  ;;  %10564 = vmatprep.subr.mxu1 %v9750_v15 }
0x278d   : > { %10565 = vmatpush3.msra.mxu1 %v9750_v15 }
0x284c   : > { %v4284_v2 = vpop.f32.mrf.mxu1 }
0x284d   : > { %v4285_v21 = vadd.f32 %v9740_v1, %v4284_v2 }
0x284e   : > { %v10549_v60 = vpop.f32.mrf.mxu1 }
0x284f   : > { %v9742_v62 = vmul.f32 -1.442695, %v4285_v21 }
0x2851   : > { %11026 = vpow2.f32 %v9742_v62 }
0x285e   : > { %v11027_v3 = vpop.eup %11026 }
0x285f   : > { %v4291_v5 = vadd.f32 1.0, %v11027_v3 }
0x2861   : > { %11028 = vrcp.f32 %v4291_v5 }
0x286e   : > { %v11029_v6 = vpop.eup %11028 }
0x286f   : > { %v4294_v7 = vmul.f32 %v11029_v6, %v4285_v21 }
0x2871   : > { %10553 = vmatmul.mubr.msk.f32.vlgmr.msra.gmra.mxu0 %vm388_vm0, %v4294_v7 }
0x2872   : > { %10561 = vmatprep.mubr.msk.f32.mxu0 %vm1391_vm4, %v4378_v8 }
0x2931   : > { %v4366_v12 = vpop.f32.mrf.mxu0 }
0x2932   : > { %4371 = vrot.lane.b32.xlu1 %v4366_v12, %s11173_s20  ;;  %4374 = vrot.lane.b32.xlu0 %v4366_v12, %s11172_s19 }
0x2933   : > { %v10554_v9 = vpop.f32.mrf.mxu0 }
0x29a4   : > { %v4375_v10 = vpop.permute.xlu0 %4374  ;;  %v4372_v11 = vpop.permute.xlu1 %4371 }
0x29a5   : > { %10555 = vmatprep.subr.mxu0 %v4375_v10 }
0x29a6   : > { %10556 = vmatpush3.msra.mxu0 %v4375_v10 }
0x29a7   : > { %10557 = vmatprep.subr.mxu0 %v4372_v11 }
0x29a8   : > { %10558 = vmatpush3.msra.mxu0 %v4372_v11 }
0x29a9   : > { %10559 = vmatprep.subr.mxu0 %v4366_v12 }
0x29aa   : > { %10560 = vmatpush3.msra.mxu0 %v4366_v12 }
0x29ab   : > { %10562 = vmatmul.mubr.msk.f32.vlgmr.msra.gmra.mxu0 %vm1391_vm4, %v4379_v14  ;;  %10587 = vmatprep.subr.mxu0 %v9762_v56 }
0x29ac   : > { %10588 = vmatpush3.msra.mxu0 %v9762_v56 }
0x2a6b   : > { %v10563_v19 = vpop.f32.mrf.mxu0 }
0x2a6c   : > { %v4463_v22 = vadd.f32 %v10563_v19, %v9745_v17 }
0x2a6d   : > { %v4457_v23 = vpop.f32.mrf.mxu0 }
0x2a6e   : > { %v9749_v24 = vmul.f32 -1.442695, %v4463_v22  ;;  %v4458_v25 = vadd.f32 %v9745_v17, %v4457_v23  ;;  %v11728_v17 = vld [vmem:[#allocation2] sm:$0xff] }
0x2a70   : > { %11030 = vpow2.f32 %v9749_v24  ;;  %v9748_v26 = vmul.f32 -1.442695, %v4458_v25 }
0x2a72   : > { %11032 = vpow2.f32 %v9748_v26 }
0x2a7d   : > { %v11031_v27 = vpop.eup %11030 }
0x2a7e   : > { %v4473_v28 = vadd.f32 1.0, %v11031_v27 }
0x2a7f   : > { %v11033_v29 = vpop.eup %11032 }
0x2a80   : > { %v4472_v32 = vadd.f32 1.0, %v11033_v29  ;;  %11034 = vrcp.f32 %v4473_v28 }
0x2a82   : > { %11036 = vrcp.f32 %v4472_v32 }
0x2a8d   : > { %v11035_v33 = vpop.eup %11034 }
0x2a8e   : > { %v4479_v40 = vmul.f32 %v11035_v33, %v4463_v22 }
0x2a8f   : > { %v11037_v34 = vpop.eup %11036 }
0x2a90   : > { %v4478_v35 = vmul.f32 %v11037_v34, %v4458_v25  ;;  %v11122_v34 = vld [vmem:[#allocation2] sm:$0xff] }
0x2a92   : > { %10566 = vmatprep.mubr.msk.f32.mxu1 %vm388_vm0, %v4478_v35 }
0x2a93   : > { %10567 = vmatmul.mubr.msk.f32.vlgmr.msra.gmra.mxu1 %vm388_vm0, %v4479_v40 }
0x2a94   : > { %10581 = vmatprep.mubr.msk.f32.mxu1 %vm1228_vm3, %v4578_v41 }
0x2b53   : > { %v10568_v42 = vpop.f32.mrf.mxu1 }
0x2b54   : > { %4573 = vrot.lane.b32.xlu0 %v10568_v42, %s11172_s19 }
0x2b55   : > { %v4554_v43 = vpop.f32.mrf.mxu1 }
0x2b56   : > { %4571 = vrot.lane.b32.xlu1 %v4554_v43, %s11172_s19 }
0x2b58   : > { %4567 = vrot.lane.b32.xlu0 %v10568_v42, %s11173_s20 }
0x2b5a   : > { %4565 = vrot.lane.b32.xlu1 %v4554_v43, %s11173_s20 }
0x2bc6   : > { %v4574_v44 = vpop.permute.xlu0 %4573 }
0x2bc7   : > { %10569 = vmatprep.subr.mxu1 %v4574_v44 }
0x2bc8   : > { %10570 = vmatpush3.msra.mxu1 %v4574_v44  ;;  %v4572_v45 = vpop.permute.xlu1 %4571 }
0x2bc9   : > { %10571 = vmatprep.subr.mxu1 %v4572_v45 }
0x2bca   : > { %v4568_v49 = vpop.permute.xlu0 %4567  ;;  %10572 = vmatpush3.msra.mxu1 %v4572_v45 }
0x2bcb   : > { %10573 = vmatprep.subr.mxu1 %v4568_v49 }
0x2bcc   : > { %10574 = vmatpush3.msra.mxu1 %v4568_v49  ;;  %v4566_v31 = vpop.permute.xlu1 %4565 }
0x2bcd   : > { %10575 = vmatprep.subr.mxu1 %v4566_v31 }
0x2bce   : > { %10576 = vmatpush3.msra.mxu1 %v4566_v31  ;;  %v11744_v31 = vld [vmem:[#allocation2 + $0x8] sm:$0xff] }
0x2bcf   : > { %10577 = vmatprep.subr.mxu1 %v10568_v42 }
0x2bd0   : > { %10578 = vmatpush3.msra.mxu1 %v10568_v42 }
0x2bd1   : > { %10579 = vmatprep.subr.mxu1 %v4554_v43 }
0x2bd2   : > { %10580 = vmatpush3.msra.mxu1 %v4554_v43 }
0x2bd3   : > { %10582 = vmatmul.mubr.msk.f32.vlgmr.msra.gmra.mxu1 %vm1228_vm3, %v4579_v18  ;;  %10625 = vmatprep.subr.mxu1 %v9776_v20  ;;  %v11747_v18 = vld [vmem:[#allocation2 + $0x10] sm:$0xff] }
0x2bd4   : > { %10584 = vmatprep.mubr.msk.f32.mxu1 %vm1228_vm3, %v4580_v46  ;;  %10626 = vmatpush3.msra.mxu1 %v9776_v20  ;;  %v11754_v20 = vld [vmem:[#allocation2 + $0x18] sm:$0xff] }
0x2bd7   : > { %10585 = vmatmul.mubr.msk.f32.gmra.mxu1 %vm1228_vm3, %v4581_v51 }
0x2bd8   : > { %10627 = vmatprep.mubr.msk.f32.mxu1 %vm388_vm0, %v9772_v52 }
0x2bdb   : > { %10628 = vmatmul.mubr.msk.f32.vlgmr.msra.gmra.mxu1 %vm388_vm0, %v9773_v53 }
0x2bdc   : > { %10630 = vmatprep.mubr.msk.f32.mxu1 %vm388_vm0, %v9774_v54  ;;  %v9782_v54 = vld [vmem:[%s11294_s26 + $0x10] ss:$0 sm:$0xff] }
0x2bdf   : > { %10631 = vmatmul.mubr.msk.f32.gmra.mxu1 %vm388_vm0, %v9775_v55 }
0x2be0   : > { %10657 = vmatprep.mubr.msk.f32.mxu1 %vm523_vm1, %v11728_v17 }
0x2c93   : > { %v10583_v61 = vpop.f32.mrf.mxu1 }
0x2c94   : > { %v4671_v57 = vadd.f32 %v10583_v61, %v9753_v58 }
0x2c95   : > { %v4665_v63 = vpop.f32.mrf.mxu1 }
0x2c96   : > { %v9759_v0 = vmul.f32 -1.442695, %v4671_v57  ;;  %v4666_v47 = vadd.f32 %v9753_v58, %v4665_v63 }
0x2c97   : > { %v10586_v1 = vpop.f32.mrf.mxu1 }
0x2c98   : > { %11038 = vpow2.f32 %v9759_v0  ;;  %v9758_v2 = vmul.f32 -1.442695, %v4666_v47  ;;  %v4681_v21 = vadd.f32 %v10586_v1, %v9753_v58 }
0x2c99   : > { %v4675_v60 = vpop.f32.mrf.mxu1 }
0x2c9a   : > { %11040 = vpow2.f32 %v9758_v2  ;;  %v9761_v62 = vmul.f32 -1.442695, %v4681_v21  ;;  %v4676_v3 = vadd.f32 %v9753_v58, %v4675_v60 }
0x2c9b   : > { %v11717_v5 = vpop.f32.mrf.mxu1 }
0x2c9c   : > { %11042 = vpow2.f32 %v9761_v62  ;;  %v9760_v6 = vmul.f32 -1.442695, %v4676_v3 }
0x2c9d   : > { %v11719_v7 = vpop.f32.mrf.mxu1 }
0x2c9e   : > { %11044 = vpow2.f32 %v9760_v6 }
0x2c9f   : > { %v10632_v8 = vpop.f32.mrf.mxu1 }
0x2ca0   : > { %5059 = vrot.lane.b32.xlu0 %v10632_v8, %s11172_s19 }
0x2ca1   : > { %v5028_v12 = vpop.f32.mrf.mxu1 }
0x2ca2   : > { %5057 = vrot.lane.b32.xlu1 %v5028_v12, %s11172_s19 }
0x2ca4   : > { %5055 = vrot.lane.b32.xlu0 %v11717_v5, %s11172_s19 }
0x2ca5   : > { %v11039_v9 = vpop.eup %11038 }
0x2ca6   : > { %v4697_v10 = vadd.f32 1.0, %v11039_v9  ;;  %5053 = vrot.lane.b32.xlu1 %v11719_v7, %s11172_s19 }
0x2ca7   : > { %v11041_v11 = vpop.eup %11040 }
0x2ca8   : > { %v4696_v14 = vadd.f32 1.0, %v11041_v11  ;;  %5047 = vrot.lane.b32.xlu0 %v10632_v8, %s11173_s20  ;;  %11046 = vrcp.f32 %v4697_v10 }
0x2ca9   : > { %v11043_v15 = vpop.eup %11042 }
0x2caa   : > { %11048 = vrcp.f32 %v4696_v14  ;;  %v4699_v19 = vadd.f32 1.0, %v11043_v15  ;;  %5045 = vrot.lane.b32.xlu1 %v5028_v12, %s11173_s20 }
0x2cab   : > { %v11045_v22 = vpop.eup %11044 }
0x2cac   : > { %v4698_v23 = vadd.f32 1.0, %v11045_v22  ;;  %5043 = vrot.lane.b32.xlu0 %v11717_v5, %s11173_s20  ;;  %11050 = vrcp.f32 %v4699_v19 }
0x2cae   : > { %11052 = vrcp.f32 %v4698_v23  ;;  %5041 = vrot.lane.b32.xlu1 %v11719_v7, %s11173_s20 }
0x2cb5   : > { %v11047_v24 = vpop.eup %11046 }
0x2cb6   : > { %v4709_v27 = vmul.f32 %v11047_v24, %v4671_v57 }
0x2cb7   : > { %v11049_v25 = vpop.eup %11048 }
0x2cb8   : > { %v4708_v26 = vmul.f32 %v11049_v25, %v4666_v47  ;;  %v9791_v25 = vld [vmem:[%s11254_s18 + $0x78] sm:$0xff] }
0x2cb9   : > { %v11051_v28 = vpop.eup %11050 }
0x2cba   : > { %10589 = vmatprep.mubr.msk.f32.mxu0 %vm388_vm0, %v4708_v26  ;;  %v4711_v33 = vmul.f32 %v11051_v28, %v4681_v21  ;;  %v11123_v26 = vld [vmem:[#allocation2 + $0x8] sm:$0xff] }
0x2cbb   : > { %v11053_v29 = vpop.eup %11052  ;;  %10590 = vmatmul.mubr.msk.f32.vlgmr.msra.gmra.mxu0 %vm388_vm0, %v4709_v27  ;;  %v11124_v27 = vld [vmem:[#allocation2 + $0x10] sm:$0xff] }
0x2cbc   : > { %v4710_v32 = vmul.f32 %v11053_v29, %v4676_v3 }
0x2cbe   : > { %10592 = vmatprep.mubr.msk.f32.mxu0 %vm388_vm0, %v4710_v32  ;;  %v11125_v32 = vld [vmem:[#allocation2 + $0x18] sm:$0xff] }
0x2cbf   : > { %10593 = vmatmul.mubr.msk.f32.gmra.mxu0 %vm388_vm0, %v4711_v33 }
0x2cc0   : > { %10619 = vmatprep.mubr.msk.f32.mxu0 %vm523_vm1, %v11122_v34 }
0x2d12   : > { %v5060_v35 = vpop.permute.xlu0 %5059 }
0x2d13   : > { %10633 = vmatprep.subr.mxu1 %v5060_v35 }
0x2d14   : > { %10634 = vmatpush3.msra.mxu1 %v5060_v35  ;;  %v5058_v40 = vpop.permute.xlu1 %5057 }
0x2d15   : > { %10635 = vmatprep.subr.mxu1 %v5058_v40 }
0x2d16   : > { %v5056_v41 = vpop.permute.xlu0 %5055  ;;  %10636 = vmatpush3.msra.mxu1 %v5058_v40 }
0x2d17   : > { %10637 = vmatprep.subr.mxu1 %v5056_v41 }
0x2d18   : > { %10638 = vmatpush3.msra.mxu1 %v5056_v41  ;;  %v5054_v42 = vpop.permute.xlu1 %5053 }
0x2d19   : > { %10639 = vmatprep.subr.mxu1 %v5054_v42 }
0x2d1a   : > { %v5048_v43 = vpop.permute.xlu0 %5047  ;;  %10640 = vmatpush3.msra.mxu1 %v5054_v42 }
0x2d1b   : > { %10641 = vmatprep.subr.mxu1 %v5048_v43 }
0x2d1c   : > { %10642 = vmatpush3.msra.mxu1 %v5048_v43  ;;  %v5046_v44 = vpop.permute.xlu1 %5045  ;;  %v9767_v43 = vld [vmem:[%s11294_s26 + $0xd] ss:$0 sm:$0xff] }
0x2d1d   : > { %10643 = vmatprep.subr.mxu1 %v5046_v44 }
0x2d1e   : > { %v5044_v45 = vpop.permute.xlu0 %5043  ;;  %10644 = vmatpush3.msra.mxu1 %v5046_v44 }
0x2d1f   : > { %10645 = vmatprep.subr.mxu1 %v5044_v45 }
0x2d20   : > { %10646 = vmatpush3.msra.mxu1 %v5044_v45  ;;  %v5042_v49 = vpop.permute.xlu1 %5041 }
0x2d21   : > { %10647 = vmatprep.subr.mxu1 %v5042_v49 }
0x2d22   : > { %10648 = vmatpush3.msra.mxu1 %v5042_v49 }
0x2d23   : > { %10649 = vmatprep.subr.mxu1 %v10632_v8 }
0x2d24   : > { %10650 = vmatpush3.msra.mxu1 %v10632_v8 }
0x2d25   : > { %10651 = vmatprep.subr.mxu1 %v5028_v12 }
0x2d26   : > { %10652 = vmatpush3.msra.mxu1 %v5028_v12 }
0x2d27   : > { %10653 = vmatprep.subr.mxu1 %v11717_v5 }
0x2d28   : > { %10654 = vmatpush3.msra.mxu1 %v11717_v5 }
0x2d29   : > { %10655 = vmatprep.subr.mxu1 %v11719_v7 }
0x2d2a   : > { %10656 = vmatpush3.msra.mxu1 %v11719_v7 }
0x2d2b   : > { %10658 = vmatmul.mubr.msk.f32.vlgmr.msra.gmra.mxu1 %vm523_vm1, %v11744_v31 }
0x2d2c   : > { %10660 = vmatprep.mubr.msk.f32.mxu1 %vm523_vm1, %v11747_v18 }
0x2d2f   : > { %10661 = vmatmul.mubr.msk.f32.gmra.mxu1 %vm523_vm1, %v11754_v20 }
0x2d7b   : > { %v11758_v46 = vpop.f32.mrf.mxu0 }
0x2d7d   : > { %v11760_v51 = vpop.f32.mrf.mxu0 }
0x2d7f   : > { %v10594_v52 = vpop.f32.mrf.mxu0 }
0x2d80   : > { %4833 = vrot.lane.b32.xlu0 %v10594_v52, %s11172_s19 }
0x2d81   : > { %v11763_v53 = vpop.f32.mrf.mxu0 }
0x2d82   : > { %4831 = vrot.lane.b32.xlu1 %v11763_v53, %s11172_s19 }
0x2d84   : > { %4829 = vrot.lane.b32.xlu0 %v11758_v46, %s11172_s19 }
0x2d86   : > { %4827 = vrot.lane.b32.xlu1 %v11760_v51, %s11172_s19 }
0x2d88   : > { %4821 = vrot.lane.b32.xlu0 %v10594_v52, %s11173_s20 }
0x2d8a   : > { %4819 = vrot.lane.b32.xlu1 %v11763_v53, %s11173_s20 }
0x2d8c   : > { %4817 = vrot.lane.b32.xlu0 %v11758_v46, %s11173_s20 }
0x2d8e   : > { %4815 = vrot.lane.b32.xlu1 %v11760_v51, %s11173_s20 }
0x2deb   : > { %v10659_v55 = vpop.f32.mrf.mxu1 }
0x2dec   : > { %v11779_v56 = vadd.f32 %v10659_v55, %v9782_v54 }
0x2ded   : > { %v5153_v58 = vpop.f32.mrf.mxu1 }
0x2dee   : > { %v9788_v61 = vmul.f32 -1.442695, %v11779_v56  ;;  %v11782_v57 = vadd.f32 %v9782_v54, %v5153_v58 }
0x2def   : > { %v10662_v63 = vpop.f32.mrf.mxu1 }
0x2df0   : > { %11054 = vpow2.f32 %v9788_v61  ;;  %v9787_v0 = vmul.f32 -1.442695, %v11782_v57  ;;  %v11785_v47 = vadd.f32 %v10662_v63, %v9782_v54 }
0x2df1   : > { %v5163_v1 = vpop.f32.mrf.mxu1 }
0x2df2   : > { %11056 = vpow2.f32 %v9787_v0  ;;  %v9790_v2 = vmul.f32 -1.442695, %v11785_v47  ;;  %v11788_v21 = vadd.f32 %v9782_v54, %v5163_v1  ;;  %v4834_v60 = vpop.permute.xlu0 %4833 }
0x2df3   : > { %10595 = vmatprep.subr.mxu0 %v4834_v60 }
0x2df4   : > { %11058 = vpow2.f32 %v9790_v2  ;;  %v9789_v62 = vmul.f32 -1.442695, %v11788_v21  ;;  %10596 = vmatpush3.msra.mxu0 %v4834_v60  ;;  %v4832_v3 = vpop.permute.xlu1 %4831  ;;  %v9806_v60 = vld [vmem:[%s11254_s18 + $0x80] sm:$0xff] }
0x2df5   : > { %10597 = vmatprep.subr.mxu0 %v4832_v3  ;;  %10701 = vmatprep.subr.mxu1 %v9806_v60 }
0x2df6   : > { %11060 = vpow2.f32 %v9789_v62  ;;  %v4830_v5 = vpop.permute.xlu0 %4829  ;;  %10598 = vmatpush3.msra.mxu0 %v4832_v3  ;;  %10702 = vmatpush3.msra.mxu1 %v9806_v60  ;;  %v9797_v62 = vld [vmem:[%s11294_s26 + $0x11] ss:$0 sm:$0xff] }
0x2df7   : > { %10599 = vmatprep.subr.mxu0 %v4830_v5 }
0x2df8   : > { %10600 = vmatpush3.msra.mxu0 %v4830_v5  ;;  %v4828_v6 = vpop.permute.xlu1 %4827 }
0x2df9   : > { %10601 = vmatprep.subr.mxu0 %v4828_v6 }
0x2dfa   : > { %v4822_v7 = vpop.permute.xlu0 %4821  ;;  %10602 = vmatpush3.msra.mxu0 %v4828_v6 }
0x2dfb   : > { %10603 = vmatprep.subr.mxu0 %v4822_v7 }
0x2dfc   : > { %10604 = vmatpush3.msra.mxu0 %v4822_v7  ;;  %v4820_v8 = vpop.permute.xlu1 %4819 }
0x2dfd   : > { %v11055_v12 = vpop.eup %11054  ;;  %10605 = vmatprep.subr.mxu0 %v4820_v8 }
0x2dfe   : > { %v5185_v9 = vadd.f32 1.0, %v11055_v12  ;;  %v4818_v10 = vpop.permute.xlu0 %4817  ;;  %10606 = vmatpush3.msra.mxu0 %v4820_v8 }
0x2dff   : > { %v11057_v11 = vpop.eup %11056  ;;  %10607 = vmatprep.subr.mxu0 %v4818_v10 }
0x2e00   : > { %v5184_v14 = vadd.f32 1.0, %v11057_v11  ;;  %10608 = vmatpush3.msra.mxu0 %v4818_v10  ;;  %v4816_v15 = vpop.permute.xlu1 %4815  ;;  %11062 = vrcp.f32 %v5185_v9 }
0x2e01   : > { %v11059_v19 = vpop.eup %11058  ;;  %10609 = vmatprep.subr.mxu0 %v4816_v15 }
0x2e02   : > { %11064 = vrcp.f32 %v5184_v14  ;;  %v5187_v22 = vadd.f32 1.0, %v11059_v19  ;;  %10610 = vmatpush3.msra.mxu0 %v4816_v15 }
0x2e03   : > { %v11061_v23 = vpop.eup %11060  ;;  %10611 = vmatprep.subr.mxu0 %v10594_v52 }
0x2e04   : > { %v5186_v24 = vadd.f32 1.0, %v11061_v23  ;;  %10612 = vmatpush3.msra.mxu0 %v10594_v52  ;;  %11066 = vrcp.f32 %v5187_v22 }
0x2e05   : > { %10613 = vmatprep.subr.mxu0 %v11763_v53 }
0x2e06   : > { %11068 = vrcp.f32 %v5186_v24  ;;  %10614 = vmatpush3.msra.mxu0 %v11763_v53 }
0x2e07   : > { %10615 = vmatprep.subr.mxu0 %v11758_v46 }
0x2e08   : > { %10616 = vmatpush3.msra.mxu0 %v11758_v46 }
0x2e09   : > { %10617 = vmatprep.subr.mxu0 %v11760_v51 }
0x2e0a   : > { %10618 = vmatpush3.msra.mxu0 %v11760_v51 }
0x2e0b   : > { %10620 = vmatmul.mubr.msk.f32.vlgmr.msra.gmra.mxu0 %vm523_vm1, %v11123_v26  ;;  %10663 = vmatprep.subr.mxu0 %v9791_v25 }
0x2e0c   : > { %10622 = vmatprep.mubr.msk.f32.mxu0 %vm523_vm1, %v11124_v27  ;;  %10664 = vmatpush3.msra.mxu0 %v9791_v25 }
0x2e0d   : > { %v11063_v28 = vpop.eup %11062 }
0x2e0e   : > { %v5197_v34 = vmul.f32 %v11063_v28, %v11779_v56 }
0x2e0f   : > { %v11065_v29 = vpop.eup %11064  ;;  %10623 = vmatmul.mubr.msk.f32.gmra.mxu0 %vm523_vm1, %v11125_v32 }
0x2e10   : > { %v5196_v33 = vmul.f32 %v11065_v29, %v11782_v57 }
0x2e11   : > { %v11067_v35 = vpop.eup %11066 }
0x2e12   : > { %10665 = vmatprep.mubr.msk.f32.mxu0 %vm388_vm0, %v5196_v33  ;;  %v5199_v42 = vmul.f32 %v11067_v35, %v11785_v47 }
0x2e13   : > { %v11069_v40 = vpop.eup %11068  ;;  %10666 = vmatmul.mubr.msk.f32.vlgmr.msra.gmra.mxu0 %vm388_vm0, %v5197_v34 }
0x2e14   : > { %v5198_v41 = vmul.f32 %v11069_v40, %v11788_v21 }
0x2e16   : > { %10668 = vmatprep.mubr.msk.f32.mxu0 %vm388_vm0, %v5198_v41 }
0x2e17   : > { %10669 = vmatmul.mubr.msk.f32.gmra.mxu0 %vm388_vm0, %v5199_v42 }
0x2e18   : > { %10695 = vmatprep.mubr.msk.f32.mxu0 %vm523_vm1, %v11728_v17 }
0x2ecb   : > { %v10621_v44 = vpop.f32.mrf.mxu0 }
0x2ecc   : > { %v4916_v45 = vadd.f32 %v10621_v44, %v9767_v43 }
0x2ecd   : > { %v4910_v49 = vpop.f32.mrf.mxu0 }
0x2ece   : > { %4930 = vst.msk [vmem:[%s11816_s13 + $0x8] sm:$0xff] %vm388_vm0, %v4916_v45  ;;  %v4911_v46 = vadd.f32 %v9767_v43, %v4910_v49  ;;  %v5572_v45 = vld [vmem:[#allocation2 + $0x20] sm:$0xff] }
0x2ecf   : > { %v10624_v51 = vpop.f32.mrf.mxu0 }
0x2ed0   : > { %4929 = vst.msk [vmem:[%s11816_s13] sm:$0xff] %vm388_vm0, %v4911_v46  ;;  %v4926_v17 = vadd.f32 %v10624_v51, %v9767_v43 }
0x2ed1   : > { %v4920_v52 = vpop.f32.mrf.mxu0 }
0x2ed2   : > { %4932 = vst.msk [vmem:[%s11816_s13 + $0x18] sm:$0xff] %vm388_vm0, %v4926_v17  ;;  %v4921_v53 = vadd.f32 %v9767_v43, %v4920_v52 }
0x2ed3   : > { %v10667_v54 = vpop.f32.mrf.mxu0 }
0x2ed4   : > { %4931 = vst.msk [vmem:[%s11816_s13 + $0x10] sm:$0xff] %vm388_vm0, %v4921_v53 }
0x2ed5   : > { %v5280_v55 = vpop.f32.mrf.mxu0 }
0x2ed7   : > { %v10670_v56 = vpop.f32.mrf.mxu0 }
0x2ed8   : > { %5321 = vrot.lane.b32.xlu0 %v10670_v56, %s11172_s19 }
0x2ed9   : > { %v5290_v58 = vpop.f32.mrf.mxu0 }
0x2eda   : > { %5319 = vrot.lane.b32.xlu1 %v5290_v58, %s11172_s19 }
0x2edc   : > { %5317 = vrot.lane.b32.xlu0 %v10667_v54, %s11172_s19 }
0x2ede   : > { %5315 = vrot.lane.b32.xlu1 %v5280_v55, %s11172_s19 }
0x2ee0   : > { %5309 = vrot.lane.b32.xlu0 %v10670_v56, %s11173_s20 }
0x2ee2   : > { %5307 = vrot.lane.b32.xlu1 %v5290_v58, %s11173_s20 }
0x2ee4   : > { %5305 = vrot.lane.b32.xlu0 %v10667_v54, %s11173_s20 }
0x2ee6   : > { %5303 = vrot.lane.b32.xlu1 %v5280_v55, %s11173_s20 }
0x2f4a   : > { %v5322_v61 = vpop.permute.xlu0 %5321 }
0x2f4b   : > { %10671 = vmatprep.subr.mxu0 %v5322_v61 }
0x2f4c   : > { %10672 = vmatpush3.msra.mxu0 %v5322_v61  ;;  %v5320_v57 = vpop.permute.xlu1 %5319  ;;  %v9812_v61 = vld [vmem:[%s11294_s26 + $0x12] ss:$0 sm:$0xff] }
0x2f4d   : > { %10673 = vmatprep.subr.mxu0 %v5320_v57 }
0x2f4e   : > { %v5318_v63 = vpop.permute.xlu0 %5317  ;;  %10674 = vmatpush3.msra.mxu0 %v5320_v57 }
0x2f4f   : > { %10675 = vmatprep.subr.mxu0 %v5318_v63 }
0x2f50   : > { %10676 = vmatpush3.msra.mxu0 %v5318_v63  ;;  %v5316_v0 = vpop.permute.xlu1 %5315 }
0x2f51   : > { %10677 = vmatprep.subr.mxu0 %v5316_v0 }
0x2f52   : > { %v5310_v47 = vpop.permute.xlu0 %5309  ;;  %10678 = vmatpush3.msra.mxu0 %v5316_v0 }
0x2f53   : > { %10679 = vmatprep.subr.mxu0 %v5310_v47 }
0x2f54   : > { %10680 = vmatpush3.msra.mxu0 %v5310_v47  ;;  %v5308_v1 = vpop.permute.xlu1 %5307 }
0x2f55   : > { %10681 = vmatprep.subr.mxu0 %v5308_v1 }
0x2f56   : > { %v5306_v2 = vpop.permute.xlu0 %5305  ;;  %10682 = vmatpush3.msra.mxu0 %v5308_v1 }
0x2f57   : > { %10683 = vmatprep.subr.mxu0 %v5306_v2 }
0x2f58   : > { %10684 = vmatpush3.msra.mxu0 %v5306_v2  ;;  %v5304_v21 = vpop.permute.xlu1 %5303 }
0x2f59   : > { %10685 = vmatprep.subr.mxu0 %v5304_v21 }
0x2f5a   : > { %10686 = vmatpush3.msra.mxu0 %v5304_v21 }
0x2f5b   : > { %10687 = vmatprep.subr.mxu0 %v10670_v56 }
0x2f5c   : > { %10688 = vmatpush3.msra.mxu0 %v10670_v56  ;;  %v5573_v56 = vld [vmem:[#allocation2 + $0x28] sm:$0xff] }
0x2f5d   : > { %10689 = vmatprep.subr.mxu0 %v5290_v58 }
0x2f5e   : > { %10690 = vmatpush3.msra.mxu0 %v5290_v58  ;;  %v9817_v58 = vld [vmem:[%s11254_s18 + $0x88] sm:$0xff] }
0x2f5f   : > { %10691 = vmatprep.subr.mxu0 %v10667_v54 }
0x2f60   : > { %10692 = vmatpush3.msra.mxu0 %v10667_v54 }
0x2f61   : > { %10693 = vmatprep.subr.mxu0 %v5280_v55 }
0x2f62   : > { %10694 = vmatpush3.msra.mxu0 %v5280_v55 }
0x2f63   : > { %10696 = vmatmul.mubr.msk.f32.vlgmr.msra.gmra.mxu0 %vm523_vm1, %v11744_v31  ;;  %10736 = vmatprep.subr.mxu0 %v9817_v58 }
0x2f64   : > { %10698 = vmatprep.mubr.msk.f32.mxu0 %vm523_vm1, %v11747_v18  ;;  %10737 = vmatpush3.msra.mxu0 %v9817_v58 }
0x2f65   : > { %10741 = vmatprep.subr.mxu0 %v11174_v59 }
0x2f67   : > { %10699 = vmatmul.mubr.msk.f32.gmra.mxu0 %vm523_vm1, %v11754_v20 }
0x3023   : > { %v10697_v3 = vpop.f32.mrf.mxu0 }
0x3024   : > { %v5404_v5 = vadd.f32 %v10697_v3, %v9797_v62 }
0x3025   : > { %v5398_v6 = vpop.f32.mrf.mxu0 }
0x3026   : > { %v9803_v7 = vmul.f32 -1.442695, %v5404_v5  ;;  %v5399_v8 = vadd.f32 %v9797_v62, %v5398_v6 }
0x3027   : > { %v10700_v12 = vpop.f32.mrf.mxu0 }
0x3028   : > { %11070 = vpow2.f32 %v9803_v7  ;;  %v9802_v9 = vmul.f32 -1.442695, %v5399_v8  ;;  %v5414_v10 = vadd.f32 %v10700_v12, %v9797_v62 }
0x3029   : > { %v5408_v31 = vpop.f32.mrf.mxu0 }
0x302a   : > { %11072 = vpow2.f32 %v9802_v9  ;;  %v9805_v11 = vmul.f32 -1.442695, %v5414_v10  ;;  %v5409_v18 = vadd.f32 %v9797_v62, %v5408_v31 }
0x302c   : > { %11074 = vpow2.f32 %v9805_v11  ;;  %v9804_v14 = vmul.f32 -1.442695, %v5409_v18 }
0x302e   : > { %11076 = vpow2.f32 %v9804_v14  ;;  %v5771_v14 = vld [vmem:[#allocation2 + $0x40] sm:$0xff] }
0x3035   : > { %v11071_v20 = vpop.eup %11070 }
0x3036   : > { %v5430_v15 = vadd.f32 1.0, %v11071_v20  ;;  %v9823_v20 = vld [vmem:[%s11254_s18 + $0x90] sm:$0xff] }
0x3037   : > { %v11073_v19 = vpop.eup %11072 }
0x3038   : > { %v5429_v22 = vadd.f32 1.0, %v11073_v19  ;;  %11078 = vrcp.f32 %v5430_v15  ;;  %v9821_v15 = vld [vmem:[%s11294_s26 + $0x13] ss:$0 sm:$0xff] }
0x3039   : > { %v11075_v23 = vpop.eup %11074 }
0x303a   : > { %11080 = vrcp.f32 %v5429_v22  ;;  %v5432_v24 = vadd.f32 1.0, %v11075_v23 }
0x303b   : > { %v11077_v25 = vpop.eup %11076 }
0x303c   : > { %v5431_v26 = vadd.f32 1.0, %v11077_v25  ;;  %11082 = vrcp.f32 %v5432_v24 }
0x303e   : > { %11084 = vrcp.f32 %v5431_v26 }
0x3045   : > { %v11079_v27 = vpop.eup %11078 }
0x3046   : > { %v5442_v32 = vmul.f32 %v11079_v27, %v5404_v5 }
0x3047   : > { %v11081_v28 = vpop.eup %11080 }
0x3048   : > { %v5441_v29 = vmul.f32 %v11081_v28, %v5399_v8  ;;  %v11888_v28 = vld [vmem:[#allocation2 + $0x60] sm:$0xff] }
0x3049   : > { %v11083_v33 = vpop.eup %11082 }
0x304a   : > { %10703 = vmatprep.mubr.msk.f32.mxu1 %vm388_vm0, %v5441_v29  ;;  %v5444_v40 = vmul.f32 %v11083_v33, %v5414_v10  ;;  %v11895_v29 = vld [vmem:[%s11375_s29 + $0x38] sm:$0xff] }
0x304b   : > { %v11085_v34 = vpop.eup %11084  ;;  %10704 = vmatmul.mubr.msk.f32.vlgmr.msra.gmra.mxu1 %vm388_vm0, %v5442_v32  ;;  %v9826_v32 = vld [vmem:[%s11294_s26 + $0x14] ss:$0 sm:$0xff] }
0x304c   : > { %v5443_v35 = vmul.f32 %v11085_v34, %v5409_v18 }
0x304e   : > { %10706 = vmatprep.mubr.msk.f32.mxu1 %vm388_vm0, %v5443_v35  ;;  %v6021_v35 = vld [vmem:[#allocation2 + $0xc0] sm:$0x3] }
0x304f   : > { %10707 = vmatmul.mubr.msk.f32.gmra.mxu1 %vm388_vm0, %v5444_v40  ;;  %v11902_v40 = vld [vmem:[%s11375_s29 + $0x28] sm:$0xff] }
0x3050   : > { %10733 = vmatprep.mubr.msk.f32.mxu1 %vm523_vm1, %v5572_v45 }
0x310b   : > { %v10705_v41 = vpop.f32.mrf.mxu1 }
0x310d   : > { %v5525_v42 = vpop.f32.mrf.mxu1 }
0x310f   : > { %v10708_v43 = vpop.f32.mrf.mxu1 }
0x3110   : > { %5566 = vrot.lane.b32.xlu0 %v10708_v43, %s11172_s19 }
0x3111   : > { %v5535_v44 = vpop.f32.mrf.mxu1 }
0x3112   : > { %5564 = vrot.lane.b32.xlu1 %v5535_v44, %s11172_s19 }
0x3114   : > { %5562 = vrot.lane.b32.xlu0 %v10705_v41, %s11172_s19 }
0x3116   : > { %5560 = vrot.lane.b32.xlu1 %v5525_v42, %s11172_s19 }
0x3118   : > { %5554 = vrot.lane.b32.xlu0 %v10708_v43, %s11173_s20 }
0x311a   : > { %5552 = vrot.lane.b32.xlu1 %v5535_v44, %s11173_s20 }
0x311c   : > { %5550 = vrot.lane.b32.xlu0 %v10705_v41, %s11173_s20 }
0x311e   : > { %5548 = vrot.lane.b32.xlu1 %v5525_v42, %s11173_s20 }
0x3182   : > { %v5567_v49 = vpop.permute.xlu0 %5566 }
0x3183   : > { %10709 = vmatprep.subr.mxu1 %v5567_v49 }
0x3184   : > { %10710 = vmatpush3.msra.mxu1 %v5567_v49  ;;  %v5565_v46 = vpop.permute.xlu1 %5564 }
0x3185   : > { %10711 = vmatprep.subr.mxu1 %v5565_v46 }
0x3186   : > { %v5563_v51 = vpop.permute.xlu0 %5562  ;;  %10712 = vmatpush3.msra.mxu1 %v5565_v46 }
0x3187   : > { %10713 = vmatprep.subr.mxu1 %v5563_v51 }
0x3188   : > { %10714 = vmatpush3.msra.mxu1 %v5563_v51  ;;  %v5561_v17 = vpop.permute.xlu1 %5560 }
0x3189   : > { %10715 = vmatprep.subr.mxu1 %v5561_v17 }
0x318a   : > { %v5555_v52 = vpop.permute.xlu0 %5554  ;;  %10716 = vmatpush3.msra.mxu1 %v5561_v17 }
0x318b   : > { %10717 = vmatprep.subr.mxu1 %v5555_v52 }
0x318c   : > { %10718 = vmatpush3.msra.mxu1 %v5555_v52  ;;  %v5553_v53 = vpop.permute.xlu1 %5552 }
0x318d   : > { %10719 = vmatprep.subr.mxu1 %v5553_v53 }
0x318e   : > { %v5551_v54 = vpop.permute.xlu0 %5550  ;;  %10720 = vmatpush3.msra.mxu1 %v5553_v53 }
0x318f   : > { %10721 = vmatprep.subr.mxu1 %v5551_v54 }
0x3190   : > { %10722 = vmatpush3.msra.mxu1 %v5551_v54  ;;  %v5549_v55 = vpop.permute.xlu1 %5548 }
0x3191   : > { %10723 = vmatprep.subr.mxu1 %v5549_v55 }
0x3192   : > { %10724 = vmatpush3.msra.mxu1 %v5549_v55 }
0x3193   : > { %10725 = vmatprep.subr.mxu1 %v10708_v43 }
0x3194   : > { %10726 = vmatpush3.msra.mxu1 %v10708_v43  ;;  %v11912_v43 = vld [vmem:[%s11375_s29 + $0x30] sm:$0xff] }
0x3195   : > { %10727 = vmatprep.subr.mxu1 %v5535_v44 }
0x3196   : > { %10728 = vmatpush3.msra.mxu1 %v5535_v44 }
0x3197   : > { %10729 = vmatprep.subr.mxu1 %v10705_v41 }
0x3198   : > { %10730 = vmatpush3.msra.mxu1 %v10705_v41 }
0x3199   : > { %10731 = vmatprep.subr.mxu1 %v5525_v42 }
0x319a   : > { %10732 = vmatpush3.msra.mxu1 %v5525_v42  ;;  %v11909_v42 = vld [vmem:[%s11375_s29 + $0x20] sm:$0xff] }
0x319b   : > { %10734 = vmatmul.mubr.msk.f32.vlgmr.msra.gmra.mxu1 %vm523_vm1, %v5573_v56  ;;  %10756 = vmatprep.subr.mxu1 %v11174_v59 }
0x319c   : > { %10758 = vmatprep.mubr.msk.f32.mxu1 %vm11175_vm2, %v11174_v59  ;;  %10757 = vmatpush3.msra.mxu1 %v9823_v20  ;;  %v11942_v20 = vld [vmem:[%s11428_s9 + $0x30] sm:$0xff] }
0x319d   : > { %10761 = vmatprep.subr.mxu1 %v11174_v59 }
0x325b   : > { %v10735_v57 = vpop.f32.mrf.mxu1 }
0x325c   : > { %v5657_v63 = vadd.f32 %v10735_v57, %v9812_v61 }
0x325d   : > { %v5651_v0 = vpop.f32.mrf.mxu1 }
0x325e   : > { %v9816_v47 = vmul.f32 -1.442695, %v5657_v63  ;;  %v5652_v1 = vadd.f32 %v9812_v61, %v5651_v0 }
0x3260   : > { %11086 = vpow2.f32 %v9816_v47  ;;  %v9815_v2 = vmul.f32 -1.442695, %v5652_v1 }
0x3262   : > { %11088 = vpow2.f32 %v9815_v2 }
0x326d   : > { %v11087_v21 = vpop.eup %11086 }
0x326e   : > { %v5667_v60 = vadd.f32 1.0, %v11087_v21 }
0x326f   : > { %v11089_v62 = vpop.eup %11088 }
0x3270   : > { %v5666_v3 = vadd.f32 1.0, %v11089_v62  ;;  %11090 = vrcp.f32 %v5667_v60 }
0x3272   : > { %11092 = vrcp.f32 %v5666_v3 }
0x327d   : > { %v11091_v5 = vpop.eup %11090 }
0x327e   : > { %v5673_v8 = vmul.f32 %v11091_v5, %v5657_v63 }
0x327f   : > { %v11093_v6 = vpop.eup %11092 }
0x3280   : > { %v5672_v7 = vmul.f32 %v11093_v6, %v5652_v1 }
0x3282   : > { %10738 = vmatprep.mubr.msk.f32.mxu0 %vm388_vm0, %v5672_v7 }
0x3283   : > { %10739 = vmatmul.mubr.msk.f32.vlgmr.msra.gmra.mxu0 %vm388_vm0, %v5673_v8 }
0x3284   : > { %10753 = vmatprep.mubr.msk.f32.mxu0 %vm11175_vm2, %v11174_v59 }
0x3343   : > { %v10740_v12 = vpop.f32.mrf.mxu0 }
0x3344   : > { %5767 = vrot.lane.b32.xlu0 %v10740_v12, %s11172_s19 }
0x3345   : > { %v5748_v9 = vpop.f32.mrf.mxu0 }
0x3346   : > { %5765 = vrot.lane.b32.xlu1 %v5748_v9, %s11172_s19 }
0x3348   : > { %5761 = vrot.lane.b32.xlu0 %v10740_v12, %s11173_s20 }
0x334a   : > { %5759 = vrot.lane.b32.xlu1 %v5748_v9, %s11173_s20 }
0x33b6   : > { %v5768_v10 = vpop.permute.xlu0 %5767 }
0x33b7   : > { %10742 = vmatpush3.msra.mxu0 %v5768_v10 }
0x33b8   : > { %10743 = vmatprep.subr.mxu0 %v11174_v59  ;;  %v5766_v31 = vpop.permute.xlu1 %5765 }
0x33b9   : > { %10744 = vmatpush3.msra.mxu0 %v5766_v31 }
0x33ba   : > { %v5762_v11 = vpop.permute.xlu0 %5761  ;;  %10745 = vmatprep.subr.mxu0 %v11174_v59 }
0x33bb   : > { %10746 = vmatpush3.msra.mxu0 %v5762_v11  ;;  %v11931_v11 = vld [vmem:[%s11428_s9 + $0x28] sm:$0xff] }
0x33bc   : > { %10747 = vmatprep.subr.mxu0 %v11174_v59  ;;  %v5760_v18 = vpop.permute.xlu1 %5759 }
0x33bd   : > { %10748 = vmatpush3.msra.mxu0 %v5760_v18  ;;  %v11934_v18 = vld [vmem:[%s11428_s9 + $0x38] sm:$0xff] }
0x33be   : > { %10749 = vmatprep.subr.mxu0 %v11174_v59 }
0x33bf   : > { %10750 = vmatpush3.msra.mxu0 %v10740_v12 }
0x33c0   : > { %10751 = vmatprep.subr.mxu0 %v11174_v59 }
0x33c1   : > { %10752 = vmatpush3.msra.mxu0 %v5748_v9 }
0x33c2   : > { %10754 = vmatmul.mubr.msk.f32.vlgmr.msra.gmra.mxu0 %vm1228_vm3, %v5771_v14  ;;  %10770 = vmatprep.subr.mxu0 %v11174_v59  ;;  %v11939_v14 = vld [vmem:[%s11428_s9 + $0x20] sm:$0xff] }
0x33c3   : > { %10772 = vmatprep.mubr.msk.f32.mxu0 %vm11175_vm2, %v11174_v59 }
0x3482   : > { %v5846_v19 = vpop.f32.mrf.mxu0 }
0x3483   : > { %v5847_v22 = vadd.f32 %v9821_v15, %v5846_v19 }
0x3484   : > { %v10755_v23 = vpop.f32.mrf.mxu0 }
0x3485   : > { %10759 = vmatmul.mubr.msk.f32.vlgmr.msra.gmra.mxu1 %vm388_vm0, %v5847_v22 }
0x3486   : > { %10767 = vmatprep.mubr.msk.f32.mxu1 %vm11175_vm2, %v11174_v59 }
0x3545   : > { %v5921_v24 = vpop.f32.mrf.mxu1 }
0x3546   : > { %5926 = vrot.lane.b32.xlu1 %v5921_v24, %s11173_s20  ;;  %5929 = vrot.lane.b32.xlu0 %v5921_v24, %s11172_s19 }
0x3547   : > { %v10760_v25 = vpop.f32.mrf.mxu1 }
0x35b8   : > { %v5930_v26 = vpop.permute.xlu0 %5929  ;;  %v5927_v27 = vpop.permute.xlu1 %5926 }
0x35b9   : > { %10762 = vmatpush3.msra.mxu1 %v5930_v26 }
0x35ba   : > { %10763 = vmatprep.subr.mxu1 %v11174_v59 }
0x35bb   : > { %10764 = vmatpush3.msra.mxu1 %v5927_v27 }
0x35bc   : > { %10765 = vmatprep.subr.mxu1 %v11174_v59 }
0x35bd   : > { %10766 = vmatpush3.msra.mxu1 %v5921_v24 }
0x35be   : > { %10768 = vmatmul.mubr.msk.f32.vlgmr.msra.gmra.mxu1 %vm1391_vm4, %v11888_v28  ;;  %6199 = vmatprep.subr.mxu1 %v11895_v29 }
0x35bf   : > { %6233 = vmatprep.mubr.f32.mxu1 %v11174_v59  ;;  %6200 = vmatpush1.msra.mxu1 %v11912_v43 }
0x35c0   : > { %6393 = vmatprep.subr.mxu1 %v11934_v18 }
0x367e   : > { %v6007_v33 = vpop.f32.mrf.mxu1 }
0x367f   : > { %v11899_v34 = vadd.f32 %v9826_v32, %v6007_v33  ;;  %v6433_v32 = vld [vmem:[#allocation2 + $0x120] sm:$0xff] }
0x3680   : > { %v10769_v41 = vpop.f32.mrf.mxu1 }
0x3681   : > { %10771 = vmatpush3.msra.mxu0 %v11899_v34  ;;  %v9849_v41 = vld [vmem:[%s11254_s18 + $0x98] sm:$0xff] }
0x3682   : > { %10773 = vmatmul.mubr.msk.f32.vlgmr.msra.gmra.mxu0 %vm388_vm0, %v6021_v35  ;;  %6128 = vmatprep.subr.mxu0 %v11902_v40 }
0x3683   : > { %6162 = vmatprep.mubr.f32.mxu0 %v11174_v59  ;;  %6129 = vmatpush1.msra.mxu0 %v11909_v42 }
0x3684   : > { %6323 = vmatprep.subr.mxu0 %v11931_v11 }
0x3742   : > { %v6091_v44 = vpop.f32.mrf.mxu0 }
0x3743   : > { %9837 = vmatmul.mubr.msk.f32.vlgmr.msra.gmra.mxu0 %vm388_vm0, %v6091_v44  ;;  %9838 = vmatmul.mubr.msk.f32.vlgmr.msra.gmra.mxu1 %vm388_vm0, %v6091_v44 }
0x3744   : > { %v10774_v45 = vpop.f32.mrf.mxu0  ;;  %6324 = vmatpush1.xpose.msra.mxu0 %v11939_v14  ;;  %6394 = vmatpush1.xpose.msra.mxu1 %v11942_v20 }
0x3745   : > { %10775 = vmatprep.subr.mxu0 %v11174_v59  ;;  %10780 = vmatprep.subr.mxu1 %v11174_v59 }
0x3803   : > { %v6164_v49 = vpop.f32.mrf.mxu0  ;;  %v6235_v46 = vpop.f32.mrf.mxu1 }
0x3804   : > { %v6240_v52 = vsel %vm1698_vm5, %v6164_v49, -inf  ;;  %v6242_v53 = vsel %vm1698_vm5, %v6235_v46, -inf }
0x3805   : > { %v6166_v51 = vpop.f32.mrf.mxu0  ;;  %v6237_v17 = vpop.f32.mrf.mxu1 }
0x3806   : > { %v6241_v54 = vsel %vm1698_vm5, %v6166_v51, -inf  ;;  %v6243_v55 = vsel %vm1698_vm5, %v6237_v17, -inf }
0x3807   : > { %v6244_v56 = vmax.f32 %v6240_v52, %v6241_v54  ;;  %v6245_v58 = vmax.f32 %v6242_v53, %v6243_v55  ;;  %v9852_v52 = vld [vmem:[%s11294_s26 + $0x15] ss:$0 sm:$0xff] }
0x3809   : > { %v6246_v61 = vmax.f32 %v6244_v56, %v6245_v58 }
0x380b   : > { %6247 = vmax.xlane.f32.xlu0 %v6246_v61 }
0x3894   : > { %v6248_v57 = vpop.xlane.xlu0 %6247 }
0x3895   : > { %vm6249_vm15 = vcmp.ge.f32.partialorder %v6164_v49, %v6248_v57  ;;  %vm6250_vm10 = vcmp.ge.f32.partialorder %v6166_v51, %v6248_v57  ;;  %vm6251_vm14 = vcmp.ge.f32.partialorder %v6235_v46, %v6248_v57  ;;  %vm6252_vm11 = vcmp.ge.f32.partialorder %v6237_v17, %v6248_v57 }
0x3896   : > { %v6253_v63 = vsel %vm6249_vm15, %v11405_v36, 512  ;;  %v6254_v0 = vsel %vm6250_vm10, %v11408_v37, 512  ;;  %v6255_v47 = vsel %vm6251_vm14, %v11411_v38, 512  ;;  %v6256_v1 = vsel %vm6252_vm11, %v11414_v39, 512 }
0x3897   : > { %v6257_v2 = vsel %vm1698_vm5, %v6253_v63, 2147483647  ;;  %v6258_v21 = vsel %vm1698_vm5, %v6254_v0, 2147483647  ;;  %v6259_v60 = vsel %vm1698_vm5, %v6255_v47, 2147483647 }
0x3898   : > { %v6260_v62 = vsel %vm1698_vm5, %v6256_v1, 2147483647  ;;  %vm6261_vm13 = vcmp.lt.s32.totalorder %v6257_v2, %v6258_v21  ;;  %v6682_v63 = vld [vmem:[#allocation2 + $0xe0] sm:$0xf] }
0x3899   : > { %vm6263_vm6 = vcmp.lt.s32.totalorder %v6259_v60, %v6260_v62  ;;  %v6262_v3 = vsel %vm6261_vm13, %v6257_v2, %v6258_v21 }
0x389a   : > { %v6264_v5 = vsel %vm6263_vm6, %v6259_v60, %v6260_v62 }
0x389b   : > { %vm6265_vm12 = vcmp.lt.s32.totalorder %v6262_v3, %v6264_v5 }
0x389c   : > { %v6266_v6 = vsel %vm6265_vm12, %v6262_v3, %v6264_v5 }
0x389d   : > { %v6268_v7 = vshra.s32 %v6266_v6, 16  ;;  %v6267_v12 = vand.u32 65535, %v6266_v6 }
0x389f   : > { %v6270_v8 = vcvt.s32.f32 %v6268_v7  ;;  %v6269_v10 = vcvt.s32.f32 %v6267_v12 }
0x38a1   : > { %6271 = vmin.xlane.f32.xlu1 %v6270_v8 }
0x392a   : > { %v6272_v9 = vpop.xlane.xlu1 %6271 }
0x392b   : > { %vm6273_vm7 = vcmp.eq.f32.partialorder %v6270_v8, %v6272_v9  ;;  %v6278_v15 = vcvt.f32.s32 %v6272_v9 }
0x392c   : > { %v6274_v31 = vsel %vm6273_vm7, %v6269_v10, inf }
0x392d   : > { %6275 = vmin.xlane.f32.xlu0 %v6274_v31  ;;  %v6279_v22 = vshll.u32 %v6278_v15, 16 }
0x39b6   : > { %v6276_v19 = vpop.xlane.xlu0 %6275 }
0x39b7   : > { %v6277_v23 = vcvt.f32.s32 %v6276_v19 }
0x39b9   : > { %v6280_v24 = vadd.s32 %v6279_v22, %v6277_v23 }
0x39bb   : > { %vm6282_vm15 = vcmp.eq.s32.totalorder %v11408_v37, %v6280_v24  ;;  %vm6284_vm10 = vcmp.eq.s32.totalorder %v11414_v39, %v6280_v24  ;;  %vm6281_vm14 = vcmp.eq.s32.totalorder %v11405_v36, %v6280_v24  ;;  %vm6283_vm11 = vcmp.eq.s32.totalorder %v11411_v38, %v6280_v24 }
0x39bc   : > { %9843 = vmatprep.mubr.msk.f32.mxu0 %vm6282_vm15, %v11176_v4  ;;  %9845 = vmatprep.mubr.msk.f32.mxu1 %vm6284_vm10, %v11176_v4 }
0x39bd   : > { %9844 = vmatmul.mubr.msk.f32.vlgmr.msra.gmra.mxu0 %vm6281_vm14, %v11176_v4  ;;  %9846 = vmatmul.mubr.msk.f32.vlgmr.msra.gmra.mxu1 %vm6283_vm11, %v11176_v4 }
0x39be   : > { %10777 = vmatprep.mubr.msk.f32.mxu0 %vm11175_vm2, %v11174_v59  ;;  %10782 = vmatprep.mubr.msk.f32.mxu1 %vm11175_vm2, %v11174_v59 }
0x39bf   : > { %10781 = vmatpush3.msra.mxu1 %v9849_v41 }
0x39c0   : > { %10794 = vmatprep.subr.mxu1 %v11174_v59 }
0x3a7d   : > { %v6359_v25 = vpop.f32.mrf.mxu0  ;;  %v6429_v26 = vpop.f32.mrf.mxu1 }
0x3a7e   : > { %v6430_v27 = vadd.f32 %v6429_v26, %v6359_v25 }
0x3a7f   : > { %v6361_v33 = vpop.f32.mrf.mxu0  ;;  %v6431_v35 = vpop.f32.mrf.mxu1 }
0x3a80   : > { %10776 = vmatpush3.msk.msra.mxu0 %vm1698_vm5, %v6430_v27 }
0x3a81   : > { %10778 = vmatmul.mubr.msk.f32.vlgmr.msra.gmra.mxu0 %vm1894_vm8, %v6433_v32  ;;  %10785 = vmatprep.subr.mxu0 %v11174_v59 }
0x3a82   : > { %10791 = vmatprep.mubr.msk.f32.mxu0 %vm11175_vm2, %v11174_v59 }
0x3b41   : > { %v6506_v44 = vpop.f32.mrf.mxu0 }
0x3b42   : > { %10783 = vmatmul.mubr.msk.f32.vlgmr.msra.gmra.mxu1 %vm388_vm0, %v6506_v44  ;;  %v6667_v56 = vmul.f32 0.5, %v6506_v44 }
0x3b43   : > { %v10779_v45 = vpop.f32.mrf.mxu0  ;;  %10796 = vmatprep.mubr.msk.f32.mxu1 %vm11175_vm2, %v11174_v59 }
0x3c02   : > { %v6581_v49 = vpop.f32.mrf.mxu1 }
0x3c03   : > { %6586 = vrot.lane.b32.xlu1 %v6581_v49, %s11173_s20  ;;  %6589 = vrot.lane.b32.xlu0 %v6581_v49, %s11172_s19 }
0x3c04   : > { %v10784_v46 = vpop.f32.mrf.mxu1 }
0x3c75   : > { %v6590_v51 = vpop.permute.xlu0 %6589  ;;  %v6587_v17 = vpop.permute.xlu1 %6586 }
0x3c76   : > { %10786 = vmatpush3.msra.mxu0 %v6590_v51 }
0x3c77   : > { %10787 = vmatprep.subr.mxu0 %v11174_v59 }
0x3c78   : > { %10788 = vmatpush3.msra.mxu0 %v6587_v17 }
0x3c79   : > { %10789 = vmatprep.subr.mxu0 %v11174_v59 }
0x3c7a   : > { %10790 = vmatpush3.msra.mxu0 %v6581_v49 }
0x3c7b   : > { %10792 = vmatmul.mubr.msk.f32.vlgmr.msra.gmra.mxu0 %vm1391_vm4, %v11888_v28  ;;  %6860 = vmatprep.subr.mxu0 %v11895_v29 }
0x3c7c   : > { %6861 = vmatpush1.msra.mxu0 %v11912_v43  ;;  %6894 = vmatprep.mubr.f32.mxu0 %v11174_v59 }
0x3c7d   : > { %7054 = vmatprep.subr.mxu0 %v11934_v18 }
0x3d3b   : > { %v6663_v53 = vpop.f32.mrf.mxu0 }
0x3d3c   : > { %v6664_v54 = vadd.f32 %v9852_v52, %v6663_v53 }
0x3d3d   : > { %v10793_v55 = vpop.f32.mrf.mxu0 }
0x3d3e   : > { %v6668_v58 = vmul.f32 0.5, %v6664_v54 }
0x3d40   : > { %v11981_v61 = vadd.f32 %v6668_v58, %v6667_v56  ;;  %v7094_v58 = vld [vmem:[#allocation2 + $0x140] sm:$0xff] }
0x3d42   : > { %v11985_v57 = vsub.f32 %v11899_v34, %v11981_v61 }
0x3d44   : > { %10795 = vmatpush3.msra.mxu1 %v11985_v57 }
0x3d45   : > { %10797 = vmatmul.mubr.msk.f32.vlgmr.msra.gmra.mxu1 %vm388_vm0, %v6682_v63  ;;  %6789 = vmatprep.subr.mxu1 %v11902_v40 }
0x3d46   : > { %6790 = vmatpush1.msra.mxu1 %v11909_v42  ;;  %6823 = vmatprep.mubr.f32.mxu1 %v11174_v59 }
0x3d47   : > { %6984 = vmatprep.subr.mxu1 %v11931_v11 }
0x3e05   : > { %v6752_v0 = vpop.f32.mrf.mxu1 }
0x3e06   : > { %9855 = vmatmul.mubr.msk.f32.vlgmr.msra.gmra.mxu1 %vm388_vm0, %v6752_v0  ;;  %9856 = vmatmul.mubr.msk.f32.vlgmr.msra.gmra.mxu0 %vm388_vm0, %v6752_v0 }
0x3e07   : > { %v10798_v47 = vpop.f32.mrf.mxu1  ;;  %6985 = vmatpush1.xpose.msra.mxu1 %v11939_v14  ;;  %7055 = vmatpush1.xpose.msra.mxu0 %v11942_v20 }
0x3e08   : > { %10799 = vmatprep.subr.mxu1 %v11174_v59  ;;  %10804 = vmatprep.subr.mxu0 %v11174_v59  ;;  %v9867_v47 = vld [vmem:[%s11254_s18 + $0xa0] sm:$0xff] }
0x3ec6   : > { %v6825_v1 = vpop.f32.mrf.mxu1  ;;  %v6896_v2 = vpop.f32.mrf.mxu0 }
0x3ec7   : > { %v6901_v62 = vsel %vm2363_vm9, %v6825_v1, -inf  ;;  %v6903_v3 = vsel %vm2363_vm9, %v6896_v2, -inf }
0x3ec8   : > { %v6827_v21 = vpop.f32.mrf.mxu1  ;;  %v6898_v60 = vpop.f32.mrf.mxu0 }
0x3ec9   : > { %v6902_v5 = vsel %vm2363_vm9, %v6827_v21, -inf  ;;  %v6904_v6 = vsel %vm2363_vm9, %v6898_v60, -inf }
0x3eca   : > { %v6905_v7 = vmax.f32 %v6901_v62, %v6902_v5  ;;  %v6906_v8 = vmax.f32 %v6903_v3, %v6904_v6  ;;  %v2798_v5 = vsub.f32 %v11653_v48, %v11382_v16  ;;  %v2133_v6 = vsub.f32 %v11481_v30, %v11382_v16 }
0x3ecc   : > { %v6907_v12 = vmax.f32 %v6905_v7, %v6906_v8  ;;  %v3463_v7 = vsub.f32 %v11657_v50, %v11382_v16  ;;  %v2799_v8 = vmul.f32 %v2798_v5, %v2798_v5 }
0x3ece   : > { %6908 = vmax.xlane.f32.xlu1 %v6907_v12  ;;  %v3964_v12 = vsub.f32 %v11660_v13, %v11382_v16 }
0x3f57   : > { %v6909_v9 = vpop.xlane.xlu1 %6908 }
0x3f58   : > { %vm6910_vm5 = vcmp.ge.f32.partialorder %v6825_v1, %v6909_v9  ;;  %vm6911_vm8 = vcmp.ge.f32.partialorder %v6827_v21, %v6909_v9  ;;  %vm6912_vm13 = vcmp.ge.f32.partialorder %v6896_v2, %v6909_v9  ;;  %vm6913_vm6 = vcmp.ge.f32.partialorder %v6898_v60, %v6909_v9 }
0x3f59   : > { %v6914_v10 = vsel %vm6910_vm5, %v11405_v36, 512  ;;  %v6915_v31 = vsel %vm6911_vm8, %v11408_v37, 512  ;;  %v6916_v15 = vsel %vm6912_vm13, %v11411_v38, 512  ;;  %v6917_v19 = vsel %vm6913_vm6, %v11414_v39, 512 }
0x3f5a   : > { %v6918_v22 = vsel %vm2363_vm9, %v6914_v10, 2147483647  ;;  %v6919_v23 = vsel %vm2363_vm9, %v6915_v31, 2147483647  ;;  %v6920_v24 = vsel %vm2363_vm9, %v6916_v15, 2147483647  ;;  %v2134_v9 = vmul.f32 %v2133_v6, %v2133_v6 }
0x3f5b   : > { %v6921_v25 = vsel %vm2363_vm9, %v6917_v19, 2147483647  ;;  %vm6922_vm12 = vcmp.lt.s32.totalorder %v6918_v22, %v6919_v23  ;;  %vm12268_vm13 = vcmask 31744   ;;  %v3464_v10 = vmul.f32 %v3463_v7, %v3463_v7 }
0x3f5c   : > { %vm6924_vm7 = vcmp.lt.s32.totalorder %v6920_v24, %v6921_v25  ;;  %v6923_v26 = vsel %vm6922_vm12, %v6918_v22, %v6919_v23  ;;  %v6672_v31 = vsub.f32 %v11981_v61, %v11899_v34  ;;  %v2800_v15 = vsel %vm388_vm0, %v2799_v8, 0.0 }
0x3f5d   : > { %v6925_v27 = vsel %vm6924_vm7, %v6920_v24, %v6921_v25  ;;  %v3965_v19 = vmul.f32 %v3964_v12, %v3964_v12  ;;  %v2135_v48 = vsel %vm388_vm0, %v2134_v9, 0.0  ;;  %v3465_v30 = vsel %vm388_vm0, %v3464_v10, 0.0 }
0x3f5e   : > { %vm6926_vm15 = vcmp.lt.s32.totalorder %v6923_v26, %v6925_v27  ;;  %v6673_v22 = vmul.f32 %v6672_v31, %v6672_v31  ;;  %v2801_v23 = vrot.slane %v2800_v15, 4  ;;  %v2136_v24 = vrot.slane %v2135_v48, 4 }
0x3f5f   : > { %v6927_v32 = vsel %vm6926_vm15, %v6923_v26, %v6925_v27  ;;  %v3966_v50 = vsel %vm388_vm0, %v3965_v19, 0.0  ;;  %v3466_v25 = vrot.slane %v3465_v30, 4  ;;  %v9870_v27 = vld [vmem:[%s11294_s26 + $0x16] ss:$0 sm:$0xff] }
0x3f60   : > { %v6929_v33 = vshra.s32 %v6927_v32, 16  ;;  %v6928_v41 = vand.u32 65535, %v6927_v32  ;;  %v6674_v16 = vsel %vm388_vm0, %v6673_v22, 0.0  ;;  %v2802_v13 = vadd.f32 %v2801_v23, %v2800_v15 }
0x3f61   : > { %v3967_v26 = vrot.slane %v3966_v50, 4  ;;  %v2137_v32 = vadd.f32 %v2136_v24, %v2135_v48 }
0x3f62   : > { %v6931_v35 = vcvt.s32.f32 %v6929_v33  ;;  %v6930_v45 = vcvt.s32.f32 %v6928_v41  ;;  %v3467_v33 = vadd.f32 %v3466_v25, %v3465_v30 }
0x3f64   : > { %6932 = vmin.xlane.f32.xlu0 %v6931_v35 }
0x3fed   : > { %v6933_v44 = vpop.xlane.xlu0 %6932 }
0x3fee   : > { %vm6934_vm10 = vcmp.eq.f32.partialorder %v6931_v35, %v6933_v44  ;;  %v6939_v46 = vcvt.f32.s32 %v6933_v44  ;;  %v6675_v35 = vrot.slane %v6674_v16, 4 }
0x3fef   : > { %v6935_v49 = vsel %vm6934_vm10, %v6930_v45, inf  ;;  %v2803_v45 = vrot.slane %v2802_v13, 2 }
0x3ff0   : > { %6936 = vmin.xlane.f32.xlu0 %v6935_v49  ;;  %v6940_v17 = vshll.u32 %v6939_v46, 16  ;;  %v3968_v49 = vadd.f32 %v3967_v26, %v3966_v50 }
0x4079   : > { %v6937_v51 = vpop.xlane.xlu0 %6936 }
0x407a   : > { %v6938_v52 = vcvt.f32.s32 %v6937_v51 }
0x407c   : > { %v6941_v53 = vadd.s32 %v6940_v17, %v6938_v52  ;;  %v2138_v52 = vrot.slane %v2137_v32, 2 }
0x407e   : > { %vm6943_vm14 = vcmp.eq.s32.totalorder %v11408_v37, %v6941_v53  ;;  %vm6945_vm11 = vcmp.eq.s32.totalorder %v11414_v39, %v6941_v53  ;;  %vm6942_vm5 = vcmp.eq.s32.totalorder %v11405_v36, %v6941_v53  ;;  %vm6944_vm8 = vcmp.eq.s32.totalorder %v11411_v38, %v6941_v53 }
0x407f   : > { %9861 = vmatprep.mubr.msk.f32.mxu1 %vm6943_vm14, %v11176_v4  ;;  %9863 = vmatprep.mubr.msk.f32.mxu0 %vm6945_vm11, %v11176_v4  ;;  %v3468_v53 = vrot.slane %v3467_v33, 2 }
0x4080   : > { %9862 = vmatmul.mubr.msk.f32.vlgmr.msra.gmra.mxu1 %vm6942_vm5, %v11176_v4  ;;  %9864 = vmatmul.mubr.msk.f32.vlgmr.msra.gmra.mxu0 %vm6944_vm8, %v11176_v4 }
0x4081   : > { %10801 = vmatprep.mubr.msk.f32.mxu1 %vm11175_vm2, %v11174_v59  ;;  %10806 = vmatprep.mubr.msk.f32.mxu0 %vm11175_vm2, %v11174_v59 }
0x4082   : > { %10805 = vmatpush3.msra.mxu0 %v9867_v47  ;;  %v7343_v47 = vld [vmem:[#allocation2 + $0x100] sm:$0x3f] }
0x4083   : > { %10818 = vmatprep.subr.mxu0 %v11174_v59 }
0x4140   : > { %v7020_v54 = vpop.f32.mrf.mxu1  ;;  %v7090_v55 = vpop.f32.mrf.mxu0 }
0x4141   : > { %v7091_v56 = vadd.f32 %v7090_v55, %v7020_v54  ;;  %v6676_v54 = vadd.f32 %v6675_v35, %v6674_v16 }
0x4142   : > { %v7022_v63 = vpop.f32.mrf.mxu1  ;;  %v7092_v0 = vpop.f32.mrf.mxu0 }
0x4143   : > { %10800 = vmatpush3.msk.msra.mxu1 %vm2363_vm9, %v7091_v56  ;;  %v2804_v56 = vadd.f32 %v2803_v45, %v2802_v13  ;;  %vm12269_vm9 = vcmask 1045504  }
0x4144   : > { %10802 = vmatmul.mubr.msk.f32.vlgmr.msra.gmra.mxu1 %vm12268_vm13, %v7094_v58  ;;  %10809 = vmatprep.subr.mxu1 %v11174_v59  ;;  %v3969_v58 = vrot.slane %v3968_v49, 2  ;;  %vm12270_vm6 = vmmov %vm12269_vm9 }
0x4145   : > { %10815 = vmatprep.mubr.msk.f32.mxu1 %vm11175_vm2, %v11174_v59  ;;  %vm12271_vm12 = vmmov %vm12270_vm6 }
0x4146   : > { %vm12272_vm7 = vmmov %vm12270_vm6 }
0x4147   : > { %vm12273_vm5 = vmmov %vm12270_vm6 }
0x4148   : > { %vm12274_vm8 = vmmov %vm12273_vm5 }
0x4149   : > { %vm12275_vm13 = vmmov %vm12273_vm5 }
0x4204   : > { %v7167_v1 = vpop.f32.mrf.mxu1 }
0x4205   : > { %10807 = vmatmul.mubr.msk.f32.vlgmr.msra.gmra.mxu0 %vm388_vm0, %v7167_v1  ;;  %v7328_v51 = vmul.f32 0.5, %v7167_v1 }
0x4206   : > { %v10803_v2 = vpop.f32.mrf.mxu1  ;;  %10820 = vmatprep.mubr.msk.f32.mxu0 %vm11175_vm2, %v11174_v59 }
0x4207   : > { %v2139_v2 = vadd.f32 %v2138_v52, %v2137_v32 }
0x42c5   : > { %v7242_v21 = vpop.f32.mrf.mxu0 }
0x42c6   : > { %7247 = vrot.lane.b32.xlu0 %v7242_v21, %s11173_s20  ;;  %7250 = vrot.lane.b32.xlu1 %v7242_v21, %s11172_s19 }
0x42c7   : > { %v10808_v60 = vpop.f32.mrf.mxu0 }
0x42c8   : > { %v6677_v60 = vrot.slane %v6676_v54, 2 }
0x42ca   : > { %v6678_v6 = vadd.f32 %v6677_v60, %v6676_v54 }
0x42cc   : > { %v6679_v15 = vrot.slane %v6678_v6, 1 }
0x42ce   : > { %v6680_v50 = vadd.f32 %v6679_v15, %v6678_v6 }
0x4338   : > { %v7251_v62 = vpop.permute.xlu1 %7250  ;;  %v7248_v3 = vpop.permute.xlu0 %7247 }
0x4339   : > { %10810 = vmatpush3.msra.mxu1 %v7251_v62  ;;  %v2805_v62 = vrot.slane %v2804_v56, 1 }
0x433a   : > { %10811 = vmatprep.subr.mxu1 %v11174_v59 }
0x433b   : > { %10812 = vmatpush3.msra.mxu1 %v7248_v3  ;;  %v3970_v3 = vadd.f32 %v3969_v58, %v3968_v49  ;;  %v2806_v8 = vadd.f32 %v2805_v62, %v2804_v56 }
0x433c   : > { %10813 = vmatprep.subr.mxu1 %v11174_v59 }
0x433d   : > { %10814 = vmatpush3.msra.mxu1 %v7242_v21  ;;  %v3469_v21 = vadd.f32 %v3468_v53, %v3467_v33  ;;  %v3971_v12 = vrot.slane %v3970_v3, 1 }
0x433e   : > { %10816 = vmatmul.mubr.msk.f32.vlgmr.msra.gmra.mxu1 %vm1391_vm4, %v11888_v28  ;;  %7521 = vmatprep.subr.mxu1 %v11895_v29 }
0x433f   : > { %7522 = vmatpush1.msra.mxu1 %v11912_v43  ;;  %7555 = vmatprep.mubr.f32.mxu1 %v11174_v59  ;;  %v3470_v5 = vrot.slane %v3469_v21, 1  ;;  %v3972_v30 = vadd.f32 %v3971_v12, %v3970_v3 }
0x4340   : > { %7715 = vmatprep.subr.mxu1 %v11934_v18 }
0x4341   : > { %v3471_v31 = vadd.f32 %v3470_v5, %v3469_v21 }
0x43fe   : > { %v7324_v41 = vpop.f32.mrf.mxu1 }
0x43ff   : > { %v7325_v44 = vadd.f32 %v9870_v27, %v7324_v41 }
0x4400   : > { %v10817_v46 = vpop.f32.mrf.mxu1 }
0x4401   : > { %v7329_v17 = vmul.f32 0.5, %v7325_v44 }
0x4403   : > { %v7330_v55 = vadd.f32 %v7329_v17, %v7328_v51 }
0x4405   : > { %v12060_v63 = vadd.f32 %v7330_v55, %v11981_v61  ;;  %v12063_v0 = vsub.f32 %v11985_v57, %v7330_v55  ;;  %v2140_v57 = vrot.slane %v2139_v2, 1 }
0x4407   : > { %v7333_v1 = vsub.f32 %v12060_v63, %v11899_v34  ;;  %10819 = vmatpush3.msra.mxu0 %v12063_v0  ;;  %v2141_v10 = vadd.f32 %v2140_v57, %v2139_v2 }
0x4408   : > { %10821 = vmatmul.mubr.msk.f32.vlgmr.msra.gmra.mxu0 %vm388_vm0, %v7343_v47  ;;  %7450 = vmatprep.subr.mxu0 %v11902_v40 }
0x4409   : > { %v7334_v61 = vmul.f32 %v7333_v1, %v7333_v1  ;;  %7451 = vmatpush1.msra.mxu0 %v11909_v42  ;;  %7484 = vmatprep.mubr.f32.mxu0 %v11174_v59  ;;  %v2807_v48 = vadd.f32 %v2806_v8, %v2141_v10 }
0x440a   : > { %7645 = vmatprep.subr.mxu0 %v11931_v11 }
0x440b   : > { %v7335_v7 = vsel %vm388_vm0, %v7334_v61, 0.0  ;;  %v3472_v23 = vadd.f32 %v3471_v31, %v2807_v48 }
0x440c   : > { %v7336_v9 = vrot.slane %v7335_v7, 4 }
0x440d   : > { %v3973_v25 = vadd.f32 %v3972_v30, %v3472_v23 }
0x440e   : > { %v7337_v19 = vadd.f32 %v7336_v9, %v7335_v7 }
0x440f   : > { %v6681_v13 = vadd.f32 %v6680_v50, %v3973_v25  ;;  %v7755_v50 = vld [vmem:[#allocation2 + $0x160] sm:$0xff] }
0x4410   : > { %v7338_v22 = vrot.slane %v7337_v19, 2 }
0x4412   : > { %v7339_v24 = vadd.f32 %v7338_v22, %v7337_v19 }
0x4414   : > { %v7340_v16 = vrot.slane %v7339_v24, 1 }
0x4416   : > { %v7341_v26 = vadd.f32 %v7340_v16, %v7339_v24  ;;  %v9885_v16 = vld [vmem:[%s11254_s18 + $0xa8] sm:$0xff] }
0x4418   : > { %v12074_v27 = vadd.f32 %v7341_v26, %v6681_v13 }
0x44c8   : > { %v7413_v32 = vpop.f32.mrf.mxu0 }
0x44c9   : > { %9873 = vmatmul.mubr.msk.f32.vlgmr.msra.gmra.mxu0 %vm388_vm0, %v7413_v32  ;;  %9874 = vmatmul.mubr.msk.f32.vlgmr.msra.gmra.mxu1 %vm388_vm0, %v7413_v32 }
0x44ca   : > { %v10822_v33 = vpop.f32.mrf.mxu0  ;;  %7646 = vmatpush1.xpose.msra.mxu0 %v11939_v14  ;;  %7716 = vmatpush1.xpose.msra.mxu1 %v11942_v20 }
0x44cb   : > { %10823 = vmatprep.subr.mxu0 %v11174_v59  ;;  %10828 = vmatprep.subr.mxu1 %v11174_v59 }
0x4589   : > { %v7486_v35 = vpop.f32.mrf.mxu0  ;;  %v7557_v41 = vpop.f32.mrf.mxu1 }
0x458a   : > { %v7562_v49 = vsel %vm12269_vm9, %v7486_v35, -inf  ;;  %v7564_v46 = vsel %vm12270_vm6, %v7557_v41, -inf  ;;  %vm12276_vm9 = vmmov %vm12273_vm5 }
0x458b   : > { %v7488_v44 = vpop.f32.mrf.mxu0  ;;  %v7559_v45 = vpop.f32.mrf.mxu1 }
0x458c   : > { %v7563_v51 = vsel %vm12271_vm12, %v7488_v44, -inf  ;;  %v7565_v17 = vsel %vm12272_vm7, %v7559_v45, -inf }
0x458d   : > { %v7566_v52 = vmax.f32 %v7562_v49, %v7563_v51  ;;  %v7567_v53 = vmax.f32 %v7564_v46, %v7565_v17 }
0x458f   : > { %v7568_v54 = vmax.f32 %v7566_v52, %v7567_v53 }
0x4591   : > { %7569 = vmax.xlane.f32.xlu1 %v7568_v54 }
0x461a   : > { %v7570_v55 = vpop.xlane.xlu1 %7569 }
0x461b   : > { %vm7571_vm15 = vcmp.ge.f32.partialorder %v7486_v35, %v7570_v55  ;;  %vm7572_vm10 = vcmp.ge.f32.partialorder %v7488_v44, %v7570_v55  ;;  %vm7573_vm14 = vcmp.ge.f32.partialorder %v7557_v41, %v7570_v55  ;;  %vm7574_vm11 = vcmp.ge.f32.partialorder %v7559_v45, %v7570_v55 }
0x461c   : > { %v7575_v56 = vsel %vm7571_vm15, %v11405_v36, 512  ;;  %v7576_v58 = vsel %vm7572_vm10, %v11408_v37, 512  ;;  %v7577_v47 = vsel %vm7573_vm14, %v11411_v38, 512  ;;  %v7578_v2 = vsel %vm7574_vm11, %v11414_v39, 512 }
0x461d   : > { %v7579_v21 = vsel %vm12273_vm5, %v7575_v56, 2147483647  ;;  %v7580_v60 = vsel %vm12274_vm8, %v7576_v58, 2147483647  ;;  %v7581_v1 = vsel %vm12275_vm13, %v7577_v47, 2147483647 }
0x461e   : > { %v7582_v62 = vsel %vm12276_vm9, %v7578_v2, 2147483647  ;;  %vm7583_vm6 = vcmp.lt.s32.totalorder %v7579_v21, %v7580_v60  ;;  %vm12277_vm13 = vcmask 48128  }
0x461f   : > { %vm7585_vm12 = vcmp.lt.s32.totalorder %v7581_v1, %v7582_v62  ;;  %v7584_v3 = vsel %vm7583_vm6, %v7579_v21, %v7580_v60 }
0x4620   : > { %v7586_v61 = vsel %vm7585_vm12, %v7581_v1, %v7582_v62 }
0x4621   : > { %vm7587_vm7 = vcmp.lt.s32.totalorder %v7584_v3, %v7586_v61 }
0x4622   : > { %v7588_v57 = vsel %vm7587_vm7, %v7584_v3, %v7586_v61 }
0x4623   : > { %v7590_v5 = vshra.s32 %v7588_v57, 16  ;;  %v7589_v7 = vand.u32 65535, %v7588_v57 }
0x4625   : > { %v7592_v6 = vcvt.s32.f32 %v7590_v5  ;;  %v7591_v12 = vcvt.s32.f32 %v7589_v7 }
0x4627   : > { %7593 = vmin.xlane.f32.xlu0 %v7592_v6 }
0x46b0   : > { %v7594_v8 = vpop.xlane.xlu0 %7593 }
0x46b1   : > { %vm7595_vm15 = vcmp.eq.f32.partialorder %v7592_v6, %v7594_v8  ;;  %v7600_v10 = vcvt.f32.s32 %v7594_v8 }
0x46b2   : > { %v7596_v9 = vsel %vm7595_vm15, %v7591_v12, inf }
0x46b3   : > { %7597 = vmin.xlane.f32.xlu1 %v7596_v9  ;;  %v7601_v15 = vshll.u32 %v7600_v10, 16 }
0x473c   : > { %v7598_v31 = vpop.xlane.xlu1 %7597 }
0x473d   : > { %v7599_v19 = vcvt.f32.s32 %v7598_v31 }
0x473f   : > { %v7602_v48 = vadd.s32 %v7601_v15, %v7599_v19 }
0x4741   : > { %vm7604_vm10 = vcmp.eq.s32.totalorder %v11408_v37, %v7602_v48  ;;  %vm7606_vm14 = vcmp.eq.s32.totalorder %v11414_v39, %v7602_v48  ;;  %vm7603_vm11 = vcmp.eq.s32.totalorder %v11405_v36, %v7602_v48  ;;  %vm7605_vm5 = vcmp.eq.s32.totalorder %v11411_v38, %v7602_v48 }
0x4742   : > { %9879 = vmatprep.mubr.msk.f32.mxu0 %vm7604_vm10, %v11176_v4  ;;  %9881 = vmatprep.mubr.msk.f32.mxu1 %vm7606_vm14, %v11176_v4 }
0x4743   : > { %9880 = vmatmul.mubr.msk.f32.vlgmr.msra.gmra.mxu0 %vm7603_vm11, %v11176_v4  ;;  %9882 = vmatmul.mubr.msk.f32.vlgmr.msra.gmra.mxu1 %vm7605_vm5, %v11176_v4 }
0x4744   : > { %10825 = vmatprep.mubr.msk.f32.mxu0 %vm11175_vm2, %v11174_v59  ;;  %10830 = vmatprep.mubr.msk.f32.mxu1 %vm11175_vm2, %v11174_v59 }
0x4745   : > { %10829 = vmatpush3.msra.mxu1 %v9885_v16 }
0x4746   : > { %8037 = vmatprep.subr.mxu1 %v11902_v40 }
0x4803   : > { %v7681_v30 = vpop.f32.mrf.mxu0  ;;  %v7751_v22 = vpop.f32.mrf.mxu1 }
0x4804   : > { %v7752_v23 = vadd.f32 %v7751_v22, %v7681_v30 }
0x4805   : > { %v7683_v24 = vpop.f32.mrf.mxu0  ;;  %v7753_v25 = vpop.f32.mrf.mxu1 }
0x4806   : > { %10824 = vmatpush3.msk.msra.mxu0 %vm12274_vm8, %v7752_v23 }
0x4807   : > { %10826 = vmatmul.mubr.msk.f32.vlgmr.msra.gmra.mxu0 %vm12277_vm13, %v7755_v50  ;;  %10833 = vmatprep.subr.mxu0 %v11174_v59 }
0x4808   : > { %10839 = vmatprep.mubr.msk.f32.mxu0 %vm11175_vm2, %v11174_v59 }
0x48c7   : > { %v7828_v13 = vpop.f32.mrf.mxu0 }
0x48c8   : > { %10831 = vmatmul.mubr.msk.f32.vlgmr.msra.gmra.mxu1 %vm388_vm0, %v7828_v13  ;;  %v7989_v45 = vmul.f32 0.5, %v7828_v13  ;;  %v9905_v13 = vld [vmem:[%s11254_s18 + $0xb8] sm:$0xff] }
0x48c9   : > { %v10827_v26 = vpop.f32.mrf.mxu0  ;;  %8038 = vmatpush1.msra.mxu1 %v11909_v42  ;;  %8071 = vmatprep.mubr.f32.mxu1 %v11174_v59 }
0x48ca   : > { %8108 = vmatprep.subr.mxu1 %v11895_v29  ;;  %v9888_v29 = vld [vmem:[%s11294_s26 + $0x17] ss:$0 sm:$0xff]  ;;  %v9903_v26 = vld [vmem:[%s11294_s26 + $0x18] ss:$0 sm:$0xff] }
0x4988   : > { %v7903_v32 = vpop.f32.mrf.mxu1 }
0x4989   : > { %7911 = vrot.lane.b32.xlu0 %v7903_v32, %s11172_s19  ;;  %7908 = vrot.lane.b32.xlu1 %v7903_v32, %s11173_s20 }
0x498a   : > { %v10832_v33 = vpop.f32.mrf.mxu1 }
0x49fb   : > { %v7912_v35 = vpop.permute.xlu0 %7911  ;;  %v7909_v40 = vpop.permute.xlu1 %7908 }
0x49fc   : > { %10834 = vmatpush3.msra.mxu0 %v7912_v35 }
0x49fd   : > { %10835 = vmatprep.subr.mxu0 %v11174_v59 }
0x49fe   : > { %10836 = vmatpush3.msra.mxu0 %v7909_v40 }
0x49ff   : > { %10837 = vmatprep.subr.mxu0 %v11174_v59 }
0x4a00   : > { %10838 = vmatpush3.msra.mxu0 %v7903_v32 }
0x4a01   : > { %10840 = vmatmul.mubr.msk.f32.vlgmr.msra.gmra.mxu0 %vm1391_vm4, %v11888_v28  ;;  %8224 = vmatprep.subr.mxu0 %v11931_v11 }
0x4a02   : > { %8225 = vmatpush1.xpose.msra.mxu0 %v11939_v14 }
0x4a03   : > { %10842 = vmatprep.subr.mxu0 %v11174_v59 }
0x4ac1   : > { %v7985_v42 = vpop.f32.mrf.mxu0 }
0x4ac2   : > { %v7986_v41 = vadd.f32 %v9888_v29, %v7985_v42 }
0x4ac3   : > { %v10841_v44 = vpop.f32.mrf.mxu0 }
0x4ac4   : > { %v7990_v49 = vmul.f32 0.5, %v7986_v41 }
0x4ac6   : > { %v7991_v46 = vadd.f32 %v7990_v49, %v7989_v45 }
0x4ac8   : > { %v12128_v51 = vadd.f32 %v7991_v46, %v12060_v63  ;;  %v7993_v17 = vsub.f32 %v12063_v0, %v7991_v46 }
0x4aca   : > { %v7994_v52 = vsub.f32 %v12128_v51, %v11899_v34  ;;  %9890 = vmatmul.mubr.msk.f32.vlgmr.msra.gmra.mxu1 %vm388_vm0, %v7993_v17 }
0x4acb   : > { %8109 = vmatpush1.msra.mxu1 %v11912_v43  ;;  %8142 = vmatprep.mubr.f32.mxu1 %v11174_v59 }
0x4acc   : > { %v7995_v11 = vmul.f32 %v7994_v52, %v7994_v52  ;;  %8294 = vmatprep.subr.mxu1 %v11934_v18 }
0x4ace   : > { %v7996_v14 = vsel %vm388_vm0, %v7995_v11, 0.0  ;;  %9891 = vmatmul.mubr.msk.f32.vlgmr.msra.gmra.mxu1 %vm388_vm0, %v7993_v17 }
0x4acf   : > { %v7997_v63 = vrot.slane %v7996_v14, 4  ;;  %8295 = vmatpush1.xpose.msra.mxu1 %v11942_v20 }
0x4ad0   : > { %10847 = vmatprep.subr.mxu1 %v11174_v59 }
0x4ad1   : > { %v7998_v0 = vadd.f32 %v7997_v63, %v7996_v14 }
0x4ad3   : > { %v7999_v53 = vrot.slane %v7998_v0, 2 }
0x4ad5   : > { %v8000_v54 = vadd.f32 %v7999_v53, %v7998_v0 }
0x4ad7   : > { %v8001_v55 = vrot.slane %v8000_v54, 1 }
0x4ad9   : > { %v8002_v56 = vadd.f32 %v8001_v55, %v8000_v54  ;;  %v11126_v54 = vld [vmem:[#allocation2 + $0x60] sm:$0xff] }
0x4ada   : > { %v9910_v55 = vld [vmem:[%s11254_s18 + $0xc0] sm:$0xff] }
0x4adb   : > { %v12142_v43 = vadd.f32 %v8002_v56, %v12074_v27  ;;  %v9908_v56 = vld [vmem:[%s11294_s26 + $0x19] ss:$0 sm:$0xff] }
0x4b8a   : > { %v8073_v58 = vpop.f32.mrf.mxu1 }
0x4b8c   : > { %v8075_v47 = vpop.f32.mrf.mxu1 }
0x4b8d   : > { %v8149_v21 = vmax.f32 %v8073_v58, %v8075_v47 }
0x4b8e   : > { %v8144_v18 = vpop.f32.mrf.mxu1 }
0x4b90   : > { %v8146_v2 = vpop.f32.mrf.mxu1 }
0x4b91   : > { %v8150_v60 = vmax.f32 %v8144_v18, %v8146_v2 }
0x4b93   : > { %v8151_v1 = vmax.f32 %v8149_v21, %v8150_v60 }
0x4b95   : > { %8152 = vmax.xlane.f32.xlu1 %v8151_v1  ;;  %v9916_v1 = vld [vmem:[%s11254_s18 + $0xc8] sm:$0xff] }
0x4c1e   : > { %v8153_v62 = vpop.xlane.xlu1 %8152 }
0x4c1f   : > { %vm8154_vm9 = vcmp.ge.f32.partialorder %v8073_v58, %v8153_v62  ;;  %vm8155_vm6 = vcmp.ge.f32.partialorder %v8075_v47, %v8153_v62  ;;  %vm8156_vm12 = vcmp.ge.f32.partialorder %v8144_v18, %v8153_v62  ;;  %vm8157_vm7 = vcmp.ge.f32.partialorder %v8146_v2, %v8153_v62  ;;  %v9913_v62 = vld [vmem:[%s11294_s26 + $0x1a] ss:$0 sm:$0xff] }
0x4c20   : > { %v8158_v20 = vsel %vm8154_vm9, %v11405_v36, 512  ;;  %v8159_v3 = vsel %vm8155_vm6, %v11408_v37, 512  ;;  %v8160_v27 = vsel %vm8156_vm12, %v11411_v38, 512  ;;  %v8161_v61 = vsel %vm8157_vm7, %v11414_v39, 512 }
0x4c21   : > { %vm8162_vm15 = vcmp.lt.s32.totalorder %v8158_v20, %v8159_v3  ;;  %vm8164_vm10 = vcmp.lt.s32.totalorder %v8160_v27, %v8161_v61  ;;  %vm9463_vm6 = vcmask 57344  }
0x4c22   : > { %v8163_v57 = vsel %vm8162_vm15, %v8158_v20, %v8159_v3  ;;  %v8165_v5 = vsel %vm8164_vm10, %v8160_v27, %v8161_v61 }
0x4c23   : > { %vm8166_vm14 = vcmp.lt.s32.totalorder %v8163_v57, %v8165_v5 }
0x4c24   : > { %v8167_v6 = vsel %vm8166_vm14, %v8163_v57, %v8165_v5 }
0x4c25   : > { %v8169_v7 = vshra.s32 %v8167_v6, 16  ;;  %v8168_v12 = vand.u32 65535, %v8167_v6 }
0x4c27   : > { %v8171_v8 = vcvt.s32.f32 %v8169_v7  ;;  %v8170_v10 = vcvt.s32.f32 %v8168_v12 }
0x4c29   : > { %8172 = vmin.xlane.f32.xlu0 %v8171_v8 }
0x4cb2   : > { %v8173_v9 = vpop.xlane.xlu0 %8172 }
0x4cb3   : > { %vm8174_vm11 = vcmp.eq.f32.partialorder %v8171_v8, %v8173_v9  ;;  %v8179_v15 = vcvt.f32.s32 %v8173_v9  ;;  %v8908_v8 = vld [vmem:[#allocation2 + $0x80] sm:$0xff] }
0x4cb4   : > { %v8175_v31 = vsel %vm8174_vm11, %v8170_v10, inf }
0x4cb5   : > { %8176 = vmin.xlane.f32.xlu0 %v8175_v31  ;;  %v8180_v48 = vshll.u32 %v8179_v15, 16  ;;  %v8909_v31 = vld [vmem:[#allocation2 + $0x88] sm:$0xff]  ;;  %v9924_v15 = vld [vmem:[%s11254_s18 + $0xd0] sm:$0xff] }
0x4d3e   : > { %v8177_v19 = vpop.xlane.xlu0 %8176 }
0x4d3f   : > { %v8178_v30 = vcvt.f32.s32 %v8177_v19  ;;  %v9919_v19 = vld [vmem:[%s11294_s26 + $0x1b] ss:$0 sm:$0xff] }
0x4d41   : > { %v8181_v22 = vadd.s32 %v8180_v48, %v8178_v30 }
0x4d43   : > { %vm8183_vm5 = vcmp.eq.s32.totalorder %v11408_v37, %v8181_v22  ;;  %vm8185_vm8 = vcmp.eq.s32.totalorder %v11414_v39, %v8181_v22  ;;  %vm8182_vm13 = vcmp.eq.s32.totalorder %v11405_v36, %v8181_v22  ;;  %vm8184_vm9 = vcmp.eq.s32.totalorder %v11411_v38, %v8181_v22  ;;  %v9900_v37 = vld [vmem:[%s11254_s18 + $0xb0] sm:$0xff] }
0x4d44   : > { %9896 = vmatprep.mubr.msk.f32.mxu0 %vm8183_vm5, %v11176_v4  ;;  %9898 = vmatprep.mubr.msk.f32.mxu1 %vm8185_vm8, %v11176_v4 }
0x4d45   : > { %9897 = vmatmul.mubr.msk.f32.vlgmr.msra.gmra.mxu0 %vm8182_vm13, %v11176_v4  ;;  %9899 = vmatmul.mubr.msk.f32.vlgmr.msra.gmra.mxu1 %vm8184_vm9, %v11176_v4 }
0x4d46   : > { %10844 = vmatprep.mubr.msk.f32.mxu0 %vm11175_vm2, %v11174_v59  ;;  %10853 = vmatprep.mubr.msk.f32.mxu1 %vm11175_vm2, %v11174_v59 }
0x4d47   : > { %10843 = vmatpush3.msra.mxu0 %v9900_v37 }
0x4d48   : > { %10856 = vmatprep.subr.mxu0 %v11174_v59 }
0x4e05   : > { %v8260_v36 = vpop.f32.mrf.mxu0  ;;  %v8330_v38 = vpop.f32.mrf.mxu1 }
0x4e06   : > { %v8331_v39 = vadd.f32 %v8330_v38, %v8260_v36 }
0x4e07   : > { %v8262_v23 = vpop.f32.mrf.mxu0  ;;  %v8332_v50 = vpop.f32.mrf.mxu1 }
0x4e08   : > { %10845 = vmatmul.mubr.msk.f32.vlgmr.msra.gmra.mxu0 %vm388_vm0, %v8331_v39  ;;  %v8491_v40 = vmul.f32 0.5, %v8331_v39 }
0x4e09   : > { %10858 = vmatprep.mubr.msk.f32.mxu0 %vm11175_vm2, %v11174_v59  ;;  %10857 = vmatpush3.msra.mxu0 %v9905_v13 }
0x4e0a   : > { %10861 = vmatprep.subr.mxu0 %v11174_v59 }
0x4ec8   : > { %v8405_v4 = vpop.f32.mrf.mxu0 }
0x4ec9   : > { %8410 = vrot.lane.b32.xlu0 %v8405_v4, %s11173_s20  ;;  %8413 = vrot.lane.b32.xlu1 %v8405_v4, %s11172_s19 }
0x4eca   : > { %v10846_v24 = vpop.f32.mrf.mxu0 }
0x4f3b   : > { %v8414_v25 = vpop.permute.xlu1 %8413  ;;  %v8411_v16 = vpop.permute.xlu0 %8410 }
0x4f3c   : > { %10848 = vmatpush3.msra.mxu1 %v8414_v25 }
0x4f3d   : > { %10849 = vmatprep.subr.mxu1 %v11174_v59 }
0x4f3e   : > { %10850 = vmatpush3.msra.mxu1 %v8411_v16 }
0x4f3f   : > { %10851 = vmatprep.subr.mxu1 %v11174_v59 }
0x4f40   : > { %10852 = vmatpush3.msra.mxu1 %v8405_v4 }
0x4f41   : > { %10854 = vmatmul.mubr.msk.f32.vlgmr.msra.gmra.mxu1 %vm1391_vm4, %v11888_v28  ;;  %10870 = vmatprep.subr.mxu1 %v11174_v59 }
0x4f42   : > { %10872 = vmatprep.mubr.msk.f32.mxu1 %vm11175_vm2, %v11174_v59  ;;  %10871 = vmatpush3.msra.mxu1 %v9910_v55 }
0x4f43   : > { %10875 = vmatprep.subr.mxu1 %v11174_v59 }
0x5001   : > { %v8487_v32 = vpop.f32.mrf.mxu1 }
0x5002   : > { %v8488_v33 = vadd.f32 %v9903_v26, %v8487_v32  ;;  %v9107_v26 = vld [vmem:[#allocation2 + $0xa0] sm:$0xff] }
0x5003   : > { %v10855_v35 = vpop.f32.mrf.mxu1 }
0x5004   : > { %v8492_v29 = vmul.f32 0.5, %v8488_v33 }
0x5006   : > { %v8493_v42 = vadd.f32 %v8492_v29, %v8491_v40 }
0x5008   : > { %v8494_v41 = vadd.f32 %v8493_v42, %v12128_v51 }
0x500a   : > { %v8495_v28 = vsub.f32 %v8494_v41, %v11899_v34  ;;  %10859 = vmatmul.mubr.msk.f32.vlgmr.msra.gmra.mxu0 %vm388_vm0, %v8494_v41  ;;  %v9108_v41 = vld [vmem:[#allocation2 + $0xa8] sm:$0xff] }
0x500b   : > { %10867 = vmatprep.mubr.msk.f32.mxu0 %vm11175_vm2, %v11174_v59 }
0x500c   : > { %v8496_v44 = vmul.f32 %v8495_v28, %v8495_v28  ;;  %v9109_v28 = vld [vmem:[#allocation2 + $0xb0] sm:$0xff] }
0x500e   : > { %v8497_v45 = vsel %vm388_vm0, %v8496_v44, 0.0  ;;  %v9110_v44 = vld [vmem:[#allocation2 + $0xb8] sm:$0xff] }
0x500f   : > { %v8498_v49 = vrot.slane %v8497_v45, 4 }
0x5011   : > { %v8499_v46 = vadd.f32 %v8498_v49, %v8497_v45  ;;  %v9937_v45 = vld [vmem:[%s11254_s18 + $0xd8] sm:$0xff] }
0x5012   : > { %v9928_v49 = vld [vmem:[%s11294_s26 + $0x1c] ss:$0 sm:$0xff] }
0x5013   : > { %v8500_v17 = vrot.slane %v8499_v46, 2 }
0x5015   : > { %v8501_v52 = vadd.f32 %v8500_v17, %v8499_v46 }
0x5017   : > { %v8502_v11 = vrot.slane %v8501_v52, 1 }
0x5019   : > { %v8503_v14 = vadd.f32 %v8502_v11, %v8501_v52 }
0x501b   : > { %v8504_v34 = vadd.f32 %v8503_v14, %v12142_v43 }
0x501d   : > { %9464 = vst.msk [vmem:[%s382_s15] sm:$0x1] %vm9463_vm6, %v8504_v34 }
0x50ca   : > { %v8576_v51 = vpop.f32.mrf.mxu0 }
0x50cb   : > { %8584 = vrot.lane.b32.xlu1 %v8576_v51, %s11172_s19 }
0x50cc   : > { %v10860_v63 = vpop.f32.mrf.mxu0 }
0x50cf   : > { %8581 = vrot.lane.b32.xlu1 %v8576_v51, %s11173_s20 }
0x513d   : > { %v8585_v0 = vpop.permute.xlu1 %8584 }
0x513e   : > { %10862 = vmatpush3.msra.mxu0 %v8585_v0 }
0x513f   : > { %10863 = vmatprep.subr.mxu0 %v11174_v59 }
0x5141   : > { %v8582_v53 = vpop.permute.xlu1 %8581 }
0x5142   : > { %10864 = vmatpush3.msra.mxu0 %v8582_v53 }
0x5143   : > { %10865 = vmatprep.subr.mxu0 %v11174_v59 }
0x5144   : > { %10866 = vmatpush3.msra.mxu0 %v8576_v51 }
0x5145   : > { %10868 = vmatmul.mubr.msk.f32.vlgmr.msra.gmra.mxu0 %vm1391_vm4, %v11126_v54  ;;  %10884 = vmatprep.subr.mxu0 %v11174_v59 }
0x5146   : > { %10886 = vmatprep.mubr.msk.f32.mxu0 %vm11175_vm2, %v11174_v59  ;;  %10885 = vmatpush3.msra.mxu0 %v9916_v1 }
0x5205   : > { %v8658_v43 = vpop.f32.mrf.mxu0 }
0x5206   : > { %v8659_v58 = vadd.f32 %v9908_v56, %v8658_v43 }
0x5207   : > { %v10869_v47 = vpop.f32.mrf.mxu0 }
0x5208   : > { %10873 = vmatmul.mubr.msk.f32.vlgmr.msra.gmra.mxu1 %vm388_vm0, %v8659_v58 }
0x5209   : > { %10881 = vmatprep.mubr.msk.f32.mxu1 %vm11175_vm2, %v11174_v59 }
0x52c8   : > { %v8733_v18 = vpop.f32.mrf.mxu1 }
0x52c9   : > { %8741 = vrot.lane.b32.xlu0 %v8733_v18, %s11172_s19  ;;  %8738 = vrot.lane.b32.xlu1 %v8733_v18, %s11173_s20 }
0x52ca   : > { %v10874_v2 = vpop.f32.mrf.mxu1 }
0x533b   : > { %v8742_v21 = vpop.permute.xlu0 %8741  ;;  %v8739_v60 = vpop.permute.xlu1 %8738 }
0x533c   : > { %10876 = vmatpush3.msra.mxu1 %v8742_v21 }
0x533d   : > { %10877 = vmatprep.subr.mxu1 %v11174_v59 }
0x533e   : > { %10878 = vmatpush3.msra.mxu1 %v8739_v60 }
0x533f   : > { %10879 = vmatprep.subr.mxu1 %v11174_v59 }
0x5340   : > { %10880 = vmatpush3.msra.mxu1 %v8733_v18 }
0x5341   : > { %10882 = vmatmul.mubr.msk.f32.vlgmr.msra.gmra.mxu1 %vm1391_vm4, %v11126_v54  ;;  %10898 = vmatprep.subr.mxu1 %v9924_v15 }
0x5342   : > { %10899 = vmatpush3.msra.mxu1 %v9924_v15 }
0x5401   : > { %v8815_v20 = vpop.f32.mrf.mxu1 }
0x5402   : > { %v8816_v3 = vadd.f32 %v9913_v62, %v8815_v20 }
0x5403   : > { %v10883_v27 = vpop.f32.mrf.mxu1 }
0x5404   : > { %v9915_v61 = vmul.f32 -1.442695, %v8816_v3 }
0x5406   : > { %11094 = vpow2.f32 %v9915_v61 }
0x5413   : > { %v11095_v57 = vpop.eup %11094 }
0x5414   : > { %v8822_v5 = vadd.f32 1.0, %v11095_v57 }
0x5416   : > { %11096 = vrcp.f32 %v8822_v5 }
0x5423   : > { %v11097_v6 = vpop.eup %11096 }
0x5424   : > { %v8825_v7 = vmul.f32 %v11097_v6, %v8816_v3  ;;  %v11127_v6 = vld [vmem:[#allocation2] sm:$0xff] }
0x5426   : > { %10887 = vmatmul.mubr.msk.f32.vlgmr.msra.gmra.mxu0 %vm388_vm0, %v8825_v7 }
0x5427   : > { %10895 = vmatprep.mubr.msk.f32.mxu0 %vm1391_vm4, %v8908_v8 }
0x54e6   : > { %v8897_v59 = vpop.f32.mrf.mxu0 }
0x54e7   : > { %8902 = vrot.lane.b32.xlu1 %v8897_v59, %s11173_s20  ;;  %8905 = vrot.lane.b32.xlu0 %v8897_v59, %s11172_s19 }
0x54e8   : > { %v10888_v12 = vpop.f32.mrf.mxu0 }
0x5559   : > { %v8906_v9 = vpop.permute.xlu0 %8905  ;;  %v8903_v10 = vpop.permute.xlu1 %8902 }
0x555a   : > { %10889 = vmatprep.subr.mxu0 %v8906_v9 }
0x555b   : > { %10890 = vmatpush3.msra.mxu0 %v8906_v9 }
0x555c   : > { %10891 = vmatprep.subr.mxu0 %v8903_v10 }
0x555d   : > { %10892 = vmatpush3.msra.mxu0 %v8903_v10 }
0x555e   : > { %10893 = vmatprep.subr.mxu0 %v8897_v59 }
0x555f   : > { %10894 = vmatpush3.msra.mxu0 %v8897_v59 }
0x5560   : > { %10896 = vmatmul.mubr.msk.f32.vlgmr.msra.gmra.mxu0 %vm1391_vm4, %v8909_v31  ;;  %10921 = vmatprep.subr.mxu0 %v9937_v45 }
0x5561   : > { %10922 = vmatpush3.msra.mxu0 %v9937_v45 }
0x5620   : > { %v10897_v48 = vpop.f32.mrf.mxu0 }
0x5621   : > { %v8993_v30 = vadd.f32 %v10897_v48, %v9919_v19 }
0x5622   : > { %v8987_v22 = vpop.f32.mrf.mxu0 }
0x5623   : > { %v9923_v37 = vmul.f32 -1.442695, %v8993_v30  ;;  %v8988_v36 = vadd.f32 %v9919_v19, %v8987_v22 }
0x5625   : > { %11098 = vpow2.f32 %v9923_v37  ;;  %v9922_v38 = vmul.f32 -1.442695, %v8988_v36  ;;  %v11128_v37 = vld [vmem:[#allocation2 + $0x8] sm:$0xff] }
0x5627   : > { %11100 = vpow2.f32 %v9922_v38  ;;  %v11130_v38 = vld [vmem:[#allocation2 + $0x18] sm:$0xff] }
0x5632   : > { %v11099_v39 = vpop.eup %11098 }
0x5633   : > { %v9003_v23 = vadd.f32 1.0, %v11099_v39  ;;  %v9943_v39 = vld [vmem:[%s11294_s26 + $0x1d] ss:$0 sm:$0xff] }
0x5634   : > { %v11101_v50 = vpop.eup %11100 }
0x5635   : > { %v9002_v4 = vadd.f32 1.0, %v11101_v50  ;;  %11102 = vrcp.f32 %v9003_v23 }
0x5637   : > { %11104 = vrcp.f32 %v9002_v4 }
0x5642   : > { %v11103_v24 = vpop.eup %11102 }
0x5643   : > { %v9009_v13 = vmul.f32 %v11103_v24, %v8993_v30 }
0x5644   : > { %v11105_v25 = vpop.eup %11104 }
0x5645   : > { %v9008_v16 = vmul.f32 %v11105_v25, %v8988_v36  ;;  %v11129_v36 = vld [vmem:[#allocation2 + $0x10] sm:$0xff] }
0x5647   : > { %10900 = vmatprep.mubr.msk.f32.mxu1 %vm388_vm0, %v9008_v16 }
0x5648   : > { %10901 = vmatmul.mubr.msk.f32.vlgmr.msra.gmra.mxu1 %vm388_vm0, %v9009_v13 }
0x5649   : > { %10915 = vmatprep.mubr.msk.f32.mxu1 %vm1228_vm3, %v9107_v26 }
0x5708   : > { %v10902_v32 = vpop.f32.mrf.mxu1 }
0x5709   : > { %9103 = vrot.lane.b32.xlu0 %v10902_v32, %s11172_s19 }
0x570a   : > { %v9084_v33 = vpop.f32.mrf.mxu1 }
0x570b   : > { %9101 = vrot.lane.b32.xlu1 %v9084_v33, %s11172_s19 }
0x570d   : > { %9097 = vrot.lane.b32.xlu0 %v10902_v32, %s11173_s20 }
0x570f   : > { %9095 = vrot.lane.b32.xlu1 %v9084_v33, %s11173_s20 }
0x577b   : > { %v9104_v35 = vpop.permute.xlu0 %9103 }
0x577c   : > { %10903 = vmatprep.subr.mxu1 %v9104_v35 }
0x577d   : > { %10904 = vmatpush3.msra.mxu1 %v9104_v35  ;;  %v9102_v40 = vpop.permute.xlu1 %9101 }
0x577e   : > { %10905 = vmatprep.subr.mxu1 %v9102_v40 }
0x577f   : > { %v9098_v29 = vpop.permute.xlu0 %9097  ;;  %10906 = vmatpush3.msra.mxu1 %v9102_v40 }
0x5780   : > { %10907 = vmatprep.subr.mxu1 %v9098_v29 }
0x5781   : > { %10908 = vmatpush3.msra.mxu1 %v9098_v29  ;;  %v9096_v42 = vpop.permute.xlu1 %9095 }
0x5782   : > { %10909 = vmatprep.subr.mxu1 %v9096_v42 }
0x5783   : > { %10910 = vmatpush3.msra.mxu1 %v9096_v42 }
0x5784   : > { %10911 = vmatprep.subr.mxu1 %v10902_v32 }
0x5785   : > { %10912 = vmatpush3.msra.mxu1 %v10902_v32 }
0x5786   : > { %10913 = vmatprep.subr.mxu1 %v9084_v33 }
0x5787   : > { %10914 = vmatpush3.msra.mxu1 %v9084_v33 }
0x5788   : > { %10916 = vmatmul.mubr.msk.f32.vlgmr.msra.gmra.mxu1 %vm1228_vm3, %v9108_v41 }
0x5789   : > { %10918 = vmatprep.mubr.msk.f32.mxu1 %vm1228_vm3, %v9109_v28 }
0x578c   : > { %10919 = vmatmul.mubr.msk.f32.gmra.mxu1 %vm1228_vm3, %v9110_v44 }
0x5848   : > { %v10917_v46 = vpop.f32.mrf.mxu1 }
0x5849   : > { %v9200_v17 = vadd.f32 %v10917_v46, %v9928_v49 }
0x584a   : > { %v9194_v52 = vpop.f32.mrf.mxu1 }
0x584b   : > { %v9934_v11 = vmul.f32 -1.442695, %v9200_v17  ;;  %v9195_v14 = vadd.f32 %v9928_v49, %v9194_v52 }
0x584c   : > { %v10920_v34 = vpop.f32.mrf.mxu1 }
0x584d   : > { %11106 = vpow2.f32 %v9934_v11  ;;  %v9933_v51 = vmul.f32 -1.442695, %v9195_v14  ;;  %v9210_v63 = vadd.f32 %v10920_v34, %v9928_v49 }
0x584e   : > { %v9204_v0 = vpop.f32.mrf.mxu1 }
0x584f   : > { %11108 = vpow2.f32 %v9933_v51  ;;  %v9936_v53 = vmul.f32 -1.442695, %v9210_v63  ;;  %v9205_v54 = vadd.f32 %v9928_v49, %v9204_v0 }
0x5851   : > { %11110 = vpow2.f32 %v9936_v53  ;;  %v9935_v55 = vmul.f32 -1.442695, %v9205_v54 }
0x5853   : > { %11112 = vpow2.f32 %v9935_v55 }
0x585a   : > { %v11107_v56 = vpop.eup %11106 }
0x585b   : > { %v9226_v43 = vadd.f32 1.0, %v11107_v56 }
0x585c   : > { %v11109_v58 = vpop.eup %11108 }
0x585d   : > { %v9225_v47 = vadd.f32 1.0, %v11109_v58  ;;  %11114 = vrcp.f32 %v9226_v43 }
0x585e   : > { %v11111_v18 = vpop.eup %11110 }
0x585f   : > { %11116 = vrcp.f32 %v9225_v47  ;;  %v9228_v2 = vadd.f32 1.0, %v11111_v18 }
0x5860   : > { %v11113_v21 = vpop.eup %11112 }
0x5861   : > { %v9227_v60 = vadd.f32 1.0, %v11113_v21  ;;  %11118 = vrcp.f32 %v9228_v2 }
0x5863   : > { %11120 = vrcp.f32 %v9227_v60 }
0x586a   : > { %v11115_v1 = vpop.eup %11114 }
0x586b   : > { %v9238_v3 = vmul.f32 %v11115_v1, %v9200_v17 }
0x586c   : > { %v11117_v62 = vpop.eup %11116 }
0x586d   : > { %v9237_v20 = vmul.f32 %v11117_v62, %v9195_v14 }
0x586e   : > { %v11119_v27 = vpop.eup %11118 }
0x586f   : > { %10923 = vmatprep.mubr.msk.f32.mxu0 %vm388_vm0, %v9237_v20  ;;  %v9240_v5 = vmul.f32 %v11119_v27, %v9210_v63 }
0x5870   : > { %v11121_v61 = vpop.eup %11120  ;;  %10924 = vmatmul.mubr.msk.f32.vlgmr.msra.gmra.mxu0 %vm388_vm0, %v9238_v3 }
0x5871   : > { %v9239_v57 = vmul.f32 %v11121_v61, %v9205_v54 }
0x5873   : > { %10926 = vmatprep.mubr.msk.f32.mxu0 %vm388_vm0, %v9239_v57 }
0x5874   : > { %10927 = vmatmul.mubr.msk.f32.gmra.mxu0 %vm388_vm0, %v9240_v5 }
0x5875   : > { %10953 = vmatprep.mubr.msk.f32.mxu0 %vm523_vm1, %v11127_v6 }
0x5930   : > { %v10925_v7 = vpop.f32.mrf.mxu0 }
0x5932   : > { %v9321_v8 = vpop.f32.mrf.mxu0 }
0x5934   : > { %v10928_v59 = vpop.f32.mrf.mxu0 }
0x5935   : > { %9362 = vrot.lane.b32.xlu0 %v10928_v59, %s11172_s19 }
0x5936   : > { %v9331_v12 = vpop.f32.mrf.mxu0 }
0x5937   : > { %9360 = vrot.lane.b32.xlu1 %v9331_v12, %s11172_s19 }
0x5939   : > { %9358 = vrot.lane.b32.xlu0 %v10925_v7, %s11172_s19 }
0x593b   : > { %9356 = vrot.lane.b32.xlu1 %v9321_v8, %s11172_s19 }
0x593d   : > { %9350 = vrot.lane.b32.xlu0 %v10928_v59, %s11173_s20 }
0x593f   : > { %9348 = vrot.lane.b32.xlu1 %v9331_v12, %s11173_s20 }
0x5941   : > { %9346 = vrot.lane.b32.xlu0 %v10925_v7, %s11173_s20 }
0x5943   : > { %9344 = vrot.lane.b32.xlu1 %v9321_v8, %s11173_s20 }
0x59a7   : > { %v9363_v9 = vpop.permute.xlu0 %9362 }
0x59a8   : > { %10929 = vmatprep.subr.mxu0 %v9363_v9 }
0x59a9   : > { %10930 = vmatpush3.msra.mxu0 %v9363_v9  ;;  %v9361_v10 = vpop.permute.xlu1 %9360 }
0x59aa   : > { %10931 = vmatprep.subr.mxu0 %v9361_v10 }
0x59ab   : > { %v9359_v31 = vpop.permute.xlu0 %9358  ;;  %10932 = vmatpush3.msra.mxu0 %v9361_v10 }
0x59ac   : > { %10933 = vmatprep.subr.mxu0 %v9359_v31 }
0x59ad   : > { %10934 = vmatpush3.msra.mxu0 %v9359_v31  ;;  %v9357_v15 = vpop.permute.xlu1 %9356 }
0x59ae   : > { %10935 = vmatprep.subr.mxu0 %v9357_v15 }
0x59af   : > { %v9351_v19 = vpop.permute.xlu0 %9350  ;;  %10936 = vmatpush3.msra.mxu0 %v9357_v15 }
0x59b0   : > { %10937 = vmatprep.subr.mxu0 %v9351_v19 }
0x59b1   : > { %10938 = vmatpush3.msra.mxu0 %v9351_v19  ;;  %v9349_v48 = vpop.permute.xlu1 %9348 }
0x59b2   : > { %10939 = vmatprep.subr.mxu0 %v9349_v48 }
0x59b3   : > { %v9347_v30 = vpop.permute.xlu0 %9346  ;;  %10940 = vmatpush3.msra.mxu0 %v9349_v48 }
0x59b4   : > { %10941 = vmatprep.subr.mxu0 %v9347_v30 }
0x59b5   : > { %10942 = vmatpush3.msra.mxu0 %v9347_v30  ;;  %v9345_v22 = vpop.permute.xlu1 %9344 }
0x59b6   : > { %10943 = vmatprep.subr.mxu0 %v9345_v22 }
0x59b7   : > { %10944 = vmatpush3.msra.mxu0 %v9345_v22 }
0x59b8   : > { %10945 = vmatprep.subr.mxu0 %v10928_v59 }
0x59b9   : > { %10946 = vmatpush3.msra.mxu0 %v10928_v59 }
0x59ba   : > { %10947 = vmatprep.subr.mxu0 %v9331_v12 }
0x59bb   : > { %10948 = vmatpush3.msra.mxu0 %v9331_v12 }
0x59bc   : > { %10949 = vmatprep.subr.mxu0 %v10925_v7 }
0x59bd   : > { %10950 = vmatpush3.msra.mxu0 %v10925_v7 }
0x59be   : > { %10951 = vmatprep.subr.mxu0 %v9321_v8 }
0x59bf   : > { %10952 = vmatpush3.msra.mxu0 %v9321_v8 }
0x59c0   : > { %10954 = vmatmul.mubr.msk.f32.vlgmr.msra.gmra.mxu0 %vm523_vm1, %v11128_v37 }
0x59c1   : > { %10956 = vmatprep.mubr.msk.f32.mxu0 %vm523_vm1, %v11129_v36 }
0x59c4   : > { %10957 = vmatmul.mubr.msk.f32.gmra.mxu0 %vm523_vm1, %v11130_v38 }
0x5a80   : > { %v10955_v23 = vpop.f32.mrf.mxu0 }
0x5a81   : > { %v9445_v50 = vadd.f32 %v10955_v23, %v9943_v39 }
0x5a82   : > { %v9439_v4 = vpop.f32.mrf.mxu0 }
0x5a83   : > { %9949 = vst.msk [vmem:[%s11816_s13 + $0x28] sm:$0xff] %vm388_vm0, %v9445_v50  ;;  %v9440_v24 = vadd.f32 %v9943_v39, %v9439_v4 }
0x5a84   : > { %v10958_v25 = vpop.f32.mrf.mxu0 }
0x5a85   : > { %9948 = vst.msk [vmem:[%s11816_s13 + $0x20] sm:$0xff] %vm388_vm0, %v9440_v24  ;;  %v9455_v16 = vadd.f32 %v10958_v25, %v9943_v39 }
0x5a86   : > { %v9449_v13 = vpop.f32.mrf.mxu0 }
0x5a87   : > { %9951 = vst.msk [vmem:[%s11816_s13 + $0x38] sm:$0xff] %vm388_vm0, %v9455_v16  ;;  %v9450_v26 = vadd.f32 %v9943_v39, %v9449_v13 }
0x5a89   : > { %9950 = vst.msk [vmem:[%s11816_s13 + $0x30] sm:$0xff] %vm388_vm0, %v9450_v26 }
0x5a8a PF: > { %s19_s24 = sadd.s32 1, %s11167_s24  }
0x5a8b   : > { %p16_p1 = scmp.ge.s32.totalorder %s19_s24, 4  }
0x5a8d   :  { %18 = sbr.rel (!%p16_p1) target bundleno = 1 (0x1), region = 146 }
0x5a92   :  { %9498 = vsyncpa [#allocation3], 1 }
0x5a93   :  { %9500 = vsyncpa [#allocation3 + $0x1], 1 }

</bundles_post_ra>
